<compile_context>
chip_gen: v7x
topology: tpu7x:2x2x1
jax: 0.10.0
libtpu: 0.0.40
codegen_flags: <defaults>
</compile_context>

<pallas_src>
import math

import jax
import jax.numpy as jnp
from jax import lax
from jax.experimental import pallas as pl
from jax.experimental.pallas import tpu as pltpu


C_IN = 1024          # hard-coded in Adapter_cc(1024, 4)
REDUCTION = 4
C_MID = C_IN // REDUCTION
RATIO = 0.4
NORM_EPS = 1e-12     # guards rsqrt on all-zero / masked-tail spatial columns


def _round_up(x, m):
    return ((x + m - 1) // m) * m


def _clip_adapter_kernel(x_ref, w1_ref, w2_ref, txt_ref, out_ref):
    # x_ref:   (C_IN, TS)    channel-major tile of the NCHW activations (bf16)
    # w1_ref:  (C_MID, C_IN) fc1.weight, PyTorch layout (bf16)
    # w2_ref:  (C_IN, C_MID) fc2.weight, PyTorch layout (bf16)
    # txt_ref: (K_PAD, C_IN) exp(logit_scale) * text / ||text||, zero-padded (bf16)
    # out_ref: (K_PAD, TS)   logits tile (f32)
    x_bf = x_ref[...]
    x32 = x_bf.astype(jnp.float32)

    # Adapter_cc in transposed form: h^T = W1 @ x^T ; a^T = W2 @ relu(h^T)
    h = jnp.dot(w1_ref[...], x_bf, preferred_element_type=jnp.float32)
    h = jnp.maximum(h, 0.0).astype(jnp.bfloat16)
    a = jnp.dot(w2_ref[...], h, preferred_element_type=jnp.float32)
    a = jnp.maximum(a, 0.0)

    # Residual blend in f32: feat = ratio * adapter_out + (1 - ratio) * x
    feat = RATIO * a + (1.0 - RATIO) * x32

    # Per-column (per spatial position) inverse L2 norm over channels (EUP rsqrt).
    inv_norm = lax.rsqrt(jnp.sum(feat * feat, axis=0, keepdims=True) + NORM_EPS)

    # logits^T = (scale * txt_n) @ feat^T ; apply the per-column norm to the
    # small (K_PAD, TS) result instead of the (C_IN, TS) features (commutes).
    logits = jnp.dot(txt_ref[...], feat.astype(jnp.bfloat16),
                     preferred_element_type=jnp.float32)
    out_ref[...] = logits * inv_norm


def _pick_spatial_tile(S, B):
    """Spatial (lane) tile size: multiple of 128, generation-aware cap."""
    try:
        vmem_bytes = pltpu.get_tpu_info().vmem_capacity_bytes
    except Exception:
        vmem_bytes = 64 * 1024 * 1024         # assume the smallest (v7x per-TC)
    # v5e/v6e (128 MiB VMEM): TS up to 1024; v7x (64 MiB): stay at 512.
    ts_cap = 1024 if vmem_bytes >= (100 << 20) else 512
    ts = min(ts_cap, max(128, _round_up(S, 128)))
    # Keep >= 2 grid steps so both v7x TensorCores get work.
    if B * pl.cdiv(S, ts) < 2 and S > 128:
        ts = max(128, _round_up(pl.cdiv(S, 2), 128))
    return ts


def custom_clip_cc_forward(image_features_nchw, w1, w2, text_features, logit_scale):
    """image_features_nchw: (B, 1024, H, W). w1: (256,1024), w2: (1024,256) in
    PyTorch nn.Linear layout. Returns (B, K, H, W) float32 logits."""
    B, C, H, W = image_features_nchw.shape
    assert C == C_IN
    K = text_features.shape[0]
    S = H * W

    # ---- grid-invariant prep, hoisted out of the kernel ----
    txt = text_features.astype(jnp.float32)
    txt = txt * lax.rsqrt(jnp.sum(txt * txt, axis=-1, keepdims=True))
    txt = (jnp.exp(logit_scale).astype(jnp.float32) * txt).astype(jnp.bfloat16)
    # K lives on the *sublane* axis of the (K_pad, TS) output (TS is the lane
    # axis), so pad only to the 8-row sublane granule, not 128.
    K_pad = _round_up(K, 8)
    if K_pad != K:
        txt = jnp.pad(txt, ((0, K_pad - K), (0, 0)))

    w1_bf = w1.astype(jnp.bfloat16)                # (C_MID, C_IN)
    w2_bf = w2.astype(jnp.bfloat16)                # (C_IN, C_MID)

    # (B, C, H, W) -> (B, C, S): free reshape, no transpose / HBM round-trip.
    # Feed bf16 (halves the dominant HBM stream); no jnp.pad copy — the tail
    # spatial tile is handled by Pallas partial blocks (masked writeback), and
    # all in-kernel math is per-spatial-column so tail garbage never leaks.
    x = image_features_nchw.reshape(B, C, S).astype(jnp.bfloat16)

    TS = _pick_spatial_tile(S, B)
    n_s = pl.cdiv(S, TS)
    grid = (B, n_s)

    n_steps = B * n_s
    cost = pl.CostEstimate(
        flops=int(n_steps * 2 * TS * C_IN * (2 * C_MID + K_pad)),
        transcendentals=int(n_steps * TS),
        bytes_accessed=int(B * C * S * 2 + B * K_pad * S * 4
                           + (w1_bf.size + w2_bf.size + txt.size) * 2),
    )

    out = pl.pallas_call(
        _clip_adapter_kernel,
        out_shape=jax.ShapeDtypeStruct((B, K_pad, S), jnp.float32),
        grid_spec=pltpu.PrefetchScalarGridSpec(
            num_scalar_prefetch=0,
            grid=grid,
            in_specs=[
                pl.BlockSpec((None, C_IN, TS), lambda b, s: (b, 0, s)),   # x tile
                pl.BlockSpec((C_MID, C_IN), lambda b, s: (0, 0)),         # fc1.weight
                pl.BlockSpec((C_IN, C_MID), lambda b, s: (0, 0)),         # fc2.weight
                pl.BlockSpec((K_pad, C_IN), lambda b, s: (0, 0)),         # scaled text
            ],
            out_specs=pl.BlockSpec((None, K_pad, TS), lambda b, s: (b, 0, s)),
        ),
        compiler_params=pltpu.CompilerParams(
            dimension_semantics=("parallel", "parallel"),
            vmem_limit_bytes=(64 if TS >= 1024 else 32) * 1024 * 1024,
        ),
        cost_estimate=cost,
    )(x, w1_bf, w2_bf, txt)

    if K_pad != K:
        out = out[:, :K]                      # tiny slice; only when K % 8 != 0
    # (B, K, S) -> (B, K, H, W): output already channel-first, free reshape.
    return out.reshape(B, K, H, W)


def _reference_forward(x_nchw, w1, w2, text, logit_scale):
    """Pure-JAX f32 reference mirroring the PyTorch forward."""
    B, C, H, W = x_nchw.shape
    xr = jnp.transpose(x_nchw, (0, 2, 3, 1)).reshape(-1, C)
    h = jnp.maximum(xr @ w1.T, 0.0)
    a = jnp.maximum(h @ w2.T, 0.0)
    f = RATIO * a + (1.0 - RATIO) * xr
    f = f / jnp.linalg.norm(f, axis=-1, keepdims=True)
    t = text / jnp.linalg.norm(text, axis=-1, keepdims=True)
    logits = jnp.exp(logit_scale) * (f @ t.T)
    return jnp.transpose(logits.reshape(B, H, W, -1), (0, 3, 1, 2))


def _init_params(key, num_classes):
    k1, k2, k3 = jax.random.split(key, 3)
    # nn.Linear default init: U(-1/sqrt(fan_in), 1/sqrt(fan_in)); PyTorch layout.
    b1 = 1.0 / math.sqrt(C_IN)
    b2 = 1.0 / math.sqrt(C_MID)
    w1 = jax.random.uniform(k1, (C_MID, C_IN), jnp.float32, -b1, b1)   # fc1.weight
    w2 = jax.random.uniform(k2, (C_IN, C_MID), jnp.float32, -b2, b2)   # fc2.weight
    # Synthetic deterministic "text encoder" output (see TODO(synk) above).
    text_features = jax.random.normal(k3, (num_classes, C_IN), jnp.float32)
    # CLIP init: logit_scale = ln(1 / 0.07)
    logit_scale = jnp.asarray(math.log(1.0 / 0.07), jnp.float32)
    return w1, w2, text_features, logit_scale


if __name__ == "__main__":
    key = jax.random.PRNGKey(0)
    k_x, k_p = jax.random.split(key)

    B, H, W = 2, 16, 16        # channel dim fixed at 1024 by the module
    NUM_CLASSES = 8

    image_features = jax.random.normal(k_x, (B, C_IN, H, W), jnp.float32)
    w1, w2, text_features, logit_scale = _init_params(k_p, NUM_CLASSES)

    logits = custom_clip_cc_forward(image_features, w1, w2, text_features, logit_scale)
    jax.block_until_ready(logits)

    assert logits.shape == (B, NUM_CLASSES, H, W)
    assert logits.dtype == jnp.float32

    # Numerical sanity vs f32 reference (bf16 x / bf16 MXU inputs -> loose tol).
    ref = _reference_forward(image_features, w1, w2, text_features, logit_scale)
    max_err = float(jnp.max(jnp.abs(logits - ref)))
    assert max_err < 1e-1, max_err

    print("KERNEL_OK")
</pallas_src>

<mosaic_0001>
module attributes {stable_mosaic.version = 11 : i64} {
  func.func @_clip_adapter_kernel(%arg0: i32, %arg1: i32, %arg2: memref<1x1024x256xbf16, #tpu.memory_space<vmem>>, %arg3: memref<256x1024xbf16, #tpu.memory_space<vmem>>, %arg4: memref<1024x256xbf16, #tpu.memory_space<vmem>>, %arg5: memref<8x1024xbf16, #tpu.memory_space<vmem>>, %arg6: memref<1x8x256xf32, #tpu.memory_space<vmem>>) attributes {dimension_semantics = [#tpu.dimension_semantics<parallel>, #tpu.dimension_semantics<parallel>], iteration_bounds = array<i64: 2, 1>, scalar_prefetch = 0 : i64, scratch_operands = 0 : i64, tpu.core_type = #tpu.core_type<tc>, window_params = [{transform_indices = @transform_0, window_bounds = array<i64: 1, 1024, 256>}, {pipeline_mode = #tpu.pipeline_mode<synchronous>, transform_indices = @transform_1, window_bounds = array<i64: 256, 1024>}, {pipeline_mode = #tpu.pipeline_mode<synchronous>, transform_indices = @transform_2, window_bounds = array<i64: 1024, 256>}, {pipeline_mode = #tpu.pipeline_mode<synchronous>, transform_indices = @transform_3, window_bounds = array<i64: 8, 1024>}, {transform_indices = @transform_4, window_bounds = array<i64: 1, 8, 256>}]} {
    %c0 = arith.constant 0 : index
    %c0_0 = arith.constant 0 : index
    %c0_1 = arith.constant 0 : index
    %0 = vector.load %arg2[%c0, %c0_0, %c0_1] : memref<1x1024x256xbf16, #tpu.memory_space<vmem>>, vector<1x1024x256xbf16>
    %1 = vector.shape_cast %0 : vector<1x1024x256xbf16> to vector<1024x256xbf16>
    %2 = arith.extf %1 : vector<1024x256xbf16> to vector<1024x256xf32>
    %c0_2 = arith.constant 0 : index
    %c0_3 = arith.constant 0 : index
    %3 = vector.load %arg3[%c0_2, %c0_3] : memref<256x1024xbf16, #tpu.memory_space<vmem>>, vector<256x1024xbf16>
    %cst = arith.constant dense<0.000000e+00> : vector<256x256xf32>
    %4 = tpu.matmul %3, %1, %cst {dimension_numbers = #tpu.dot_dimension_numbers<[1], [0], [0], [1], [0, 0, 1, 1], [], []>} : vector<256x1024xbf16>, vector<1024x256xbf16>, vector<256x256xf32> -> vector<256x256xf32>
    %cst_4 = arith.constant 0.000000e+00 : f32
    %5 = vector.broadcast %cst_4 : f32 to vector<256x256xf32>
    %6 = arith.maximumf %4, %5 : vector<256x256xf32>
    %7 = arith.truncf %6 : vector<256x256xf32> to vector<256x256xbf16>
    %c0_5 = arith.constant 0 : index
    %c0_6 = arith.constant 0 : index
    %8 = vector.load %arg4[%c0_5, %c0_6] : memref<1024x256xbf16, #tpu.memory_space<vmem>>, vector<1024x256xbf16>
    %cst_7 = arith.constant dense<0.000000e+00> : vector<1024x256xf32>
    %9 = tpu.matmul %8, %7, %cst_7 {dimension_numbers = #tpu.dot_dimension_numbers<[1], [0], [0], [1], [0, 0, 1, 1], [], []>} : vector<1024x256xbf16>, vector<256x256xbf16>, vector<1024x256xf32> -> vector<1024x256xf32>
    %cst_8 = arith.constant 0.000000e+00 : f32
    %10 = vector.broadcast %cst_8 : f32 to vector<1024x256xf32>
    %11 = arith.maximumf %9, %10 : vector<1024x256xf32>
    %cst_9 = arith.constant 4.000000e-01 : f32
    %12 = vector.broadcast %cst_9 : f32 to vector<1024x256xf32>
    %13 = arith.mulf %12, %11 : vector<1024x256xf32>
    %cst_10 = arith.constant 6.000000e-01 : f32
    %14 = vector.broadcast %cst_10 : f32 to vector<1024x256xf32>
    %15 = arith.mulf %14, %2 : vector<1024x256xf32>
    %16 = arith.addf %13, %15 : vector<1024x256xf32>
    %17 = arith.mulf %16, %16 : vector<1024x256xf32>
    %cst_11 = arith.constant dense<0.000000e+00> : vector<256xf32>
    %18 = vector.multi_reduction <add>, %17, %cst_11 [0] : vector<1024x256xf32> to vector<256xf32>
    %19 = vector.shape_cast %18 : vector<256xf32> to vector<1x256xf32>
    %cst_12 = arith.constant 9.99999996E-13 : f32
    %20 = vector.broadcast %cst_12 : f32 to vector<1x256xf32>
    %21 = arith.addf %19, %20 : vector<1x256xf32>
    %22 = math.rsqrt %21 : vector<1x256xf32>
    %c0_13 = arith.constant 0 : index
    %c0_14 = arith.constant 0 : index
    %23 = vector.load %arg5[%c0_13, %c0_14] : memref<8x1024xbf16, #tpu.memory_space<vmem>>, vector<8x1024xbf16>
    %24 = arith.truncf %16 : vector<1024x256xf32> to vector<1024x256xbf16>
    %cst_15 = arith.constant dense<0.000000e+00> : vector<8x256xf32>
    %25 = tpu.matmul %23, %24, %cst_15 {dimension_numbers = #tpu.dot_dimension_numbers<[1], [0], [0], [1], [0, 0, 1, 1], [], []>} : vector<8x1024xbf16>, vector<1024x256xbf16>, vector<8x256xf32> -> vector<8x256xf32>
    %26 = vector.broadcast %22 : vector<1x256xf32> to vector<8x256xf32>
    %27 = arith.mulf %25, %26 : vector<8x256xf32>
    %c0_16 = arith.constant 0 : index
    %c0_17 = arith.constant 0 : index
    %c0_18 = arith.constant 0 : index
    %28 = vector.load %arg6[%c0_16, %c0_17, %c0_18] : memref<1x8x256xf32, #tpu.memory_space<vmem>>, vector<1x8x256xf32>
    %29 = vector.shape_cast %28 : vector<1x8x256xf32> to vector<8x256xf32>
    %30 = vector.shape_cast %27 : vector<8x256xf32> to vector<1x8x256xf32>
    tpu.vector_store %arg6[%c0_16, %c0_17, %c0_18], %30 {strides = array<i32>} : memref<1x8x256xf32, #tpu.memory_space<vmem>>, vector<1x8x256xf32>,
    return
  }
  func.func @transform_0(%arg0: i32, %arg1: i32) -> (i32, i32, i32) {
    %c0_i32 = arith.constant 0 : i32
    %c0_i32_0 = arith.constant 0 : i32
    return %arg0, %c0_i32, %arg1 : i32, i32, i32
  }
  func.func @transform_1(%arg0: i32, %arg1: i32) -> (i32, i32) {
    %c0_i32 = arith.constant 0 : i32
    %c0_i32_0 = arith.constant 0 : i32
    %c0_i32_1 = arith.constant 0 : i32
    return %c0_i32, %c0_i32_0 : i32, i32
  }
  func.func @transform_2(%arg0: i32, %arg1: i32) -> (i32, i32) {
    %c0_i32 = arith.constant 0 : i32
    %c0_i32_0 = arith.constant 0 : i32
    %c0_i32_1 = arith.constant 0 : i32
    return %c0_i32, %c0_i32_0 : i32, i32
  }
  func.func @transform_3(%arg0: i32, %arg1: i32) -> (i32, i32) {
    %c0_i32 = arith.constant 0 : i32
    %c0_i32_0 = arith.constant 0 : i32
    %c0_i32_1 = arith.constant 0 : i32
    return %c0_i32, %c0_i32_0 : i32, i32
  }
  func.func @transform_4(%arg0: i32, %arg1: i32) -> (i32, i32, i32) {
    %c0_i32 = arith.constant 0 : i32
    %c0_i32_0 = arith.constant 0 : i32
    return %arg0, %c0_i32, %arg1 : i32, i32, i32
  }
}

</mosaic_0001>

<bundles_post_ra>
// kernel: tpu_custom_call.1
= control target key start
LH: loop header
LB: loop body
LE: loop exit
PB: predicated region body
PF: predicated region fallthrough
CT: control target
= control target key end

     0   :  { %s8559_s0 = inlined_call_operand.hbm [shape: bf16[2,1024,256], index: 0, kind: input, shape index: {}]   ;;  %s8560_s1 = inlined_call_operand.hbm [shape: bf16[256,1024], index: 1, kind: input, shape index: {}]   ;;  %s8561_s2 = inlined_call_operand.hbm [shape: bf16[1024,256], index: 2, kind: input, shape index: {}]   ;;  %s8562_s3 = inlined_call_operand.hbm [shape: bf16[8,1024], index: 3, kind: input, shape index: {}]   ;;  %s8563_s4 = inlined_call_operand.hbm [shape: f32[2,8,256], index: 4, kind: output, shape index: {}]  }
   0x1   :  { %8568 = sst [smem:[#allocation31_spill]] %s8560_s1 }
   0x2   :  { %9 = vsyncpa [#allocation3], 0 }
   0x3   :  { %11 = vsyncpa [#allocation3 + $0x1], 0 }
   0x4   :  { %12 = vsyncpa [#allocation6], 0 }
   0x5   :  { %13 = vsyncpa [#allocation9], 0 }
   0x6   :  { %14 = vsyncpa [#allocation4], 0 }
   0x7   :  { %16 = vsyncpa [#allocation4 + $0x1], 0  ;;  %s7807_s15 = smov 0   ;;  %s7809_s16 = smov 0  }
   0x8   :  { %s7811_s17 = smov 0   ;;  %s7813_s18 = smov 0  }
   0x9   :  { %s7815_s19 = smov 0   ;;  %s7817_s20 = smov 0  }
   0xa LB: > { %s6387_s21 = sadd.s32 4294967295, %s7771_s20   ;;  %s6388_s22 = sadd.s32 4294967294, %s7771_s20   ;;  %s7771_s20 = sphi %s7817_s20, %s22_s20   ;;  %s7767_s19 = sphi %s7815_s19, %s8622_s19   ;;  %s7763_s18 = sphi %s7813_s18, %s8621_s18   ;;  %s7759_s17 = sphi %s7811_s17, %s8620_s17   ;;  %s7755_s16 = sphi %s7809_s16, %s8619_s16   ;;  %s7751_s15 = sphi %s7807_s15, %s8618_s15  }
   0xb   : > { %p56_p0 = scmp.ne.s32.totalorder %s7755_s16, %s7751_s15  ;;  %p7841_p1 = scmp.eq.s32.totalorder %s6387_s21, 0 }
   0xc   : > { %p7845_p2 = scmp.eq.s32.totalorder %s6387_s21, 1  ;;  %p151_p3 = scmp.eq.s32.totalorder %s6388_s22, 1 }
   0xd   : > { %s8569_s23 = scalar_select %p7841_p1, 1, 0 }
   0xe   : > { %s8570_s24 = scalar_select %p7845_p2, 1, 0 }
   0xf   : > { %p7851_p4 = por %p7841_p1, %p56_p0  ;;  %p6389_p5 = scmp.ge.s32.totalorder %s7771_s20, 1 }
  0x10   : > { %p7856_p6 = por %p151_p3, %p56_p0  ;;  %p158_p7 = scmp.lt.s32.totalorder %s7771_s20, 3 }
  0x11   : > { %s8571_s25 = scalar_select %p7851_p4, 1, 0 }
  0x12   : > { %s8572_s26 = scalar_select %p7856_p6, 1, 0 }
  0x13   : > { %p7861_p8 = pnand %p6389_p5, %p158_p7  ;;  %s7773_s28 = smov [#allocation5]  }
  0x14   : > { %s170_s29 = sshll.u32 %s7773_s28, 4  ;;  %s7774_s5 = smov [#allocation7]   ;;  %s7865_s29 = int_to_ptr.vmem [resolvable:$true] %s170_s29 }
  0x15   : > { %s8573_s27 = scalar_select %p7861_p8, 1, 0 }
  0x16   : > { %p7022_p9 = pneg %p7861_p8  ;;  %s183_s6 = sshll.u32 %s7774_s5, 4  ;;  %s7876_s6 = int_to_ptr.vmem [resolvable:$true] %s183_s6 }
  0x17   : > { %s8575_s1 = sld [smem:[#allocation31_spill]] }
  0x18   : > { %p7872_p11 = pnand %p7022_p9, %p7841_p1 }
  0x1a   : > { %p7886_p13 = pneg %p7872_p11 }
  0x1d   : > { %s7567_s9 = scalar_lea.hbm %s8575_s1, 16384 }
  0x1e   : > { %p7568_p12 = scmp.ne.s32.totalorder %s8575_s1, %s7567_s9  ;;  %p7574_p5 = scmp.lt.u32.totalorder %s7567_s9, %s8575_s1 }
  0x20   : > { %p7570_p0 = pnand %p7886_p13, %p7568_p12 }
  0x22   : > { %p7571_p3 = pneg %p7570_p0 }
  0x24   : > { %p7576_p7 = pnand %p7574_p5, %p7571_p3 }
  0x26   : > { %7579 = shalt.err (!%p7576_p7)
}
  0x27   : > { %s7580_s21 = scalar_lea.vmem %s7865_s29, 16384  ;;  %p7588_p1 = scmp.lt.s32.totalorder %s7865_s29, %s7865_s29 }
  0x28   : > { %p7581_p9 = scmp.ne.s32.totalorder %s7865_s29, %s7580_s21  ;;  %p7589_p4 = scmp.lt.s32.totalorder %s7580_s21, %s7580_s21 }
  0x2a   : > { %p7583_p10 = pnand %p7581_p9, %p7886_p13  ;;  %p7590_p12 = por %p7589_p4, %p7588_p1 }
  0x2c   : > { %p7584_p6 = pneg %p7583_p10 }
  0x2e   : > { %p7591_p0 = pnand %p7590_p12, %p7584_p6 }
  0x30   : > { %7594 = shalt.err (!%p7591_p0)
}
  0x31   : > { %s7775_s22 = smov 512   ;;  %s7776_s28 = smov 32  }
  0x32   : > { %7025 = dma.hbm_to_vmem [thread:$0]  (!%p7872_p11), %s8575_s1, 16384, %s7865_s29, [#allocation6], %s7775_s22, %s7775_s22, %s7776_s28  }
  0x33   : > { %s7595_s10 = scalar_lea.hbm %s8561_s2, 16384 }
  0x34   : > { %p7596_p1 = scmp.ne.s32.totalorder %s8561_s2, %s7595_s10  ;;  %p7602_p10 = scmp.lt.u32.totalorder %s7595_s10, %s8561_s2 }
  0x36   : > { %p7598_p4 = pnand %p7596_p1, %p7886_p13 }
  0x38   : > { %p7599_p6 = pneg %p7598_p4 }
  0x3a   : > { %p7604_p3 = pnand %p7602_p10, %p7599_p6 }
  0x3c   : > { %7607 = shalt.err (!%p7604_p3)
}
  0x3d   : > { %s7608_s29 = scalar_lea.vmem %s7876_s6, 16384  ;;  %p7616_p12 = scmp.lt.s32.totalorder %s7876_s6, %s7876_s6 }
  0x3e   : > { %p7609_p5 = scmp.ne.s32.totalorder %s7876_s6, %s7608_s29  ;;  %p7617_p0 = scmp.lt.s32.totalorder %s7608_s29, %s7608_s29 }
  0x40   : > { %p7611_p7 = pnand %p7609_p5, %p7886_p13  ;;  %p7618_p1 = por %p7617_p0, %p7616_p12 }
  0x42   : > { %p7612_p9 = pneg %p7611_p7 }
  0x44   : > { %p7619_p4 = pnand %p7618_p1, %p7612_p9 }
  0x46   : > { %7622 = shalt.err (!%p7619_p4)
}
  0x47   : > { %s7777_s22 = smov 128   ;;  %s7778_s28 = smov 8  }
  0x48   : > { %7028 = dma.hbm_to_vmem [thread:$0]  (!%p7872_p11), %s8561_s2, 16384, %s7876_s6, [#allocation6], %s7777_s22, %s7777_s22, %s7778_s28  }
  0x49   : > { %s7779_s8 = smov [#allocation8]   ;;  %s7623_s13 = scalar_lea.hbm %s8562_s3, 512 }
  0x4a   : > { %s197_s9 = sshll.u32 %s7779_s8, 4  ;;  %p7624_p6 = scmp.ne.s32.totalorder %s8562_s3, %s7623_s13  ;;  %s198_s9 = int_to_ptr.vmem [resolvable:$true] %s197_s9 }
  0x4b   : > { %p7630_p5 = scmp.lt.u32.totalorder %s7623_s13, %s8562_s3 }
  0x4c   : > { %p7626_p10 = pnand %p7624_p6, %p7886_p13 }
  0x4e   : > { %p7627_p3 = pneg %p7626_p10 }
  0x50   : > { %p7632_p7 = pnand %p7630_p5, %p7627_p3 }
  0x52   : > { %7635 = shalt.err (!%p7632_p7)
}
  0x53   : > { %s7636_s6 = scalar_lea.vmem %s198_s9, 512  ;;  %p7644_p1 = scmp.lt.s32.totalorder %s198_s9, %s198_s9 }
  0x54   : > { %p7637_p9 = scmp.ne.s32.totalorder %s198_s9, %s7636_s6  ;;  %p7645_p4 = scmp.lt.s32.totalorder %s7636_s6, %s7636_s6 }
  0x56   : > { %p7639_p12 = pnand %p7637_p9, %p7886_p13  ;;  %p7646_p8 = por %p7645_p4, %p7644_p1 }
  0x58   : > { %p7640_p0 = pneg %p7639_p12 }
  0x5a   : > { %p7647_p2 = pnand %p7646_p8, %p7640_p0 }
  0x5c   : > { %7650 = shalt.err (!%p7647_p2)
}
  0x5d   : > { %7031 = dma.hbm_to_vmem [thread:$0]  (!%p7872_p11), %s8562_s3, 512, %s198_s9, [#allocation9]  }
  0x5e   : > { %s34_s1 = sadd.s32 1, %s7767_s19  ;;  %s43_s12 = sadd.s32 1, %s7759_s17 }
  0x5f   : > { %p36_p8 = scmp.ge.s32.totalorder %s34_s1, 2  ;;  %p50_p2 = scmp.ne.s32.totalorder %s7759_s17, %s7755_s16 }
  0x60   : > { %p51_p13 = scmp.eq.s32.totalorder %s7771_s20, 0  ;;  %p8578_p10 = scmp.ne.s32.totalorder %s8570_s24, 0 }
  0x61   : > { %s8624_s1 = smov (%p36_p8, %s34_s1), 0  ;;  %p7043_p11 = scmp.lt.s32.totalorder %s7771_s20, 2 }
  0x62   : > { %p7958_p6 = por %p51_p13, %p50_p2  ;;  %p7964_p3 = por %p8578_p10, %p50_p2 }
  0x63   : > { %s38_s10 = ssub.s32 %s7767_s19, %s8624_s1  ;;  %s208_s9 = sand.u32 1, %s7759_s17  }
  0x64   : > { %p41_p5 = scmp.eq.s32.totalorder %s38_s10, 0  ;;  %s6394_s11 = sshll.u32 %s208_s9, 10 }
  0x65   : > { %s6800_s14 = sshll.u32 %s7767_s19, 14  ;;  %s212_s24 = scalar_lea.vmem [#allocation2], %s6394_s11 }
  0x66   : > { %s7973_s13 = scalar_select %p41_p5, %s7759_s17, %s43_s12  }
  0x67   : > { %s7979_s6 = scalar_lea.hbm %s8559_s0, %s6800_s14  ;;  %s221_s5 = sshll.u32 %s212_s24, 4  ;;  %s7981_s5 = int_to_ptr.vmem [resolvable:$true] %s221_s5 }
  0x68   : > { %p7985_p7 = pnand %p7043_p11, %p7958_p6  ;;  %s7989_s12 = scalar_lea.sflag [#allocation3], %s208_s9 }
  0x69   : > { %s7651_s10 = scalar_lea.hbm %s7979_s6, 16384  ;;  %s7656_s30 = scalar_lea.hbm %s8559_s0, 32768 }
  0x6a   : > { %p7652_p9 = scmp.ne.s32.totalorder %s7979_s6, %s7651_s10  ;;  %p7653_p12 = pneg %p7985_p7 }
  0x6b   : > { %p7657_p4 = scmp.lt.u32.totalorder %s7979_s6, %s8559_s0  ;;  %p7658_p8 = scmp.lt.u32.totalorder %s7656_s30, %s7651_s10 }
  0x6c   : > { %p7654_p0 = pnand %p7653_p12, %p7652_p9  ;;  %p7660_p13 = scmp.lt.u32.totalorder %s7651_s10, %s7979_s6 }
  0x6d   : > { %p7659_p2 = por %p7658_p8, %p7657_p4 }
  0x6e   : > { %p7655_p1 = pneg %p7654_p0 }
  0x6f   : > { %p7661_p6 = por %p7660_p13, %p7659_p2 }
  0x71   : > { %p7662_p10 = pnand %p7661_p6, %p7655_p1 }
  0x73   : > { %7665 = shalt.err (!%p7662_p10)
}
  0x74   : > { %s7666_s9 = scalar_lea.vmem %s7981_s5, 16384  ;;  %s7780_s24 = smov [#allocation2]  }
  0x75   : > { %p7667_p11 = scmp.ne.s32.totalorder %s7981_s5, %s7666_s9  ;;  %s7671_s11 = sshll.u32 %s7780_s24, 4  ;;  %s7672_s11 = int_to_ptr.vmem [resolvable:$false] %s7671_s11 }
  0x76   : > { %s7673_s14 = scalar_lea.vmem %s7672_s11, 32768  ;;  %p7674_p0 = scmp.lt.s32.totalorder %s7981_s5, %s7672_s11 }
  0x77   : > { %p7669_p5 = pnand %p7667_p11, %p7653_p12  ;;  %p7675_p4 = scmp.lt.s32.totalorder %s7673_s14, %s7666_s9 }
  0x79   : > { %p7670_p9 = pneg %p7669_p5  ;;  %p7676_p8 = por %p7675_p4, %p7674_p0 }
  0x7b   : > { %p7677_p2 = pnand %p7676_p8, %p7670_p9 }
  0x7d   : > { %7680 = shalt.err (!%p7677_p2)
}
  0x7e   : > { %7035 = dma.hbm_to_vmem [thread:$0]  (!%p7985_p7), %s7979_s6, 16384, %s7981_s5, %s7989_s12, %s7777_s22, %s7777_s22, %s7778_s28  }
  0x7f   : > { %p8581_p12 = scmp.ne.s32.totalorder %s8573_s27, 0 }
  0x81   : > { %233 = sbr.rel (%p8581_p12) target bundleno = 1773 (0x6ed), region = 36 }
  0x88   : > { %s8023_s10 = sand.u32 1, %s7755_s16   ;;  %p8582_p1 = scmp.ne.s32.totalorder %s8571_s25, 0 }
  0x89   : > { %s6398_s30 = sshll.u32 %s8023_s10, 10  ;;  %s236_s21 = scalar_lea.sflag [#allocation3], %s8023_s10 }
  0x8a   : > { %s8027_s29 = scalar_lea.vmem [#allocation2], %s6398_s30 }
  0x8b   : > { %7734 = dma.done.wait (%p8582_p1), %s236_s21, 16384  }
  0x8c   : > { %7736 = vsyncadd (%p8582_p1), %s236_s21, 4294950912  ;;  %p8583_p7 = scmp.ne.s32.totalorder %s8569_s23, 0 }
  0x8e   : > { %7738 = dma.done.wait (%p8583_p7), [#allocation6], 32768  }
  0x8f   : > { %7740 = vsyncadd (%p8583_p7), [#allocation6], 4294934528 }
  0x90   : > { %7742 = dma.done.wait (%p8583_p7), [#allocation9], 512  }
  0x91   : > { %7744 = vsyncadd (%p8583_p7), [#allocation9], 4294966784  ;;  %v310_v0 = vld [vmem:[%s8027_s29 + $0x100] sm:$0xff]  ;;  %v311_v1 = vld [vmem:[%s8027_s29 + $0x108] sm:$0xff]  ;;  %s6402_s23 = sshll.u32 %s8023_s10, 4  ;;  %s6801_s25 = sshll.u32 %s7763_s18, 8 }
  0x92   : > { %v312_v2 = vld [vmem:[%s8027_s29 + $0x110] sm:$0xff]  ;;  %v6564_v3 = vcombine.high %v310_v0, %v311_v1  ;;  %v6563_v4 = vcombine.low %v310_v0, %v311_v1  ;;  %v313_v5 = vld [vmem:[%s8027_s29 + $0x118] sm:$0xff]  ;;  %v314_v7 = vld [vmem:[%s8027_s29 + $0x120] sm:$0xff]  ;;  %s275_s27 = scalar_lea.vmem [#allocation10], %s6402_s23  ;;  %s8510_s5 = scalar_lea.hbm %s8563_s4, %s6801_s25 }
  0x93   : > { %v6566_v6 = vcombine.high %v312_v2, %v313_v5  ;;  %v315_v8 = vld [vmem:[%s8027_s29 + $0x128] sm:$0xff]  ;;  %v6565_v9 = vcombine.low %v312_v2, %v313_v5  ;;  %v316_v11 = vld [vmem:[%s8027_s29 + $0x130] sm:$0xff]  ;;  %v317_v12 = vld [vmem:[%s8027_s29 + $0x138] sm:$0xff]  ;;  %s6274_s22 = sshll.u32 %s275_s27, 4  ;;  %s6258_s18 = scalar_lea.sflag [#allocation4], %s8023_s10  ;;  %s8512_s22 = int_to_ptr.vmem [resolvable:$true] %s6274_s22 }
  0x94   : > { %2263 = vmatprep.subr.bf16.mxu0 %v6564_v3  ;;  %v6568_v10 = vcombine.high %v314_v7, %v315_v8  ;;  %v6567_v13 = vcombine.low %v314_v7, %v315_v8  ;;  %v6570_v14 = vcombine.high %v316_v11, %v317_v12  ;;  %v318_v15 = vld [vmem:[%s8027_s29 + $0x140] sm:$0xff]  ;;  %v319_v16 = vld [vmem:[%s8027_s29 + $0x148] sm:$0xff]  ;;  %v6569_v19 = vcombine.low %v316_v11, %v317_v12  ;;  %v320_v22 = vld [vmem:[%s8027_s29 + $0x150] sm:$0xff]  ;;  %s7681_s7 = scalar_lea.vmem %s8512_s22, 256  ;;  %s7781_s12 = smov [#allocation10]  }
  0x95   : > { %2264 = vmatpush1.bf16.msra.mxu0 %v6563_v4  ;;  %v8051_v17 = vld [vmem:[#allocation5 + $0x8] sm:$0xff]  ;;  %v6572_v21 = vcombine.high %v318_v15, %v319_v16  ;;  %v321_v23 = vld [vmem:[%s8027_s29 + $0x158] sm:$0xff]  ;;  %v6571_v24 = vcombine.low %v318_v15, %v319_v16  ;;  %v322_v26 = vld [vmem:[%s8027_s29 + $0x160] sm:$0xff]  ;;  %p7682_p13 = scmp.ne.s32.totalorder %s8512_s22, %s7681_s7  ;;  %s7685_s9 = sshll.u32 %s7781_s12, 4  ;;  %s7686_s9 = int_to_ptr.vmem [resolvable:$false] %s7685_s9 }
  0x96   : > { %2265 = vmatprep.subr.bf16.mxu0 %v6566_v6  ;;  %v8053_v18 = vld [vmem:[#allocation5 + $0x28] sm:$0xff]  ;;  %v6574_v25 = vcombine.high %v320_v22, %v321_v23  ;;  %v6573_v28 = vcombine.low %v320_v22, %v321_v23  ;;  %v324_v30 = vld [vmem:[%s8027_s29 + $0x170] sm:$0xff]  ;;  %v325_v31 = vld [vmem:[%s8027_s29 + $0x178] sm:$0xff]  ;;  %s7687_s24 = scalar_lea.vmem %s7686_s9, 512  ;;  %p7688_p11 = scmp.lt.s32.totalorder %s8512_s22, %s7686_s9 }
  0x97   : > { %v6406_v20 = vcombine.high %v8051_v17, %v8053_v18  ;;  %v323_v27 = vld [vmem:[%s8027_s29 + $0x168] sm:$0xff]  ;;  %v6578_v33 = vcombine.high %v324_v30, %v325_v31  ;;  %v326_v34 = vld [vmem:[%s8027_s29 + $0x180] sm:$0xff]  ;;  %v6577_v36 = vcombine.low %v324_v30, %v325_v31  ;;  %v328_v37 = vld [vmem:[%s8027_s29 + $0x190] sm:$0xff]  ;;  %p7683_p6 = pnand %p7682_p13, %p7964_p3  ;;  %p7689_p5 = scmp.lt.s32.totalorder %s7687_s24, %s7681_s7 }
  0x98   : > { %v6576_v29 = vcombine.high %v322_v26, %v323_v27  ;;  %v6575_v32 = vcombine.low %v322_v26, %v323_v27  ;;  %v327_v35 = vld [vmem:[%s8027_s29 + $0x188] sm:$0xff]  ;;  %v329_v38 = vld [vmem:[%s8027_s29 + $0x198] sm:$0xff]  ;;  %v330_v41 = vld [vmem:[%s8027_s29 + $0x1a0] sm:$0xff] }
  0x99   : > { %2266 = vmatpush1.bf16.msra.mxu0 %v6565_v9  ;;  %2295 = vmatprep.mubr.bf16.mxu0 %v6406_v20  ;;  %v6580_v39 = vcombine.high %v326_v34, %v327_v35  ;;  %v6579_v40 = vcombine.low %v326_v34, %v327_v35  ;;  %v331_v42 = vld [vmem:[%s8027_s29 + $0x1a8] sm:$0xff]  ;;  %v6582_v43 = vcombine.high %v328_v37, %v329_v38  ;;  %v332_v45 = vld [vmem:[%s8027_s29 + $0x1b0] sm:$0xff]  ;;  %v333_v46 = vld [vmem:[%s8027_s29 + $0x1b8] sm:$0xff]  ;;  %p7684_p10 = pneg %p7683_p6  ;;  %p7690_p9 = por %p7689_p5, %p7688_p11 }
  0x9a   : > { %2267 = vmatprep.subr.bf16.mxu0 %v6568_v10  ;;  %v6581_v44 = vcombine.low %v328_v37, %v329_v38  ;;  %v6584_v47 = vcombine.high %v330_v41, %v331_v42  ;;  %v6583_v48 = vcombine.low %v330_v41, %v331_v42  ;;  %v334_v49 = vld [vmem:[%s8027_s29 + $0x1c0] sm:$0xff]  ;;  %v335_v50 = vld [vmem:[%s8027_s29 + $0x1c8] sm:$0xff]  ;;  %v6586_v51 = vcombine.high %v332_v45, %v333_v46  ;;  %v336_v53 = vld [vmem:[%s8027_s29 + $0x1d0] sm:$0xff] }
  0x9b   : > { %v6585_v52 = vcombine.low %v332_v45, %v333_v46  ;;  %v337_v54 = vld [vmem:[%s8027_s29 + $0x1d8] sm:$0xff]  ;;  %v6588_v55 = vcombine.high %v334_v49, %v335_v50  ;;  %v6587_v56 = vcombine.low %v334_v49, %v335_v50  ;;  %v338_v57 = vld [vmem:[%s8027_s29 + $0x1e0] sm:$0xff]  ;;  %v339_v58 = vld [vmem:[%s8027_s29 + $0x1e8] sm:$0xff]  ;;  %v6405_v10 = vcombine.low %v8051_v17, %v8053_v18  ;;  %p7691_p0 = pnand %p7690_p9, %p7684_p10 }
  0x9c   : > { %v6590_v59 = vcombine.high %v336_v53, %v337_v54  ;;  %v6589_v60 = vcombine.low %v336_v53, %v337_v54  ;;  %v340_v61 = vld [vmem:[%s8027_s29 + $0x1f0] sm:$0xff]  ;;  %v341_v62 = vld [vmem:[%s8027_s29 + $0x1f8] sm:$0xff]  ;;  %v6592_v63 = vcombine.high %v338_v57, %v339_v58  ;;  %v6591_v0 = vcombine.low %v338_v57, %v339_v58  ;;  %v342_v1 = vld [vmem:[%s8027_s29 + $0x200] sm:$0xff] }
  0x9d   : > { %2268 = vmatpush1.bf16.msra.mxu0 %v6567_v13  ;;  %v343_v2 = vld [vmem:[%s8027_s29 + $0x208] sm:$0xff]  ;;  %v6594_v3 = vcombine.high %v340_v61, %v341_v62  ;;  %v6593_v6 = vcombine.low %v340_v61, %v341_v62  ;;  %v344_v7 = vld [vmem:[%s8027_s29 + $0x210] sm:$0xff]  ;;  %v345_v8 = vld [vmem:[%s8027_s29 + $0x218] sm:$0xff] }
  0x9e   : > { %2269 = vmatprep.subr.bf16.mxu0 %v6570_v14  ;;  %v671_v4 = vld [vmem:[#allocation5 + $0x48] sm:$0xff]  ;;  %v6596_v9 = vcombine.high %v342_v1, %v343_v2  ;;  %v6595_v11 = vcombine.low %v342_v1, %v343_v2  ;;  %v346_v13 = vld [vmem:[%s8027_s29 + $0x220] sm:$0xff]  ;;  %v6598_v15 = vcombine.high %v344_v7, %v345_v8  ;;  %v6597_v20 = vcombine.low %v344_v7, %v345_v8  ;;  %v349_v22 = vld [vmem:[%s8027_s29 + $0x238] sm:$0xff] }
  0x9f   : > { %v675_v5 = vld [vmem:[#allocation5 + $0x68] sm:$0xff]  ;;  %v354_v38 = vld [vmem:[%s8027_s29 + $0x260] sm:$0xff]  ;;  %v357_v45 = vld [vmem:[%s8027_s29 + $0x278] sm:$0xff] }
  0xa0   : > { %v6414_v12 = vcombine.high %v671_v4, %v675_v5  ;;  %v347_v14 = vld [vmem:[%s8027_s29 + $0x228] sm:$0xff]  ;;  %v6413_v17 = vcombine.low %v671_v4, %v675_v5  ;;  %v358_v50 = vld [vmem:[%s8027_s29 + $0x280] sm:$0xff]  ;;  %v361_v57 = vld [vmem:[%s8027_s29 + $0x298] sm:$0xff] }
  0xa1   : > { %2270 = vmatpush1.bf16.msra.mxu0 %v6569_v19  ;;  %v679_v16 = vld [vmem:[#allocation5 + $0x88] sm:$0xff]  ;;  %v6600_v23 = vcombine.high %v346_v13, %v347_v14  ;;  %v362_v62 = vld [vmem:[%s8027_s29 + $0x2a0] sm:$0xff]  ;;  %v364_v4 = vld [vmem:[%s8027_s29 + $0x2b0] sm:$0xff] }
  0xa2   : > { %2271 = vmatprep.subr.bf16.mxu0 %v6572_v21  ;;  %v683_v19 = vld [vmem:[#allocation5 + $0xa8] sm:$0xff]  ;;  %v348_v21 = vld [vmem:[%s8027_s29 + $0x230] sm:$0xff]  ;;  %v365_v5 = vld [vmem:[%s8027_s29 + $0x2b8] sm:$0xff] }
  0xa3   : > { %v6422_v18 = vcombine.high %v679_v16, %v683_v19  ;;  %v351_v26 = vld [vmem:[%s8027_s29 + $0x248] sm:$0xff]  ;;  %v6602_v27 = vcombine.high %v348_v21, %v349_v22  ;;  %v6601_v30 = vcombine.low %v348_v21, %v349_v22  ;;  %v6421_v34 = vcombine.low %v679_v16, %v683_v19  ;;  %v368_v16 = vld [vmem:[%s8027_s29 + $0x2d0] sm:$0xff]  ;;  %v369_v19 = vld [vmem:[%s8027_s29 + $0x2d8] sm:$0xff] }
  0xa4   : > { %v695_v41 = vld [vmem:[#allocation5 + $0x108] sm:$0xff] }
  0xa5   : > { %2272 = vmatpush1.bf16.msra.mxu0 %v6571_v24  ;;  %v6599_v24 = vcombine.low %v346_v13, %v347_v14  ;;  %v699_v42 = vld [vmem:[#allocation5 + $0x128] sm:$0xff] }
  0xa6   : > { %2273 = vmatprep.subr.bf16.mxu0 %v6574_v25  ;;  %v350_v25 = vld [vmem:[%s8027_s29 + $0x240] sm:$0xff]  ;;  %v703_v53 = vld [vmem:[#allocation5 + $0x148] sm:$0xff]  ;;  %v6437_v58 = vcombine.low %v695_v41, %v699_v42 }
  0xa7   : > { %v6604_v31 = vcombine.high %v350_v25, %v351_v26  ;;  %v707_v54 = vld [vmem:[#allocation5 + $0x168] sm:$0xff] }
  0xa8   : > { %v711_v1 = vld [vmem:[#allocation5 + $0x188] sm:$0xff] }
  0xa9   : > { %2274 = vmatpush1.bf16.msra.mxu0 %v6573_v28  ;;  %v687_v28 = vld [vmem:[#allocation5 + $0xc8] sm:$0xff] }
  0xaa   : > { %2275 = vmatprep.subr.bf16.mxu0 %v6576_v29  ;;  %v691_v29 = vld [vmem:[#allocation5 + $0xe8] sm:$0xff] }
  0xab   : > { %v6430_v35 = vcombine.high %v687_v28, %v691_v29  ;;  %v6429_v46 = vcombine.low %v687_v28, %v691_v29  ;;  %v715_v2 = vld [vmem:[#allocation5 + $0x1a8] sm:$0xff]  ;;  %v372_v28 = vld [vmem:[%s8027_s29 + $0x2f0] sm:$0xff]  ;;  %v373_v29 = vld [vmem:[%s8027_s29 + $0x2f8] sm:$0xff] }
  0xac   : > { %v6454_v7 = vcombine.high %v711_v1, %v715_v2  ;;  %v719_v13 = vld [vmem:[#allocation5 + $0x1c8] sm:$0xff] }
  0xad   : > { %2276 = vmatpush1.bf16.msra.mxu0 %v6575_v32  ;;  %v352_v32 = vld [vmem:[%s8027_s29 + $0x250] sm:$0xff]  ;;  %v723_v14 = vld [vmem:[#allocation5 + $0x1e8] sm:$0xff] }
  0xae   : > { %2277 = vmatprep.subr.bf16.mxu0 %v6578_v33  ;;  %v353_v33 = vld [vmem:[%s8027_s29 + $0x258] sm:$0xff]  ;;  %v6462_v21 = vcombine.high %v719_v13, %v723_v14 }
  0xaf   : > { %v6606_v37 = vcombine.high %v352_v32, %v353_v33 }
  0xb1   : > { %2278 = vmatpush1.bf16.msra.mxu0 %v6577_v36  ;;  %v6603_v36 = vcombine.low %v350_v25, %v351_v26  ;;  %v727_v25 = vld [vmem:[#allocation5 + $0x208] sm:$0xff] }
  0xb2   : > { %2279 = vmatprep.subr.bf16.mxu0 %v6580_v39  ;;  %v355_v39 = vld [vmem:[%s8027_s29 + $0x268] sm:$0xff] }
  0xb3   : > { %v731_v26 = vld [vmem:[#allocation5 + $0x228] sm:$0xff] }
  0xb5   : > { %2280 = vmatpush1.bf16.msra.mxu0 %v6579_v40  ;;  %v6605_v40 = vcombine.low %v352_v32, %v353_v33  ;;  %v6626_v33 = vcombine.high %v372_v28, %v373_v29 }
  0xb6   : > { %2281 = vmatprep.subr.bf16.mxu0 %v6582_v43  ;;  %v6608_v43 = vcombine.high %v354_v38, %v355_v39 }
  0xb9   : > { %2282 = vmatpush1.bf16.msra.mxu0 %v6581_v44  ;;  %v356_v44 = vld [vmem:[%s8027_s29 + $0x270] sm:$0xff] }
  0xba   : > { %2283 = vmatprep.subr.bf16.mxu0 %v6584_v47  ;;  %v6438_v47 = vcombine.high %v695_v41, %v699_v42  ;;  %v6610_v49 = vcombine.high %v356_v44, %v357_v45 }
  0xbd   : > { %2284 = vmatpush1.bf16.msra.mxu0 %v6583_v48  ;;  %v6607_v48 = vcombine.low %v354_v38, %v355_v39  ;;  %v279_v38 = vld [vmem:[%s8027_s29 + $0x8] sm:$0xff] }
  0xbe   : > { %2285 = vmatprep.subr.bf16.mxu0 %v6586_v51  ;;  %v359_v51 = vld [vmem:[%s8027_s29 + $0x288] sm:$0xff] }
  0xbf   : > { %v735_v39 = vld [vmem:[#allocation5 + $0x248] sm:$0xff] }
  0xc1   : > { %2286 = vmatpush1.bf16.msra.mxu0 %v6585_v52  ;;  %v6609_v52 = vcombine.low %v356_v44, %v357_v45  ;;  %v6469_v44 = vcombine.low %v727_v25, %v731_v26 }
  0xc2   : > { %2287 = vmatprep.subr.bf16.mxu0 %v6588_v55  ;;  %v6612_v55 = vcombine.high %v358_v50, %v359_v51 }
  0xc5   : > { %2288 = vmatpush1.bf16.msra.mxu0 %v6587_v56  ;;  %v360_v56 = vld [vmem:[%s8027_s29 + $0x290] sm:$0xff] }
  0xc6   : > { %2289 = vmatprep.subr.bf16.mxu0 %v6590_v59  ;;  %v6446_v59 = vcombine.high %v703_v53, %v707_v54  ;;  %v6614_v61 = vcombine.high %v360_v56, %v361_v57 }
  0xc9   : > { %2290 = vmatpush1.bf16.msra.mxu0 %v6589_v60  ;;  %v6611_v60 = vcombine.low %v358_v50, %v359_v51  ;;  %v282_v50 = vld [vmem:[%s8027_s29 + $0x20] sm:$0xff]  ;;  %v283_v51 = vld [vmem:[%s8027_s29 + $0x28] sm:$0xff] }
  0xca   : > { %2291 = vmatprep.subr.bf16.mxu0 %v6592_v63  ;;  %v363_v63 = vld [vmem:[%s8027_s29 + $0x2a8] sm:$0xff] }
  0xcb   : > { %v6615_v8 = vcombine.low %v362_v62, %v363_v63 }
  0xcd   : > { %2292 = vmatpush1.bf16.msra.mxu0 %v6591_v0  ;;  %v6613_v0 = vcombine.low %v360_v56, %v361_v57 }
  0xce   : > { %2293 = vmatprep.subr.bf16.mxu0 %v6594_v3  ;;  %v6616_v3 = vcombine.high %v362_v62, %v363_v63  ;;  %v286_v62 = vld [vmem:[%s8027_s29 + $0x40] sm:$0xff]  ;;  %v287_v63 = vld [vmem:[%s8027_s29 + $0x48] sm:$0xff] }
  0xd1   : > { %2294 = vmatpush1.bf16.msra.mxu0 %v6593_v6  ;;  %v6445_v6 = vcombine.low %v703_v53, %v707_v54  ;;  %v747_v53 = vld [vmem:[#allocation5 + $0x2a8] sm:$0xff]  ;;  %v6536_v54 = vcombine.high %v282_v50, %v283_v51 }
  0xd2   : > { %2456 = vmatprep.subr.bf16.mxu0 %v6596_v9  ;;  %v6618_v9 = vcombine.high %v364_v4, %v365_v5 }
  0xd4   : > { %2296 = vmatmul.mubr.bf16.vlgmr.msra.gmra.mrb[0].mxu0 %v6405_v10  ;;  %v366_v10 = vld [vmem:[%s8027_s29 + $0x2c0] sm:$0xff] }
  0xd5   : > { %2457 = vmatpush1.bf16.msra.mxu0 %v6595_v11  ;;  %2305 = vmatprep.mubr.bf16.mxu0 %v6414_v12  ;;  %v367_v11 = vld [vmem:[%s8027_s29 + $0x2c8] sm:$0xff]  ;;  %v6617_v12 = vcombine.low %v364_v4, %v365_v5 }
  0xd6   : > { %2458 = vmatprep.subr.bf16.mxu0 %v6598_v15  ;;  %v6620_v15 = vcombine.high %v366_v10, %v367_v11  ;;  %v6619_v22 = vcombine.low %v366_v10, %v367_v11  ;;  %v290_v10 = vld [vmem:[%s8027_s29 + $0x60] sm:$0xff]  ;;  %v291_v11 = vld [vmem:[%s8027_s29 + $0x68] sm:$0xff] }
  0xd9   : > { %2459 = vmatpush1.bf16.msra.mxu0 %v6597_v20  ;;  %v6453_v20 = vcombine.low %v711_v1, %v715_v2  ;;  %v755_v1 = vld [vmem:[#allocation5 + $0x2e8] sm:$0xff]  ;;  %v6540_v2 = vcombine.high %v286_v62, %v287_v63 }
  0xda   : > { %2460 = vmatprep.subr.bf16.mxu0 %v6600_v23  ;;  %v6622_v23 = vcombine.high %v368_v16, %v369_v19 }
  0xdc   : > { %2306 = vmatmul.mubr.bf16.gmra.mrb[4].mxu0 %v6413_v17  ;;  %v370_v17 = vld [vmem:[%s8027_s29 + $0x2e0] sm:$0xff] }
  0xdd   : > { %2315 = vmatprep.mubr.bf16.mxu0 %v6422_v18  ;;  %2461 = vmatpush1.bf16.msra.mxu0 %v6599_v24  ;;  %v371_v18 = vld [vmem:[%s8027_s29 + $0x2e8] sm:$0xff]  ;;  %v6621_v24 = vcombine.low %v368_v16, %v369_v19 }
  0xde   : > { %2462 = vmatprep.subr.bf16.mxu0 %v6602_v27  ;;  %v6624_v27 = vcombine.high %v370_v17, %v371_v18  ;;  %v6623_v32 = vcombine.low %v370_v17, %v371_v18  ;;  %v294_v17 = vld [vmem:[%s8027_s29 + $0x80] sm:$0xff]  ;;  %v295_v18 = vld [vmem:[%s8027_s29 + $0x88] sm:$0xff] }
  0xe1   : > { %2463 = vmatpush1.bf16.msra.mxu0 %v6601_v30  ;;  %v6461_v30 = vcombine.low %v719_v13, %v723_v14  ;;  %v763_v13 = vld [vmem:[#allocation5 + $0x328] sm:$0xff]  ;;  %v6544_v14 = vcombine.high %v290_v10, %v291_v11 }
  0xe2   : > { %2464 = vmatprep.subr.bf16.mxu0 %v6604_v31  ;;  %v6470_v31 = vcombine.high %v727_v25, %v731_v26  ;;  %v771_v25 = vld [vmem:[#allocation5 + $0x368] sm:$0xff]  ;;  %v6548_v26 = vcombine.high %v294_v17, %v295_v18 }
  0xe4   : > { %2316 = vmatmul.mubr.bf16.gmra.mrb[8].mxu0 %v6421_v34  ;;  %v8114_v34 = vld [vmem:[%s8027_s29 + $0x300] sm:$0xff] }
  0xe5   : > { %2325 = vmatprep.mubr.bf16.mxu0 %v6430_v35  ;;  %2465 = vmatpush1.bf16.msra.mxu0 %v6603_v36  ;;  %v8117_v35 = vld [vmem:[%s8027_s29 + $0x308] sm:$0xff]  ;;  %v278_v36 = vld [vmem:[%s8027_s29] sm:$0xff] }
  0xe6   : > { %2466 = vmatprep.subr.bf16.mxu0 %v6606_v37  ;;  %v6625_v37 = vcombine.low %v372_v28, %v373_v29  ;;  %v6628_v41 = vcombine.high %v8114_v34, %v8117_v35  ;;  %v6532_v42 = vcombine.high %v278_v36, %v279_v38 }
  0xe8   : > { %2070 = vmatprep.subr.bf16.mxu1 %v6532_v42 }
  0xe9   : > { %2467 = vmatpush1.bf16.msra.mxu0 %v6605_v40  ;;  %v739_v40 = vld [vmem:[#allocation5 + $0x268] sm:$0xff] }
  0xea   : > { %2468 = vmatprep.subr.bf16.mxu0 %v6608_v43  ;;  %v6531_v43 = vcombine.low %v278_v36, %v279_v38  ;;  %v6478_v45 = vcombine.high %v735_v39, %v739_v40  ;;  %v6477_v56 = vcombine.low %v735_v39, %v739_v40  ;;  %v298_v36 = vld [vmem:[%s8027_s29 + $0xa0] sm:$0xff]  ;;  %v775_v38 = vld [vmem:[#allocation5 + $0x388] sm:$0xff] }
  0xeb   : > { %v779_v39 = vld [vmem:[#allocation5 + $0x3a8] sm:$0xff] }
  0xec   : > { %2326 = vmatmul.mubr.bf16.gmra.mrb[12].mxu0 %v6429_v46  ;;  %2071 = vmatpush1.bf16.msra.mxu1 %v6531_v43  ;;  %v280_v46 = vld [vmem:[%s8027_s29 + $0x10] sm:$0xff]  ;;  %v6518_v43 = vcombine.high %v775_v38, %v779_v39 }
  0xed   : > { %2335 = vmatprep.mubr.bf16.mxu0 %v6438_v47  ;;  %2469 = vmatpush1.bf16.msra.mxu0 %v6607_v48  ;;  %v281_v47 = vld [vmem:[%s8027_s29 + $0x18] sm:$0xff] }
  0xee   : > { %2470 = vmatprep.subr.bf16.mxu0 %v6610_v49  ;;  %v6534_v48 = vcombine.high %v280_v46, %v281_v47  ;;  %v6533_v49 = vcombine.low %v280_v46, %v281_v47 }
  0xf0   : > { %2072 = vmatprep.subr.bf16.mxu1 %v6534_v48  ;;  %v302_v48 = vld [vmem:[%s8027_s29 + $0xc0] sm:$0xff] }
  0xf1   : > { %2471 = vmatpush1.bf16.msra.mxu0 %v6609_v52  ;;  %v743_v52 = vld [vmem:[#allocation5 + $0x288] sm:$0xff]  ;;  %2073 = vmatpush1.bf16.msra.mxu1 %v6533_v49 }
  0xf2   : > { %2472 = vmatprep.subr.bf16.mxu0 %v6612_v55  ;;  %v6535_v55 = vcombine.low %v282_v50, %v283_v51  ;;  %2074 = vmatprep.subr.bf16.mxu1 %v6536_v54  ;;  %v6486_v57 = vcombine.high %v743_v52, %v747_v53  ;;  %v6485_v4 = vcombine.low %v743_v52, %v747_v53  ;;  %v303_v49 = vld [vmem:[%s8027_s29 + $0xc8] sm:$0xff] }
  0xf3   : > { %v783_v50 = vld [vmem:[#allocation5 + $0x3c8] sm:$0xff]  ;;  %v6556_v52 = vcombine.high %v302_v48, %v303_v49  ;;  %v6555_v53 = vcombine.low %v302_v48, %v303_v49  ;;  %v6517_v54 = vcombine.low %v775_v38, %v779_v39  ;;  %v678_v38 = vld [vmem:[#allocation5 + $0x80] sm:$0xff] }
  0xf4   : > { %2336 = vmatmul.mubr.bf16.gmra.mrb[16].mxu0 %v6437_v58  ;;  %v284_v58 = vld [vmem:[%s8027_s29 + $0x30] sm:$0xff]  ;;  %v787_v51 = vld [vmem:[#allocation5 + $0x3e8] sm:$0xff]  ;;  %v682_v39 = vld [vmem:[#allocation5 + $0xa0] sm:$0xff] }
  0xf5   : > { %2345 = vmatprep.mubr.bf16.mxu0 %v6446_v59  ;;  %2473 = vmatpush1.bf16.msra.mxu0 %v6611_v60  ;;  %v285_v59 = vld [vmem:[%s8027_s29 + $0x38] sm:$0xff] }
  0xf6   : > { %2474 = vmatprep.subr.bf16.mxu0 %v6614_v61  ;;  %2075 = vmatpush1.bf16.msra.mxu1 %v6535_v55  ;;  %v6538_v60 = vcombine.high %v284_v58, %v285_v59  ;;  %v6537_v61 = vcombine.low %v284_v58, %v285_v59  ;;  %v6526_v55 = vcombine.high %v783_v50, %v787_v51 }
  0xf8   : > { %2076 = vmatprep.subr.bf16.mxu1 %v6538_v60  ;;  %v306_v60 = vld [vmem:[%s8027_s29 + $0xe0] sm:$0xff] }
  0xf9   : > { %2475 = vmatpush1.bf16.msra.mxu0 %v6613_v0  ;;  %v751_v0 = vld [vmem:[#allocation5 + $0x2c8] sm:$0xff] }
  0xfa   : > { %2476 = vmatprep.subr.bf16.mxu0 %v6616_v3  ;;  %2077 = vmatpush1.bf16.msra.mxu1 %v6537_v61  ;;  %v6539_v3 = vcombine.low %v286_v62, %v287_v63  ;;  %v6494_v5 = vcombine.high %v751_v0, %v755_v1  ;;  %v6493_v16 = vcombine.low %v751_v0, %v755_v1  ;;  %v307_v61 = vld [vmem:[%s8027_s29 + $0xe8] sm:$0xff]  ;;  %v664_v62 = vld [vmem:[#allocation5 + $0x10] sm:$0xff] }
  0xfb   : > { %2078 = vmatprep.subr.bf16.mxu1 %v6540_v2  ;;  %v668_v63 = vld [vmem:[#allocation5 + $0x30] sm:$0xff]  ;;  %v6560_v0 = vcombine.high %v306_v60, %v307_v61  ;;  %v6559_v1 = vcombine.low %v306_v60, %v307_v61  ;;  %v6525_v2 = vcombine.low %v783_v50, %v787_v51 }
  0xfc   : > { %2346 = vmatmul.mubr.bf16.gmra.mrb[20].mxu0 %v6445_v6  ;;  %v288_v6 = vld [vmem:[%s8027_s29 + $0x50] sm:$0xff] }
  0xfd   : > { %2355 = vmatprep.mubr.bf16.mxu0 %v6454_v7  ;;  %2477 = vmatpush1.bf16.msra.mxu0 %v6615_v8  ;;  %v289_v7 = vld [vmem:[%s8027_s29 + $0x58] sm:$0xff]  ;;  %v700_v60 = vld [vmem:[#allocation5 + $0x130] sm:$0xff] }
  0xfe   : > { %2478 = vmatprep.subr.bf16.mxu0 %v6618_v9  ;;  %2079 = vmatpush1.bf16.msra.mxu1 %v6539_v3  ;;  %v6542_v8 = vcombine.high %v288_v6, %v289_v7  ;;  %v6541_v9 = vcombine.low %v288_v6, %v289_v7  ;;  %v6408_v3 = vcombine.high %v664_v62, %v668_v63 }
 0x100   : > { %2080 = vmatprep.subr.bf16.mxu1 %v6542_v8  ;;  %v662_v8 = vld [vmem:[#allocation5] sm:$0xff] }
 0x101   : > { %2479 = vmatpush1.bf16.msra.mxu0 %v6617_v12  ;;  %v759_v12 = vld [vmem:[#allocation5 + $0x308] sm:$0xff] }
 0x102   : > { %2480 = vmatprep.subr.bf16.mxu0 %v6620_v15  ;;  %2081 = vmatpush1.bf16.msra.mxu1 %v6541_v9  ;;  %v6543_v15 = vcombine.low %v290_v10, %v291_v11  ;;  %v6502_v19 = vcombine.high %v759_v12, %v763_v13  ;;  %v6501_v28 = vcombine.low %v759_v12, %v763_v13  ;;  %v666_v9 = vld [vmem:[#allocation5 + $0x20] sm:$0xff]  ;;  %v672_v12 = vld [vmem:[#allocation5 + $0x50] sm:$0xff] }
 0x103   : > { %2082 = vmatprep.subr.bf16.mxu1 %v6544_v14  ;;  %v6403_v10 = vcombine.low %v662_v8, %v666_v9  ;;  %v6404_v11 = vcombine.high %v662_v8, %v666_v9  ;;  %v676_v13 = vld [vmem:[#allocation5 + $0x70] sm:$0xff] }
 0x104   : > { %2356 = vmatmul.mubr.bf16.gmra.mrb[24].mxu0 %v6453_v20  ;;  %v292_v20 = vld [vmem:[%s8027_s29 + $0x70] sm:$0xff] }
 0x105   : > { %2365 = vmatprep.mubr.bf16.mxu0 %v6462_v21  ;;  %2481 = vmatpush1.bf16.msra.mxu0 %v6619_v22  ;;  %v293_v21 = vld [vmem:[%s8027_s29 + $0x78] sm:$0xff]  ;;  %v376_v14 = vld [vmem:[%s8027_s29 + $0x310] sm:$0xff] }
 0x106   : > { %2482 = vmatprep.subr.bf16.mxu0 %v6622_v23  ;;  %2083 = vmatpush1.bf16.msra.mxu1 %v6543_v15  ;;  %v6546_v22 = vcombine.high %v292_v20, %v293_v21  ;;  %v6545_v23 = vcombine.low %v292_v20, %v293_v21  ;;  %v377_v15 = vld [vmem:[%s8027_s29 + $0x318] sm:$0xff]  ;;  %v6416_v20 = vcombine.high %v672_v12, %v676_v13 }
 0x107   : > { %2102 = vmatprep.mubr.bf16.mxu1 %v6404_v11  ;;  %v6630_v21 = vcombine.high %v376_v14, %v377_v15  ;;  %v704_v11 = vld [vmem:[#allocation5 + $0x150] sm:$0xff] }
 0x108   : > { %2084 = vmatprep.subr.bf16.mxu1 %v6546_v22  ;;  %v378_v22 = vld [vmem:[%s8027_s29 + $0x320] sm:$0xff] }
 0x109   : > { %2483 = vmatpush1.bf16.msra.mxu0 %v6621_v24  ;;  %v767_v24 = vld [vmem:[#allocation5 + $0x348] sm:$0xff] }
 0x10a   : > { %2484 = vmatprep.subr.bf16.mxu0 %v6624_v27  ;;  %2085 = vmatpush1.bf16.msra.mxu1 %v6545_v23  ;;  %v6547_v27 = vcombine.low %v294_v17, %v295_v18  ;;  %v6510_v29 = vcombine.high %v767_v24, %v771_v25  ;;  %v6509_v42 = vcombine.low %v767_v24, %v771_v25  ;;  %v379_v23 = vld [vmem:[%s8027_s29 + $0x328] sm:$0xff]  ;;  %v670_v17 = vld [vmem:[#allocation5 + $0x40] sm:$0xff] }
 0x10b   : > { %2086 = vmatprep.subr.bf16.mxu1 %v6548_v26  ;;  %v674_v18 = vld [vmem:[#allocation5 + $0x60] sm:$0xff]  ;;  %v6629_v24 = vcombine.low %v376_v14, %v377_v15  ;;  %v392_v14 = vld [vmem:[%s8027_s29 + $0x390] sm:$0xff]  ;;  %v393_v15 = vld [vmem:[%s8027_s29 + $0x398] sm:$0xff] }
 0x10c   : > { %2366 = vmatmul.mubr.bf16.gmra.mrb[28].mxu0 %v6461_v30  ;;  %v296_v30 = vld [vmem:[%s8027_s29 + $0x90] sm:$0xff]  ;;  %v6412_v25 = vcombine.high %v670_v17, %v674_v18  ;;  %v6411_v26 = vcombine.low %v670_v17, %v674_v18  ;;  %v702_v17 = vld [vmem:[#allocation5 + $0x140] sm:$0xff] }
 0x10d   : > { %2375 = vmatprep.mubr.bf16.mxu0 %v6470_v31  ;;  %2485 = vmatpush1.bf16.msra.mxu0 %v6623_v32  ;;  %v297_v31 = vld [vmem:[%s8027_s29 + $0x98] sm:$0xff]  ;;  %v706_v18 = vld [vmem:[#allocation5 + $0x160] sm:$0xff] }
 0x10e   : > { %2486 = vmatprep.subr.bf16.mxu0 %v6626_v33  ;;  %2087 = vmatpush1.bf16.msra.mxu1 %v6547_v27  ;;  %v6550_v32 = vcombine.high %v296_v30, %v297_v31  ;;  %v6549_v33 = vcombine.low %v296_v30, %v297_v31  ;;  %v680_v27 = vld [vmem:[#allocation5 + $0x90] sm:$0xff]  ;;  %v6415_v30 = vcombine.low %v672_v12, %v676_v13 }
 0x10f   : > { %v708_v12 = vld [vmem:[#allocation5 + $0x170] sm:$0xff] }
 0x110   : > { %2088 = vmatprep.subr.bf16.mxu1 %v6550_v32  ;;  %v6631_v32 = vcombine.low %v378_v22, %v379_v23 }
 0x111   : > { %2487 = vmatpush1.bf16.msra.mxu0 %v6625_v37  ;;  %v299_v37 = vld [vmem:[%s8027_s29 + $0xa8] sm:$0xff] }
 0x112   : > { %2649 = vmatprep.subr.bf16.mxu0 %v6628_v41  ;;  %2089 = vmatpush1.bf16.msra.mxu1 %v6549_v33  ;;  %v6552_v40 = vcombine.high %v298_v36, %v299_v37  ;;  %v6551_v41 = vcombine.low %v298_v36, %v299_v37  ;;  %v382_v36 = vld [vmem:[%s8027_s29 + $0x340] sm:$0xff]  ;;  %v383_v37 = vld [vmem:[%s8027_s29 + $0x348] sm:$0xff] }
 0x113   : > { %v6635_v50 = vcombine.low %v382_v36, %v383_v37 }
 0x114   : > { %2376 = vmatmul.mubr.bf16.gmra.mrb[32].mxu0 %v6469_v44  ;;  %2090 = vmatprep.subr.bf16.mxu1 %v6552_v40  ;;  %v300_v44 = vld [vmem:[%s8027_s29 + $0xb0] sm:$0xff] }
 0x115   : > { %2385 = vmatprep.mubr.bf16.mxu0 %v6478_v45  ;;  %v301_v45 = vld [vmem:[%s8027_s29 + $0xb8] sm:$0xff] }
 0x116   : > { %2091 = vmatpush1.bf16.msra.mxu1 %v6551_v41  ;;  %v6554_v46 = vcombine.high %v300_v44, %v301_v45  ;;  %v6553_v47 = vcombine.low %v300_v44, %v301_v45  ;;  %v6420_v41 = vcombine.high %v678_v38, %v682_v39  ;;  %v692_v44 = vld [vmem:[#allocation5 + $0xf0] sm:$0xff]  ;;  %v6636_v45 = vcombine.high %v382_v36, %v383_v37  ;;  %v398_v36 = vld [vmem:[%s8027_s29 + $0x3c0] sm:$0xff]  ;;  %v399_v37 = vld [vmem:[%s8027_s29 + $0x3c8] sm:$0xff] }
 0x118   : > { %2092 = vmatprep.subr.bf16.mxu1 %v6554_v46  ;;  %v384_v46 = vld [vmem:[%s8027_s29 + $0x350] sm:$0xff] }
 0x11a   : > { %2093 = vmatpush1.bf16.msra.mxu1 %v6553_v47  ;;  %v385_v47 = vld [vmem:[%s8027_s29 + $0x358] sm:$0xff] }
 0x11b   : > { %2094 = vmatprep.subr.bf16.mxu1 %v6556_v52  ;;  %v6638_v51 = vcombine.high %v384_v46, %v385_v47  ;;  %v386_v52 = vld [vmem:[%s8027_s29 + $0x360] sm:$0xff] }
 0x11c   : > { %2386 = vmatmul.mubr.bf16.gmra.mrb[36].mxu0 %v6477_v56  ;;  %v304_v56 = vld [vmem:[%s8027_s29 + $0xd0] sm:$0xff] }
 0x11d   : > { %2395 = vmatprep.mubr.bf16.mxu0 %v6486_v57  ;;  %v305_v57 = vld [vmem:[%s8027_s29 + $0xd8] sm:$0xff] }
 0x11e   : > { %2095 = vmatpush1.bf16.msra.mxu1 %v6555_v53  ;;  %v6558_v58 = vcombine.high %v304_v56, %v305_v57  ;;  %v6557_v59 = vcombine.low %v304_v56, %v305_v57  ;;  %v387_v53 = vld [vmem:[%s8027_s29 + $0x368] sm:$0xff]  ;;  %v6637_v56 = vcombine.low %v384_v46, %v385_v47  ;;  %v400_v46 = vld [vmem:[%s8027_s29 + $0x3d0] sm:$0xff]  ;;  %v401_v47 = vld [vmem:[%s8027_s29 + $0x3d8] sm:$0xff] }
 0x11f   : > { %v6640_v61 = vcombine.high %v386_v52, %v387_v53 }
 0x120   : > { %2096 = vmatprep.subr.bf16.mxu1 %v6558_v58 }
 0x122   : > { %2097 = vmatpush1.bf16.msra.mxu1 %v6557_v59  ;;  %v696_v59 = vld [vmem:[#allocation5 + $0x110] sm:$0xff] }
 0x123   : > { %2098 = vmatprep.subr.bf16.mxu1 %v6560_v0 }
 0x124   : > { %2396 = vmatmul.mubr.bf16.gmra.mrb[40].mxu0 %v6485_v4  ;;  %v308_v4 = vld [vmem:[%s8027_s29 + $0xf0] sm:$0xff] }
 0x125   : > { %2405 = vmatprep.mubr.bf16.mxu0 %v6494_v5  ;;  %v309_v5 = vld [vmem:[%s8027_s29 + $0xf8] sm:$0xff] }
 0x126   : > { %2099 = vmatpush1.bf16.msra.mxu1 %v6559_v1  ;;  %v6562_v6 = vcombine.high %v308_v4, %v309_v5  ;;  %v6561_v7 = vcombine.low %v308_v4, %v309_v5  ;;  %v6440_v1 = vcombine.high %v696_v59, %v700_v60  ;;  %v390_v4 = vld [vmem:[%s8027_s29 + $0x380] sm:$0xff]  ;;  %v391_v5 = vld [vmem:[%s8027_s29 + $0x388] sm:$0xff] }
 0x127   : > { %v6644_v13 = vcombine.high %v390_v4, %v391_v5 }
 0x128   : > { %2100 = vmatprep.subr.bf16.mxu1 %v6562_v6  ;;  %v694_v6 = vld [vmem:[#allocation5 + $0x100] sm:$0xff] }
 0x12a   : > { %2101 = vmatpush1.bf16.msra.mxu1 %v6561_v7  ;;  %v698_v7 = vld [vmem:[#allocation5 + $0x120] sm:$0xff] }
 0x12b   : > { %v6436_v9 = vcombine.high %v694_v6, %v698_v7 }
 0x12c   : > { %2406 = vmatmul.mubr.bf16.gmra.mrb[44].mxu0 %v6493_v16  ;;  %v6407_v16 = vcombine.low %v664_v62, %v668_v63  ;;  %v388_v62 = vld [vmem:[%s8027_s29 + $0x370] sm:$0xff]  ;;  %v389_v63 = vld [vmem:[%s8027_s29 + $0x378] sm:$0xff] }
 0x12d   : > { %2415 = vmatprep.mubr.bf16.mxu0 %v6502_v19  ;;  %v6627_v19 = vcombine.low %v8114_v34, %v8117_v35  ;;  %2103 = vmatmul.mubr.bf16.vlgmr.msra.gmra.mrb[0].mxu1 %v6403_v10  ;;  %v684_v34 = vld [vmem:[#allocation5 + $0xb0] sm:$0xff]  ;;  %v6632_v35 = vcombine.high %v378_v22, %v379_v23  ;;  %v6641_v8 = vcombine.low %v388_v62, %v389_v63  ;;  %v394_v22 = vld [vmem:[%s8027_s29 + $0x3a0] sm:$0xff]  ;;  %v395_v23 = vld [vmem:[%s8027_s29 + $0x3a8] sm:$0xff] }
 0x12e   : > { %2112 = vmatprep.mubr.bf16.mxu1 %v6412_v25  ;;  %v6424_v31 = vcombine.high %v680_v27, %v684_v34  ;;  %v6423_v48 = vcombine.low %v680_v27, %v684_v34  ;;  %v6435_v10 = vcombine.low %v694_v6, %v698_v7  ;;  %v6444_v25 = vcombine.high %v702_v17, %v706_v18  ;;  %v712_v27 = vld [vmem:[#allocation5 + $0x190] sm:$0xff] }
 0x12f   : > { %v716_v34 = vld [vmem:[#allocation5 + $0x1b0] sm:$0xff] }
 0x134   : > { %2416 = vmatmul.mubr.bf16.gmra.mrb[48].mxu0 %v6501_v28  ;;  %v380_v28 = vld [vmem:[%s8027_s29 + $0x330] sm:$0xff] }
 0x135   : > { %2425 = vmatprep.mubr.bf16.mxu0 %v6510_v29  ;;  %v381_v29 = vld [vmem:[%s8027_s29 + $0x338] sm:$0xff]  ;;  %2113 = vmatmul.mubr.bf16.gmra.mrb[4].mxu1 %v6411_v26  ;;  %v6443_v26 = vcombine.low %v702_v17, %v706_v18  ;;  %v746_v17 = vld [vmem:[#allocation5 + $0x2a0] sm:$0xff] }
 0x136   : > { %v6634_v33 = vcombine.high %v380_v28, %v381_v29  ;;  %v6633_v40 = vcombine.low %v380_v28, %v381_v29  ;;  %2122 = vmatprep.mubr.bf16.mxu1 %v6420_v41  ;;  %v396_v28 = vld [vmem:[%s8027_s29 + $0x3b0] sm:$0xff]  ;;  %v397_v29 = vld [vmem:[%s8027_s29 + $0x3b8] sm:$0xff] }
 0x13c   : > { %2426 = vmatmul.mubr.bf16.gmra.mrb[52].mxu0 %v6509_v42  ;;  %v6419_v42 = vcombine.low %v678_v38, %v682_v39  ;;  %v710_v38 = vld [vmem:[#allocation5 + $0x180] sm:$0xff] }
 0x13d   : > { %2435 = vmatprep.mubr.bf16.mxu0 %v6518_v43  ;;  %v688_v43 = vld [vmem:[#allocation5 + $0xd0] sm:$0xff]  ;;  %v714_v39 = vld [vmem:[#allocation5 + $0x1a0] sm:$0xff] }
 0x13e   : > { %v6432_v49 = vcombine.high %v688_v43, %v692_v44  ;;  %2123 = vmatmul.mubr.bf16.gmra.mrb[8].mxu1 %v6419_v42  ;;  %v6431_v0 = vcombine.low %v688_v43, %v692_v44  ;;  %v6452_v41 = vcombine.high %v710_v38, %v714_v39  ;;  %v6451_v42 = vcombine.low %v710_v38, %v714_v39  ;;  %v720_v43 = vld [vmem:[#allocation5 + $0x1d0] sm:$0xff]  ;;  %v762_v38 = vld [vmem:[#allocation5 + $0x320] sm:$0xff] }
 0x13f   : > { %v724_v44 = vld [vmem:[#allocation5 + $0x1f0] sm:$0xff] }
 0x144   : > { %2436 = vmatmul.mubr.bf16.gmra.mrb[56].mxu0 %v6517_v54  ;;  %v686_v54 = vld [vmem:[#allocation5 + $0xc0] sm:$0xff] }
 0x145   : > { %2445 = vmatprep.mubr.bf16.mxu0 %v6526_v55  ;;  %v690_v55 = vld [vmem:[#allocation5 + $0xe0] sm:$0xff] }
 0x146   : > { %v6428_v57 = vcombine.high %v686_v54, %v690_v55  ;;  %v6427_v58 = vcombine.low %v686_v54, %v690_v55  ;;  %v718_v54 = vld [vmem:[#allocation5 + $0x1c0] sm:$0xff] }
 0x147   : > { %v722_v55 = vld [vmem:[#allocation5 + $0x1e0] sm:$0xff] }
 0x148   : > { %2132 = vmatprep.mubr.bf16.mxu1 %v6428_v57  ;;  %v6460_v57 = vcombine.high %v718_v54, %v722_v55 }
 0x149   : > { %2133 = vmatmul.mubr.bf16.gmra.mrb[12].mxu1 %v6427_v58  ;;  %v6459_v58 = vcombine.low %v718_v54, %v722_v55  ;;  %v778_v54 = vld [vmem:[#allocation5 + $0x3a0] sm:$0xff] }
 0x14a   : > { %2142 = vmatprep.mubr.bf16.mxu1 %v6436_v9  ;;  %v736_v9 = vld [vmem:[#allocation5 + $0x250] sm:$0xff] }
 0x14c   : > { %2446 = vmatmul.mubr.bf16.gmra.mrb[60].mxu0 %v6525_v2  ;;  %v6639_v2 = vcombine.low %v386_v52, %v387_v53  ;;  %v402_v52 = vld [vmem:[%s8027_s29 + $0x3e0] sm:$0xff]  ;;  %v403_v53 = vld [vmem:[%s8027_s29 + $0x3e8] sm:$0xff] }
 0x14d   : > { %2488 = vmatprep.mubr.bf16.mxu0 %v6408_v3  ;;  %v6642_v3 = vcombine.high %v388_v62, %v389_v63  ;;  %v404_v62 = vld [vmem:[%s8027_s29 + $0x3f0] sm:$0xff]  ;;  %v405_v63 = vld [vmem:[%s8027_s29 + $0x3f8] sm:$0xff] }
 0x14e   : > { %v6657_v6 = vcombine.low %v404_v62, %v405_v63 }
 0x151   : > { %2143 = vmatmul.mubr.bf16.gmra.mrb[16].mxu1 %v6435_v10  ;;  %v740_v10 = vld [vmem:[#allocation5 + $0x270] sm:$0xff] }
 0x152   : > { %2152 = vmatprep.mubr.bf16.mxu1 %v6444_v25  ;;  %v752_v25 = vld [vmem:[#allocation5 + $0x2d0] sm:$0xff] }
 0x154   : > { %2489 = vmatmul.mubr.bf16.vlgmr.msra.gmra.mrb[0].mxu0 %v6407_v16  ;;  %v6439_v16 = vcombine.low %v696_v59, %v700_v60  ;;  %v728_v59 = vld [vmem:[#allocation5 + $0x210] sm:$0xff] }
 0x155   : > { %2650 = vmatpush1.bf16.msra.mxu0 %v6627_v19  ;;  %2498 = vmatprep.mubr.bf16.mxu0 %v6416_v20  ;;  %v6448_v19 = vcombine.high %v704_v11, %v708_v12  ;;  %v6643_v20 = vcombine.low %v390_v4, %v391_v5  ;;  %v732_v60 = vld [vmem:[#allocation5 + $0x230] sm:$0xff]  ;;  %v726_v4 = vld [vmem:[#allocation5 + $0x200] sm:$0xff] }
 0x156   : > { %2651 = vmatprep.subr.bf16.mxu0 %v6630_v21  ;;  %v6646_v21 = vcombine.high %v392_v14, %v393_v15  ;;  %v730_v5 = vld [vmem:[#allocation5 + $0x220] sm:$0xff] }
 0x157   : > { %v6468_v7 = vcombine.high %v726_v4, %v730_v5 }
 0x159   : > { %2652 = vmatpush1.bf16.msra.mxu0 %v6629_v24  ;;  %v6645_v24 = vcombine.low %v392_v14, %v393_v15  ;;  %2153 = vmatmul.mubr.bf16.gmra.mrb[20].mxu1 %v6443_v26  ;;  %v738_v14 = vld [vmem:[#allocation5 + $0x260] sm:$0xff]  ;;  %v756_v26 = vld [vmem:[#allocation5 + $0x2f0] sm:$0xff] }
 0x15a   : > { %2653 = vmatprep.subr.bf16.mxu0 %v6632_v35  ;;  %v6648_v35 = vcombine.high %v394_v22, %v395_v23  ;;  %2162 = vmatprep.mubr.bf16.mxu1 %v6452_v41  ;;  %v768_v41 = vld [vmem:[#allocation5 + $0x350] sm:$0xff] }
 0x15c   : > { %2499 = vmatmul.mubr.bf16.gmra.mrb[4].mxu0 %v6415_v30  ;;  %v6447_v30 = vcombine.low %v704_v11, %v708_v12  ;;  %v6471_v11 = vcombine.low %v728_v59, %v732_v60  ;;  %v6480_v12 = vcombine.high %v736_v9, %v740_v10 }
 0x15d   : > { %2508 = vmatprep.mubr.bf16.mxu0 %v6424_v31  ;;  %2654 = vmatpush1.bf16.msra.mxu0 %v6631_v32  ;;  %v6456_v31 = vcombine.high %v712_v27, %v716_v34  ;;  %v6647_v32 = vcombine.low %v394_v22, %v395_v23  ;;  %v742_v23 = vld [vmem:[#allocation5 + $0x280] sm:$0xff] }
 0x15e   : > { %2655 = vmatprep.subr.bf16.mxu0 %v6634_v33  ;;  %v6650_v33 = vcombine.high %v396_v28, %v397_v29  ;;  %v6484_v18 = vcombine.high %v742_v23, %v746_v17 }
 0x161   : > { %2656 = vmatpush1.bf16.msra.mxu0 %v6633_v40  ;;  %v6649_v40 = vcombine.low %v396_v28, %v397_v29  ;;  %2163 = vmatmul.mubr.bf16.gmra.mrb[24].mxu1 %v6451_v42  ;;  %v754_v28 = vld [vmem:[#allocation5 + $0x2e0] sm:$0xff]  ;;  %v772_v42 = vld [vmem:[#allocation5 + $0x370] sm:$0xff] }
 0x162   : > { %2657 = vmatprep.subr.bf16.mxu0 %v6636_v45  ;;  %v6652_v45 = vcombine.high %v398_v36, %v399_v37  ;;  %2172 = vmatprep.mubr.bf16.mxu1 %v6460_v57  ;;  %v784_v57 = vld [vmem:[#allocation5 + $0x3d0] sm:$0xff] }
 0x164   : > { %2509 = vmatmul.mubr.bf16.gmra.mrb[8].mxu0 %v6423_v48  ;;  %v6455_v48 = vcombine.low %v712_v27, %v716_v34  ;;  %v6496_v34 = vcombine.high %v752_v25, %v756_v26 }
 0x165   : > { %2518 = vmatprep.mubr.bf16.mxu0 %v6432_v49  ;;  %2658 = vmatpush1.bf16.msra.mxu0 %v6635_v50  ;;  %v6464_v49 = vcombine.high %v720_v43, %v724_v44  ;;  %v6651_v50 = vcombine.low %v398_v36, %v399_v37  ;;  %v758_v37 = vld [vmem:[#allocation5 + $0x300] sm:$0xff] }
 0x166   : > { %2659 = vmatprep.subr.bf16.mxu0 %v6638_v51  ;;  %v6654_v51 = vcombine.high %v400_v46, %v401_v47  ;;  %v6500_v39 = vcombine.high %v758_v37, %v762_v38 }
 0x169   : > { %2660 = vmatpush1.bf16.msra.mxu0 %v6637_v56  ;;  %v6653_v56 = vcombine.low %v400_v46, %v401_v47  ;;  %2173 = vmatmul.mubr.bf16.gmra.mrb[28].mxu1 %v6459_v58  ;;  %v770_v46 = vld [vmem:[#allocation5 + $0x360] sm:$0xff]  ;;  %v788_v58 = vld [vmem:[#allocation5 + $0x3f0] sm:$0xff] }
 0x16a   : > { %2661 = vmatprep.subr.bf16.mxu0 %v6640_v61  ;;  %v6656_v61 = vcombine.high %v402_v52, %v403_v53  ;;  %2182 = vmatprep.mubr.bf16.mxu1 %v6468_v7 }
 0x16c   : > { %2519 = vmatmul.mubr.bf16.gmra.mrb[12].mxu0 %v6431_v0  ;;  %v6463_v0 = vcombine.low %v720_v43, %v724_v44  ;;  %v6512_v44 = vcombine.high %v768_v41, %v772_v42 }
 0x16d   : > { %2528 = vmatprep.mubr.bf16.mxu0 %v6440_v1  ;;  %2662 = vmatpush1.bf16.msra.mxu0 %v6639_v2  ;;  %v6472_v1 = vcombine.high %v728_v59, %v732_v60  ;;  %v6655_v2 = vcombine.low %v402_v52, %v403_v53  ;;  %v774_v53 = vld [vmem:[#allocation5 + $0x380] sm:$0xff]  ;;  %v6528_v60 = vcombine.high %v784_v57, %v788_v58 }
 0x16e   : > { %2663 = vmatprep.subr.bf16.mxu0 %v6642_v3  ;;  %v6658_v3 = vcombine.high %v404_v62, %v405_v63  ;;  %v6516_v55 = vcombine.high %v774_v53, %v778_v54  ;;  %v786_v62 = vld [vmem:[#allocation5 + $0x3e0] sm:$0xff] }
 0x171   : > { %2664 = vmatpush1.bf16.msra.mxu0 %v6641_v8  ;;  %v6467_v8 = vcombine.low %v726_v4, %v730_v5  ;;  %v673_v5 = vld [vmem:[#allocation5 + $0x58] sm:$0xff] }
 0x172   : > { %2665 = vmatprep.subr.bf16.mxu0 %v6644_v13  ;;  %v734_v13 = vld [vmem:[#allocation5 + $0x240] sm:$0xff] }
 0x173   : > { %2183 = vmatmul.mubr.bf16.gmra.mrb[32].mxu1 %v6467_v8  ;;  %v6476_v15 = vcombine.high %v734_v13, %v738_v14 }
 0x174   : > { %2529 = vmatmul.mubr.bf16.gmra.mrb[16].mxu0 %v6439_v16  ;;  %v6475_v16 = vcombine.low %v734_v13, %v738_v14  ;;  %v689_v13 = vld [vmem:[#allocation5 + $0xd8] sm:$0xff] }
 0x175   : > { %2538 = vmatprep.mubr.bf16.mxu0 %v6448_v19  ;;  %2666 = vmatpush1.bf16.msra.mxu0 %v6643_v20  ;;  %v744_v19 = vld [vmem:[#allocation5 + $0x290] sm:$0xff]  ;;  %v693_v14 = vld [vmem:[#allocation5 + $0xf8] sm:$0xff] }
 0x176   : > { %2667 = vmatprep.subr.bf16.mxu0 %v6646_v21  ;;  %v748_v20 = vld [vmem:[#allocation5 + $0x2b0] sm:$0xff]  ;;  %2192 = vmatprep.mubr.bf16.mxu1 %v6476_v15  ;;  %v6479_v21 = vcombine.low %v736_v9, %v740_v10  ;;  %v681_v9 = vld [vmem:[#allocation5 + $0x98] sm:$0xff] }
 0x177   : > { %v6488_v22 = vcombine.high %v744_v19, %v748_v20  ;;  %v6487_v27 = vcombine.low %v744_v19, %v748_v20  ;;  %v685_v10 = vld [vmem:[#allocation5 + $0xb8] sm:$0xff] }
 0x178   : > { %v6425_v15 = vcombine.low %v681_v9, %v685_v10  ;;  %v697_v19 = vld [vmem:[#allocation5 + $0x118] sm:$0xff] }
 0x179   : > { %2668 = vmatpush1.bf16.msra.mxu0 %v6645_v24  ;;  %v6483_v24 = vcombine.low %v742_v23, %v746_v17  ;;  %v701_v20 = vld [vmem:[#allocation5 + $0x138] sm:$0xff] }
 0x17a   : > { %2669 = vmatprep.subr.bf16.mxu0 %v6648_v35  ;;  %v750_v35 = vld [vmem:[#allocation5 + $0x2c0] sm:$0xff]  ;;  %v705_v23 = vld [vmem:[#allocation5 + $0x158] sm:$0xff] }
 0x17b   : > { %2193 = vmatmul.mubr.bf16.gmra.mrb[36].mxu1 %v6475_v16  ;;  %v6492_v29 = vcombine.high %v750_v35, %v754_v28  ;;  %v6434_v16 = vcombine.high %v689_v13, %v693_v14  ;;  %v709_v17 = vld [vmem:[#allocation5 + $0x178] sm:$0xff] }
 0x17c   : > { %2539 = vmatmul.mubr.bf16.gmra.mrb[20].mxu0 %v6447_v30  ;;  %2202 = vmatprep.mubr.bf16.mxu1 %v6484_v18  ;;  %v6491_v30 = vcombine.low %v750_v35, %v754_v28  ;;  %v6441_v18 = vcombine.low %v697_v19, %v701_v20  ;;  %v721_v35 = vld [vmem:[#allocation5 + $0x1d8] sm:$0xff] }
 0x17d   : > { %2548 = vmatprep.mubr.bf16.mxu0 %v6456_v31  ;;  %2670 = vmatpush1.bf16.msra.mxu0 %v6647_v32  ;;  %v760_v31 = vld [vmem:[#allocation5 + $0x310] sm:$0xff]  ;;  %v725_v28 = vld [vmem:[#allocation5 + $0x1f8] sm:$0xff] }
 0x17e   : > { %2671 = vmatprep.subr.bf16.mxu0 %v6650_v33  ;;  %v764_v32 = vld [vmem:[#allocation5 + $0x330] sm:$0xff]  ;;  %v6495_v33 = vcombine.low %v752_v25, %v756_v26  ;;  %v713_v25 = vld [vmem:[#allocation5 + $0x198] sm:$0xff] }
 0x17f   : > { %v6504_v36 = vcombine.high %v760_v31, %v764_v32  ;;  %v6503_v43 = vcombine.low %v760_v31, %v764_v32  ;;  %v717_v26 = vld [vmem:[#allocation5 + $0x1b8] sm:$0xff] }
 0x180   : > { %v729_v31 = vld [vmem:[#allocation5 + $0x218] sm:$0xff] }
 0x181   : > { %2672 = vmatpush1.bf16.msra.mxu0 %v6649_v40  ;;  %v6499_v40 = vcombine.low %v758_v37, %v762_v38  ;;  %v733_v32 = vld [vmem:[#allocation5 + $0x238] sm:$0xff] }
 0x182   : > { %2673 = vmatprep.subr.bf16.mxu0 %v6652_v45  ;;  %v766_v45 = vld [vmem:[#allocation5 + $0x340] sm:$0xff]  ;;  %v737_v37 = vld [vmem:[#allocation5 + $0x258] sm:$0xff] }
 0x183   : > { %2203 = vmatmul.mubr.bf16.gmra.mrb[40].mxu1 %v6483_v24  ;;  %v6508_v47 = vcombine.high %v766_v45, %v770_v46  ;;  %v6450_v24 = vcombine.high %v705_v23, %v709_v17  ;;  %v741_v38 = vld [vmem:[#allocation5 + $0x278] sm:$0xff] }
 0x184   : > { %2549 = vmatmul.mubr.bf16.gmra.mrb[24].mxu0 %v6455_v48  ;;  %2212 = vmatprep.mubr.bf16.mxu1 %v6492_v29  ;;  %v6507_v48 = vcombine.low %v766_v45, %v770_v46  ;;  %v6457_v29 = vcombine.low %v713_v25, %v717_v26  ;;  %v753_v45 = vld [vmem:[#allocation5 + $0x2d8] sm:$0xff] }
 0x185   : > { %2558 = vmatprep.mubr.bf16.mxu0 %v6464_v49  ;;  %2674 = vmatpush1.bf16.msra.mxu0 %v6651_v50  ;;  %v776_v49 = vld [vmem:[#allocation5 + $0x390] sm:$0xff]  ;;  %v757_v46 = vld [vmem:[#allocation5 + $0x2f8] sm:$0xff] }
 0x186   : > { %2675 = vmatprep.subr.bf16.mxu0 %v6654_v51  ;;  %v780_v50 = vld [vmem:[#allocation5 + $0x3b0] sm:$0xff]  ;;  %v6511_v51 = vcombine.low %v768_v41, %v772_v42  ;;  %v745_v41 = vld [vmem:[#allocation5 + $0x298] sm:$0xff] }
 0x187   : > { %v6520_v52 = vcombine.high %v776_v49, %v780_v50  ;;  %v6519_v59 = vcombine.low %v776_v49, %v780_v50  ;;  %v749_v42 = vld [vmem:[#allocation5 + $0x2b8] sm:$0xff] }
 0x189   : > { %2676 = vmatpush1.bf16.msra.mxu0 %v6653_v56  ;;  %v6515_v56 = vcombine.low %v774_v53, %v778_v54 }
 0x18a   : > { %2677 = vmatprep.subr.bf16.mxu0 %v6656_v61  ;;  %v782_v61 = vld [vmem:[#allocation5 + $0x3c0] sm:$0xff] }
 0x18b   : > { %2213 = vmatmul.mubr.bf16.gmra.mrb[44].mxu1 %v6491_v30  ;;  %v6524_v63 = vcombine.high %v782_v61, %v786_v62  ;;  %v6466_v30 = vcombine.high %v721_v35, %v725_v28 }
 0x18c   : > { %2559 = vmatmul.mubr.bf16.gmra.mrb[28].mxu0 %v6463_v0  ;;  %2222 = vmatprep.mubr.bf16.mxu1 %v6500_v39  ;;  %v6523_v0 = vcombine.low %v782_v61, %v786_v62  ;;  %v6473_v39 = vcombine.low %v729_v31, %v733_v32 }
 0x18d   : > { %2568 = vmatprep.mubr.bf16.mxu0 %v6472_v1  ;;  %2678 = vmatpush1.bf16.msra.mxu0 %v6655_v2  ;;  %v665_v1 = vld [vmem:[#allocation5 + $0x18] sm:$0xff] }
 0x18e   : > { %2679 = vmatprep.subr.bf16.mxu0 %v6658_v3  ;;  %v669_v2 = vld [vmem:[#allocation5 + $0x38] sm:$0xff]  ;;  %v6527_v3 = vcombine.low %v784_v57, %v788_v58 }
 0x18f   : > { %v6410_v4 = vcombine.high %v665_v1, %v669_v2  ;;  %v6409_v7 = vcombine.low %v665_v1, %v669_v2 }
 0x191   : > { %2680 = vmatpush1.bf16.msra.mxu0 %v6657_v6  ;;  %v677_v6 = vld [vmem:[#allocation5 + $0x78] sm:$0xff] }
 0x192   : > { %v6418_v8 = vcombine.high %v673_v5, %v677_v6 }
 0x193   : > { %2223 = vmatmul.mubr.bf16.gmra.mrb[48].mxu1 %v6499_v40  ;;  %v6482_v40 = vcombine.high %v737_v37, %v741_v38 }
 0x194   : > { %2569 = vmatmul.mubr.bf16.gmra.mrb[32].mxu0 %v6471_v11  ;;  %2232 = vmatprep.mubr.bf16.mxu1 %v6508_v47  ;;  %v6417_v11 = vcombine.low %v673_v5, %v677_v6  ;;  %v6489_v47 = vcombine.low %v745_v41, %v749_v42 }
 0x195   : > { %2578 = vmatprep.mubr.bf16.mxu0 %v6480_v12  ;;  %v6426_v12 = vcombine.high %v681_v9, %v685_v10 }
 0x19b   : > { %2233 = vmatmul.mubr.bf16.gmra.mrb[52].mxu1 %v6507_v48  ;;  %v6498_v48 = vcombine.high %v753_v45, %v757_v46 }
 0x19c   : > { %2579 = vmatmul.mubr.bf16.gmra.mrb[36].mxu0 %v6479_v21  ;;  %2242 = vmatprep.mubr.bf16.mxu1 %v6516_v55  ;;  %v6433_v21 = vcombine.low %v689_v13, %v693_v14  ;;  %v6497_v55 = vcombine.low %v753_v45, %v757_v46 }
 0x19d   : > { %2588 = vmatprep.mubr.bf16.mxu0 %v6488_v22  ;;  %v6442_v22 = vcombine.high %v697_v19, %v701_v20 }
 0x1a3   : > { %2243 = vmatmul.mubr.bf16.gmra.mrb[56].mxu1 %v6515_v56 }
 0x1a4   : > { %2589 = vmatmul.mubr.bf16.gmra.mrb[40].mxu0 %v6487_v27  ;;  %2252 = vmatprep.mubr.bf16.mxu1 %v6524_v63  ;;  %v6449_v27 = vcombine.low %v705_v23, %v709_v17 }
 0x1a5   : > { %2598 = vmatprep.mubr.bf16.mxu0 %v6496_v34  ;;  %v6458_v34 = vcombine.high %v713_v25, %v717_v26 }
 0x1ab   : > { %2253 = vmatmul.mubr.bf16.gmra.mrb[60].mxu1 %v6523_v0 }
 0x1ac   : > { %2599 = vmatmul.mubr.bf16.gmra.mrb[44].mxu0 %v6495_v33  ;;  %v6465_v33 = vcombine.low %v721_v35, %v725_v28 }
 0x1ad   : > { %2608 = vmatprep.mubr.bf16.mxu0 %v6504_v36  ;;  %v6474_v36 = vcombine.high %v729_v31, %v733_v32 }
 0x1b4   : > { %2609 = vmatmul.mubr.bf16.gmra.mrb[48].mxu0 %v6503_v43  ;;  %v6481_v43 = vcombine.low %v737_v37, %v741_v38 }
 0x1b5   : > { %2618 = vmatprep.mubr.bf16.mxu0 %v6512_v44  ;;  %v6490_v44 = vcombine.high %v745_v41, %v749_v42 }
 0x1bc   : > { %2619 = vmatmul.mubr.bf16.gmra.mrb[52].mxu0 %v6511_v51  ;;  %v761_v51 = vld [vmem:[#allocation5 + $0x318] sm:$0xff] }
 0x1bd   : > { %2628 = vmatprep.mubr.bf16.mxu0 %v6520_v52  ;;  %v765_v52 = vld [vmem:[#allocation5 + $0x338] sm:$0xff] }
 0x1be   : > { %v6506_v56 = vcombine.high %v761_v51, %v765_v52  ;;  %v6505_v63 = vcombine.low %v761_v51, %v765_v52 }
 0x1c4   : > { %2629 = vmatmul.mubr.bf16.gmra.mrb[56].mxu0 %v6519_v59  ;;  %v769_v59 = vld [vmem:[#allocation5 + $0x358] sm:$0xff] }
 0x1c5   : > { %2638 = vmatprep.mubr.bf16.mxu0 %v6528_v60  ;;  %v773_v60 = vld [vmem:[#allocation5 + $0x378] sm:$0xff] }
 0x1c6   : > { %v6514_v0 = vcombine.high %v769_v59, %v773_v60 }
 0x1cc   : > { %2639 = vmatmul.mubr.bf16.gmra.mrb[60].mxu0 %v6527_v3  ;;  %v777_v3 = vld [vmem:[#allocation5 + $0x398] sm:$0xff] }
 0x1cd   : > { %2681 = vmatprep.mubr.bf16.mxu0 %v6410_v4  ;;  %v781_v4 = vld [vmem:[#allocation5 + $0x3b8] sm:$0xff] }
 0x1d4   : > { %2682 = vmatmul.mubr.bf16.vlgmr.msra.gmra.mrb[0].mxu0 %v6409_v7  ;;  %v6513_v7 = vcombine.low %v769_v59, %v773_v60 }
 0x1d5   : > { %2691 = vmatprep.mubr.bf16.mxu0 %v6418_v8  ;;  %v6522_v8 = vcombine.high %v777_v3, %v781_v4 }
 0x1dc   : > { %2692 = vmatmul.mubr.bf16.gmra.mrb[4].mxu0 %v6417_v11  ;;  %v785_v11 = vld [vmem:[#allocation5 + $0x3d8] sm:$0xff] }
 0x1dd   : > { %2701 = vmatprep.mubr.bf16.mxu0 %v6426_v12  ;;  %v789_v12 = vld [vmem:[#allocation5 + $0x3f8] sm:$0xff] }
 0x1de   : > { %v6529_v23 = vcombine.low %v785_v11, %v789_v12 }
 0x1e4   : > { %2702 = vmatmul.mubr.bf16.gmra.mrb[8].mxu0 %v6425_v15  ;;  %v6521_v15 = vcombine.low %v777_v3, %v781_v4 }
 0x1e5   : > { %2711 = vmatprep.mubr.bf16.mxu0 %v6434_v16  ;;  %v6530_v16 = vcombine.high %v785_v11, %v789_v12 }
 0x1ec   : > { %2712 = vmatmul.mubr.bf16.gmra.mrb[12].mxu0 %v6433_v21 }
 0x1ed   : > { %2721 = vmatprep.mubr.bf16.mxu0 %v6442_v22 }
 0x1f4   : > { %2722 = vmatmul.mubr.bf16.gmra.mrb[16].mxu0 %v6441_v18 }
 0x1f5   : > { %2731 = vmatprep.mubr.bf16.mxu0 %v6450_v24 }
 0x1fc   : > { %2732 = vmatmul.mubr.bf16.gmra.mrb[20].mxu0 %v6449_v27 }
 0x1fd   : > { %2741 = vmatprep.mubr.bf16.mxu0 %v6458_v34 }
 0x200   : > { %v8185_v49 = vpop.f32.mrb[0].mxu1 }
 0x201   : > { %v8187_v50 = vpop.f32.mrb[1].mxu1 }
 0x202   : > { %v8189_v53 = vpop.f32.mrb[2].mxu1 }
 0x203   : > { %v8191_v54 = vpop.f32.mrb[3].mxu1 }
 0x204   : > { %2742 = vmatmul.mubr.bf16.gmra.mrb[24].mxu0 %v6457_v29 }
 0x205   : > { %2751 = vmatprep.mubr.bf16.mxu0 %v6466_v30 }
 0x208   : > { %v8193_v57 = vpop.f32.mrb[4].mxu1 }
 0x209   : > { %v8195_v58 = vpop.f32.mrb[5].mxu1 }
 0x20a   : > { %v8197_v61 = vpop.f32.mrb[6].mxu1 }
 0x20b   : > { %v8199_v62 = vpop.f32.mrb[7].mxu1 }
 0x20c   : > { %2752 = vmatmul.mubr.bf16.gmra.mrb[28].mxu0 %v6465_v33 }
 0x20d   : > { %2761 = vmatprep.mubr.bf16.mxu0 %v6474_v36 }
 0x211   : > { %v8201_v1 = vpop.f32.mrb[8].mxu1 }
 0x212   : > { %v8203_v2 = vpop.f32.mrb[9].mxu1 }
 0x213   : > { %v8205_v5 = vpop.f32.mrb[10].mxu1 }
 0x214   : > { %2762 = vmatmul.mubr.bf16.gmra.mrb[32].mxu0 %v6473_v39  ;;  %v8207_v6 = vpop.f32.mrb[11].mxu1 }
 0x215   : > { %2771 = vmatprep.mubr.bf16.mxu0 %v6482_v40 }
 0x21c   : > { %2772 = vmatmul.mubr.bf16.gmra.mrb[36].mxu0 %v6481_v43  ;;  %v8209_v9 = vpop.f32.mrb[12].mxu1 }
 0x21d   : > { %2781 = vmatprep.mubr.bf16.mxu0 %v6490_v44  ;;  %v8211_v10 = vpop.f32.mrb[13].mxu1 }
 0x21e   : > { %v8213_v13 = vpop.f32.mrb[14].mxu1 }
 0x21f   : > { %v8215_v14 = vpop.f32.mrb[15].mxu1 }
 0x224   : > { %2782 = vmatmul.mubr.bf16.gmra.mrb[40].mxu0 %v6489_v47  ;;  %v8217_v19 = vpop.f32.mrb[16].mxu1 }
 0x225   : > { %2791 = vmatprep.mubr.bf16.mxu0 %v6498_v48  ;;  %v8219_v20 = vpop.f32.mrb[17].mxu1 }
 0x226   : > { %v8221_v21 = vpop.f32.mrb[18].mxu1 }
 0x227   : > { %v8223_v22 = vpop.f32.mrb[19].mxu1 }
 0x22c   : > { %2792 = vmatmul.mubr.bf16.gmra.mrb[44].mxu0 %v6497_v55  ;;  %v8225_v17 = vpop.f32.mrb[20].mxu1 }
 0x22d   : > { %2801 = vmatprep.mubr.bf16.mxu0 %v6506_v56  ;;  %v8227_v18 = vpop.f32.mrb[21].mxu1 }
 0x22e   : > { %v8229_v24 = vpop.f32.mrb[22].mxu1 }
 0x22f   : > { %v8231_v25 = vpop.f32.mrb[23].mxu1 }
 0x234   : > { %2802 = vmatmul.mubr.bf16.gmra.mrb[48].mxu0 %v6505_v63  ;;  %v8233_v26 = vpop.f32.mrb[24].mxu1 }
 0x235   : > { %2811 = vmatprep.mubr.bf16.mxu0 %v6514_v0  ;;  %v8235_v27 = vpop.f32.mrb[25].mxu1 }
 0x236   : > { %v8237_v34 = vpop.f32.mrb[26].mxu1 }
 0x237   : > { %v8239_v35 = vpop.f32.mrb[27].mxu1 }
 0x23c   : > { %2812 = vmatmul.mubr.bf16.gmra.mrb[52].mxu0 %v6513_v7  ;;  %v8241_v28 = vpop.f32.mrb[28].mxu1 }
 0x23d   : > { %2821 = vmatprep.mubr.bf16.mxu0 %v6522_v8  ;;  %v8243_v29 = vpop.f32.mrb[29].mxu1 }
 0x23e   : > { %v8245_v30 = vpop.f32.mrb[30].mxu1 }
 0x23f   : > { %v8247_v31 = vpop.f32.mrb[31].mxu1 }
 0x244   : > { %2822 = vmatmul.mubr.bf16.gmra.mrb[56].mxu0 %v6521_v15 }
 0x245   : > { %2831 = vmatprep.mubr.bf16.mxu0 %v6530_v16 }
 0x246   : > { %v8249_v32 = vpop.f32.mrb[32].mxu1 }
 0x247   : > { %v8251_v33 = vpop.f32.mrb[33].mxu1 }
 0x248   : > { %v8253_v36 = vpop.f32.mrb[34].mxu1 }
 0x249   : > { %v8255_v37 = vpop.f32.mrb[35].mxu1 }
 0x24c   : > { %2832 = vmatmul.mubr.bf16.gmra.mrb[60].mxu0 %v6529_v23 }
 0x24e   : > { %v8257_v38 = vpop.f32.mrb[36].mxu1 }
 0x24f   : > { %v8259_v39 = vpop.f32.mrb[37].mxu1 }
 0x250   : > { %v8261_v40 = vpop.f32.mrb[38].mxu1 }
 0x251   : > { %v8263_v41 = vpop.f32.mrb[39].mxu1 }
 0x256   : > { %v8265_v42 = vpop.f32.mrb[40].mxu1 }
 0x257   : > { %v8267_v43 = vpop.f32.mrb[41].mxu1 }
 0x258   : > { %v8269_v44 = vpop.f32.mrb[42].mxu1 }
 0x259   : > { %v8271_v45 = vpop.f32.mrb[43].mxu1 }
 0x25e   : > { %v8273_v46 = vpop.f32.mrb[44].mxu1 }
 0x25f   : > { %v8275_v47 = vpop.f32.mrb[45].mxu1 }
 0x260   : > { %v8277_v48 = vpop.f32.mrb[46].mxu1 }
 0x261   : > { %v8279_v51 = vpop.f32.mrb[47].mxu1 }
 0x266   : > { %v8281_v52 = vpop.f32.mrb[48].mxu1 }
 0x267   : > { %8584 = vst [vmem:[#allocation15_spill] sm:$0xff] %v8281_v52  ;;  %v8283_v55 = vpop.f32.mrb[49].mxu1 }
 0x268   : > { %8585 = vst [vmem:[#allocation16_spill] sm:$0xff] %v8283_v55  ;;  %v8285_v56 = vpop.f32.mrb[50].mxu1 }
 0x269   : > { %8586 = vst [vmem:[#allocation17_spill] sm:$0xff] %v8285_v56  ;;  %v8287_v59 = vpop.f32.mrb[51].mxu1 }
 0x26a   : > { %8587 = vst [vmem:[#allocation18_spill] sm:$0xff] %v8287_v59  ;;  %v7233_v59 = vld [vmem:[#allocation7 + $0x4] ss:$8 sps:$4 sm:$0xff]  }
 0x26b   : > { %3738 = vmatprep.mubr.bf16.mxu1 %v7233_v59 }
 0x26e   : > { %v8289_v60 = vpop.f32.mrb[52].mxu1 }
 0x26f   : > { %8588 = vst [vmem:[#allocation19_spill] sm:$0xff] %v8289_v60  ;;  %v8291_v63 = vpop.f32.mrb[53].mxu1 }
 0x270   : > { %8589 = vst [vmem:[#allocation20_spill] sm:$0xff] %v8291_v63  ;;  %v8293_v0 = vpop.f32.mrb[54].mxu1 }
 0x271   : > { %8590 = vst [vmem:[#allocation21_spill] sm:$0xff] %v8293_v0  ;;  %v8295_v3 = vpop.f32.mrb[55].mxu1 }
 0x272   : > { %8591 = vst [vmem:[#allocation22_spill] sm:$0xff] %v8295_v3 }
 0x276   : > { %v8297_v4 = vpop.f32.mrb[56].mxu1 }
 0x277   : > { %8592 = vst [vmem:[#allocation23_spill] sm:$0xff] %v8297_v4  ;;  %v8299_v7 = vpop.f32.mrb[57].mxu1 }
 0x278   : > { %8593 = vst [vmem:[#allocation24_spill] sm:$0xff] %v8299_v7  ;;  %v8301_v8 = vpop.f32.mrb[58].mxu1 }
 0x279   : > { %8594 = vst [vmem:[#allocation25_spill] sm:$0xff] %v8301_v8  ;;  %v8303_v11 = vpop.f32.mrb[59].mxu1 }
 0x27a   : > { %8595 = vst [vmem:[#allocation26_spill] sm:$0xff] %v8303_v11 }
 0x27e   : > { %v8305_v12 = vpop.f32.mrb[60].mxu1 }
 0x27f   : > { %8596 = vst [vmem:[#allocation27_spill] sm:$0xff] %v8305_v12  ;;  %v8307_v15 = vpop.f32.mrb[61].mxu1 }
 0x280   : > { %8597 = vst [vmem:[#allocation28_spill] sm:$0xff] %v8307_v15  ;;  %v8309_v16 = vpop.f32.mrb[62].mxu1 }
 0x281   : > { %8598 = vst [vmem:[#allocation29_spill] sm:$0xff] %v8309_v16  ;;  %v8311_v23 = vpop.f32.mrb[63].mxu1 }
 0x282   : > { %8599 = vst [vmem:[#allocation30_spill] sm:$0xff] %v8311_v23 }
 0x2a7   : > { %v2683_v63 = vpop.f32.mrb[0].mxu0 }
 0x2a8   : > { %v6802_v0 = vadd.f32 %v2683_v63, %v8185_v49  ;;  %v2685_v3 = vpop.f32.mrb[1].mxu0 }
 0x2a9   : > { %v6803_v4 = vadd.f32 %v2685_v3, %v8187_v50  ;;  %v2687_v60 = vpop.f32.mrb[2].mxu0 }
 0x2aa   : > { %v6804_v7 = vadd.f32 %v2687_v60, %v8189_v53  ;;  %v2689_v8 = vpop.f32.mrb[3].mxu0  ;;  %v2842_v12 = vmax.f32 %v6802_v0, 0.0 }
 0x2ab   : > { %v6805_v11 = vadd.f32 %v2689_v8, %v8191_v54  ;;  %v2843_v15 = vmax.f32 %v6803_v4, 0.0 }
 0x2ac   : > { %v2844_v56 = vmax.f32 %v6804_v7, 0.0 }
 0x2ad   : > { %v2845_v16 = vmax.f32 %v6805_v11, 0.0 }
 0x2ae   : > { %v2906_v55 = vpack.c.bf16 %v2844_v56, %v2842_v12 }
 0x2af   : > { %v2907_v23 = vpack.c.bf16 %v2845_v16, %v2843_v15  ;;  %v2693_v52 = vpop.f32.mrb[4].mxu0 }
 0x2b0   : > { %v6806_v49 = vadd.f32 %v2693_v52, %v8193_v57  ;;  %v2695_v63 = vpop.f32.mrb[5].mxu0 }
 0x2b1   : > { %v6807_v50 = vadd.f32 %v2695_v63, %v8195_v58  ;;  %v2697_v3 = vpop.f32.mrb[6].mxu0  ;;  %3706 = vmatprep.subr.bf16.mxu1 %v2907_v23 }
 0x2b2   : > { %v6808_v53 = vadd.f32 %v2697_v3, %v8197_v61  ;;  %v2699_v60 = vpop.f32.mrb[7].mxu0  ;;  %3707 = vmatpush1.bf16.msra.mxu1 %v2906_v55  ;;  %v2846_v0 = vmax.f32 %v6806_v49, 0.0 }
 0x2b3   : > { %v6809_v54 = vadd.f32 %v2699_v60, %v8199_v62  ;;  %v2847_v4 = vmax.f32 %v6807_v50, 0.0 }
 0x2b4   : > { %v2848_v59 = vmax.f32 %v6808_v53, 0.0 }
 0x2b5   : > { %v2849_v7 = vmax.f32 %v6809_v54, 0.0 }
 0x2b6   : > { %v2908_v56 = vpack.c.bf16 %v2848_v59, %v2846_v0 }
 0x2b7   : > { %v2909_v8 = vpack.c.bf16 %v2849_v7, %v2847_v4  ;;  %v2703_v11 = vpop.f32.mrb[8].mxu0 }
 0x2b8   : > { %v6810_v57 = vadd.f32 %v2703_v11, %v8201_v1  ;;  %v2705_v52 = vpop.f32.mrb[9].mxu0 }
 0x2b9   : > { %v6811_v58 = vadd.f32 %v2705_v52, %v8203_v2  ;;  %v2707_v12 = vpop.f32.mrb[10].mxu0  ;;  %3708 = vmatprep.subr.bf16.mxu1 %v2909_v8 }
 0x2ba   : > { %v6812_v61 = vadd.f32 %v2707_v12, %v8205_v5  ;;  %v2709_v15 = vpop.f32.mrb[11].mxu0  ;;  %3709 = vmatpush1.bf16.msra.mxu1 %v2908_v56  ;;  %v2850_v55 = vmax.f32 %v6810_v57, 0.0 }
 0x2bb   : > { %v6813_v62 = vadd.f32 %v2709_v15, %v8207_v6  ;;  %v2851_v23 = vmax.f32 %v6811_v58, 0.0 }
 0x2bc   : > { %v2852_v16 = vmax.f32 %v6812_v61, 0.0 }
 0x2bd   : > { %v2853_v49 = vmax.f32 %v6813_v62, 0.0 }
 0x2be   : > { %v2910_v63 = vpack.c.bf16 %v2852_v16, %v2850_v55 }
 0x2bf   : > { %v2911_v50 = vpack.c.bf16 %v2853_v49, %v2851_v23  ;;  %v2713_v3 = vpop.f32.mrb[12].mxu0 }
 0x2c0   : > { %v6814_v1 = vadd.f32 %v2713_v3, %v8209_v9  ;;  %v2715_v53 = vpop.f32.mrb[13].mxu0 }
 0x2c1   : > { %v6815_v2 = vadd.f32 %v2715_v53, %v8211_v10  ;;  %v2717_v60 = vpop.f32.mrb[14].mxu0  ;;  %3710 = vmatprep.subr.bf16.mxu1 %v2911_v50 }
 0x2c2   : > { %v6816_v5 = vadd.f32 %v2717_v60, %v8213_v13  ;;  %v2719_v54 = vpop.f32.mrb[15].mxu0  ;;  %3711 = vmatpush1.bf16.msra.mxu1 %v2910_v63  ;;  %v2854_v0 = vmax.f32 %v6814_v1, 0.0 }
 0x2c3   : > { %v6817_v6 = vadd.f32 %v2719_v54, %v8215_v14  ;;  %v2855_v4 = vmax.f32 %v6815_v2, 0.0 }
 0x2c4   : > { %v2856_v59 = vmax.f32 %v6816_v5, 0.0 }
 0x2c5   : > { %v2857_v7 = vmax.f32 %v6817_v6, 0.0 }
 0x2c6   : > { %v2912_v56 = vpack.c.bf16 %v2856_v59, %v2854_v0 }
 0x2c7   : > { %v2913_v8 = vpack.c.bf16 %v2857_v7, %v2855_v4  ;;  %v2723_v11 = vpop.f32.mrb[16].mxu0 }
 0x2c8   : > { %v6818_v9 = vadd.f32 %v2723_v11, %v8217_v19  ;;  %v2725_v57 = vpop.f32.mrb[17].mxu0 }
 0x2c9   : > { %v6819_v10 = vadd.f32 %v2725_v57, %v8219_v20  ;;  %v2727_v52 = vpop.f32.mrb[18].mxu0  ;;  %3712 = vmatprep.subr.bf16.mxu1 %v2913_v8 }
 0x2ca   : > { %v6820_v13 = vadd.f32 %v2727_v52, %v8221_v21  ;;  %v2729_v58 = vpop.f32.mrb[19].mxu0  ;;  %3713 = vmatpush1.bf16.msra.mxu1 %v2912_v56  ;;  %v2858_v12 = vmax.f32 %v6818_v9, 0.0 }
 0x2cb   : > { %v6821_v14 = vadd.f32 %v2729_v58, %v8223_v22  ;;  %v2859_v15 = vmax.f32 %v6819_v10, 0.0 }
 0x2cc   : > { %v2860_v61 = vmax.f32 %v6820_v13, 0.0 }
 0x2cd   : > { %v2861_v62 = vmax.f32 %v6821_v14, 0.0 }
 0x2ce   : > { %v2914_v55 = vpack.c.bf16 %v2860_v61, %v2858_v12 }
 0x2cf   : > { %v2915_v16 = vpack.c.bf16 %v2861_v62, %v2859_v15  ;;  %v2733_v23 = vpop.f32.mrb[20].mxu0 }
 0x2d0   : > { %v6822_v19 = vadd.f32 %v2733_v23, %v8225_v17  ;;  %v2735_v49 = vpop.f32.mrb[21].mxu0 }
 0x2d1   : > { %v6823_v20 = vadd.f32 %v2735_v49, %v8227_v18  ;;  %v2737_v63 = vpop.f32.mrb[22].mxu0  ;;  %3714 = vmatprep.subr.bf16.mxu1 %v2915_v16 }
 0x2d2   : > { %v6824_v21 = vadd.f32 %v2737_v63, %v8229_v24  ;;  %v2739_v50 = vpop.f32.mrb[23].mxu0  ;;  %3715 = vmatpush1.bf16.msra.mxu1 %v2914_v55  ;;  %v2862_v3 = vmax.f32 %v6822_v19, 0.0 }
 0x2d3   : > { %v6825_v22 = vadd.f32 %v2739_v50, %v8231_v25  ;;  %v2863_v53 = vmax.f32 %v6823_v20, 0.0 }
 0x2d4   : > { %v2864_v1 = vmax.f32 %v6824_v21, 0.0 }
 0x2d5   : > { %v2865_v2 = vmax.f32 %v6825_v22, 0.0 }
 0x2d6   : > { %v2916_v60 = vpack.c.bf16 %v2864_v1, %v2862_v3 }
 0x2d7   : > { %v2917_v5 = vpack.c.bf16 %v2865_v2, %v2863_v53  ;;  %v2743_v54 = vpop.f32.mrb[24].mxu0 }
 0x2d8   : > { %v6826_v17 = vadd.f32 %v2743_v54, %v8233_v26  ;;  %v2745_v6 = vpop.f32.mrb[25].mxu0 }
 0x2d9   : > { %v6827_v18 = vadd.f32 %v2745_v6, %v8235_v27  ;;  %v2747_v0 = vpop.f32.mrb[26].mxu0  ;;  %3716 = vmatprep.subr.bf16.mxu1 %v2917_v5 }
 0x2da   : > { %v6828_v24 = vadd.f32 %v2747_v0, %v8237_v34  ;;  %v2749_v59 = vpop.f32.mrb[27].mxu0  ;;  %3717 = vmatpush1.bf16.msra.mxu1 %v2916_v60  ;;  %v2866_v4 = vmax.f32 %v6826_v17, 0.0 }
 0x2db   : > { %v6829_v25 = vadd.f32 %v2749_v59, %v8239_v35  ;;  %v2867_v56 = vmax.f32 %v6827_v18, 0.0 }
 0x2dc   : > { %v2868_v7 = vmax.f32 %v6828_v24, 0.0 }
 0x2dd   : > { %v2869_v8 = vmax.f32 %v6829_v25, 0.0 }
 0x2de   : > { %v2918_v11 = vpack.c.bf16 %v2868_v7, %v2866_v4 }
 0x2df   : > { %v2919_v9 = vpack.c.bf16 %v2869_v8, %v2867_v56  ;;  %v2753_v57 = vpop.f32.mrb[28].mxu0 }
 0x2e0   : > { %v6830_v26 = vadd.f32 %v2753_v57, %v8241_v28  ;;  %v2755_v10 = vpop.f32.mrb[29].mxu0 }
 0x2e1   : > { %v6831_v27 = vadd.f32 %v2755_v10, %v8243_v29  ;;  %v2757_v52 = vpop.f32.mrb[30].mxu0  ;;  %3718 = vmatprep.subr.bf16.mxu1 %v2919_v9 }
 0x2e2   : > { %v6832_v34 = vadd.f32 %v2757_v52, %v8245_v30  ;;  %v2759_v13 = vpop.f32.mrb[31].mxu0  ;;  %3719 = vmatpush1.bf16.msra.mxu1 %v2918_v11  ;;  %v2870_v58 = vmax.f32 %v6830_v26, 0.0 }
 0x2e3   : > { %v6833_v35 = vadd.f32 %v2759_v13, %v8247_v31  ;;  %v2871_v12 = vmax.f32 %v6831_v27, 0.0 }
 0x2e4   : > { %v2872_v14 = vmax.f32 %v6832_v34, 0.0 }
 0x2e5   : > { %v2873_v61 = vmax.f32 %v6833_v35, 0.0 }
 0x2e6   : > { %v2920_v15 = vpack.c.bf16 %v2872_v14, %v2870_v58 }
 0x2e7   : > { %v2921_v62 = vpack.c.bf16 %v2873_v61, %v2871_v12  ;;  %v2763_v55 = vpop.f32.mrb[32].mxu0  ;;  %v8600_v61 = vld [vmem:[#allocation15_spill] sm:$0xff] }
 0x2e8   : > { %v6834_v28 = vadd.f32 %v2763_v55, %v8249_v32  ;;  %v2765_v16 = vpop.f32.mrb[33].mxu0 }
 0x2e9   : > { %v6835_v29 = vadd.f32 %v2765_v16, %v8251_v33  ;;  %v2767_v23 = vpop.f32.mrb[34].mxu0  ;;  %3720 = vmatprep.subr.bf16.mxu1 %v2921_v62  ;;  %v8601_v62 = vld [vmem:[#allocation16_spill] sm:$0xff] }
 0x2ea   : > { %v6836_v30 = vadd.f32 %v2767_v23, %v8253_v36  ;;  %v2769_v19 = vpop.f32.mrb[35].mxu0  ;;  %3721 = vmatpush1.bf16.msra.mxu1 %v2920_v15  ;;  %v2874_v49 = vmax.f32 %v6834_v28, 0.0  ;;  %v8602_v28 = vld [vmem:[#allocation17_spill] sm:$0xff] }
 0x2eb   : > { %v6837_v31 = vadd.f32 %v2769_v19, %v8255_v37  ;;  %v2875_v63 = vmax.f32 %v6835_v29, 0.0  ;;  %v8603_v29 = vld [vmem:[#allocation18_spill] sm:$0xff] }
 0x2ec   : > { %v2876_v20 = vmax.f32 %v6836_v30, 0.0 }
 0x2ed   : > { %v2877_v21 = vmax.f32 %v6837_v31, 0.0 }
 0x2ee   : > { %v2922_v50 = vpack.c.bf16 %v2876_v20, %v2874_v49 }
 0x2ef   : > { %v2923_v22 = vpack.c.bf16 %v2877_v21, %v2875_v63  ;;  %v2773_v3 = vpop.f32.mrb[36].mxu0  ;;  %v8604_v21 = vld [vmem:[#allocation19_spill] sm:$0xff] }
 0x2f0   : > { %v6838_v32 = vadd.f32 %v2773_v3, %v8257_v38  ;;  %v2775_v1 = vpop.f32.mrb[37].mxu0  ;;  %v8605_v3 = vld [vmem:[#allocation20_spill] sm:$0xff] }
 0x2f1   : > { %v6839_v33 = vadd.f32 %v2775_v1, %v8259_v39  ;;  %v2777_v53 = vpop.f32.mrb[38].mxu0  ;;  %3722 = vmatprep.subr.bf16.mxu1 %v2923_v22 }
 0x2f2   : > { %v6840_v36 = vadd.f32 %v2777_v53, %v8261_v40  ;;  %v2779_v2 = vpop.f32.mrb[39].mxu0  ;;  %3723 = vmatpush1.bf16.msra.mxu1 %v2922_v50  ;;  %v2878_v60 = vmax.f32 %v6838_v32, 0.0 }
 0x2f3   : > { %v6841_v37 = vadd.f32 %v2779_v2, %v8263_v41  ;;  %v2879_v54 = vmax.f32 %v6839_v33, 0.0  ;;  %v8606_v33 = vld [vmem:[#allocation21_spill] sm:$0xff]  ;;  %v8607_v2 = vld [vmem:[#allocation22_spill] sm:$0xff] }
 0x2f4   : > { %v2880_v5 = vmax.f32 %v6840_v36, 0.0 }
 0x2f5   : > { %v2881_v17 = vmax.f32 %v6841_v37, 0.0 }
 0x2f6   : > { %v2924_v6 = vpack.c.bf16 %v2880_v5, %v2878_v60 }
 0x2f7   : > { %v2925_v18 = vpack.c.bf16 %v2881_v17, %v2879_v54  ;;  %v2783_v0 = vpop.f32.mrb[40].mxu0 }
 0x2f8   : > { %v6842_v38 = vadd.f32 %v2783_v0, %v8265_v42  ;;  %v2785_v24 = vpop.f32.mrb[41].mxu0 }
 0x2f9   : > { %v6843_v39 = vadd.f32 %v2785_v24, %v8267_v43  ;;  %v2787_v59 = vpop.f32.mrb[42].mxu0  ;;  %3724 = vmatprep.subr.bf16.mxu1 %v2925_v18 }
 0x2fa   : > { %v6844_v40 = vadd.f32 %v2787_v59, %v8269_v44  ;;  %v2789_v25 = vpop.f32.mrb[43].mxu0  ;;  %3725 = vmatpush1.bf16.msra.mxu1 %v2924_v6  ;;  %v2882_v4 = vmax.f32 %v6842_v38, 0.0  ;;  %v8608_v38 = vld [vmem:[#allocation23_spill] sm:$0xff]  ;;  %v8609_v59 = vld [vmem:[#allocation24_spill] sm:$0xff] }
 0x2fb   : > { %v6845_v41 = vadd.f32 %v2789_v25, %v8271_v45  ;;  %v2883_v56 = vmax.f32 %v6843_v39, 0.0 }
 0x2fc   : > { %v2884_v7 = vmax.f32 %v6844_v40, 0.0 }
 0x2fd   : > { %v2885_v8 = vmax.f32 %v6845_v41, 0.0  ;;  %v8610_v41 = vld [vmem:[#allocation25_spill] sm:$0xff] }
 0x2fe   : > { %v2926_v11 = vpack.c.bf16 %v2884_v7, %v2882_v4 }
 0x2ff   : > { %v2927_v9 = vpack.c.bf16 %v2885_v8, %v2883_v56  ;;  %v2793_v57 = vpop.f32.mrb[44].mxu0  ;;  %v8611_v56 = vld [vmem:[#allocation26_spill] sm:$0xff] }
 0x300   : > { %v6846_v42 = vadd.f32 %v2793_v57, %v8273_v46  ;;  %v2795_v26 = vpop.f32.mrb[45].mxu0 }
 0x301   : > { %v6847_v43 = vadd.f32 %v2795_v26, %v8275_v47  ;;  %v2797_v10 = vpop.f32.mrb[46].mxu0  ;;  %3726 = vmatprep.subr.bf16.mxu1 %v2927_v9 }
 0x302   : > { %v6848_v44 = vadd.f32 %v2797_v10, %v8277_v48  ;;  %v2799_v27 = vpop.f32.mrb[47].mxu0  ;;  %3727 = vmatpush1.bf16.msra.mxu1 %v2926_v11  ;;  %v2886_v52 = vmax.f32 %v6846_v42, 0.0 }
 0x303   : > { %v6849_v45 = vadd.f32 %v2799_v27, %v8279_v51  ;;  %v2887_v13 = vmax.f32 %v6847_v43, 0.0 }
 0x304   : > { %v2888_v34 = vmax.f32 %v6848_v44, 0.0  ;;  %v8612_v44 = vld [vmem:[#allocation27_spill] sm:$0xff] }
 0x305   : > { %v2889_v35 = vmax.f32 %v6849_v45, 0.0 }
 0x306   : > { %v2928_v58 = vpack.c.bf16 %v2888_v34, %v2886_v52  ;;  %v8613_v52 = vld [vmem:[#allocation28_spill] sm:$0xff] }
 0x307   : > { %v2929_v14 = vpack.c.bf16 %v2889_v35, %v2887_v13  ;;  %v2803_v12 = vpop.f32.mrb[48].mxu0  ;;  %v8614_v35 = vld [vmem:[#allocation29_spill] sm:$0xff] }
 0x308   : > { %v6850_v46 = vadd.f32 %v2803_v12, %v8600_v61  ;;  %v2805_v15 = vpop.f32.mrb[49].mxu0  ;;  %v8615_v12 = vld [vmem:[#allocation30_spill] sm:$0xff] }
 0x309   : > { %v6851_v47 = vadd.f32 %v2805_v15, %v8601_v62  ;;  %v2807_v55 = vpop.f32.mrb[50].mxu0  ;;  %3728 = vmatprep.subr.bf16.mxu1 %v2929_v14 }
 0x30a   : > { %v6852_v48 = vadd.f32 %v2807_v55, %v8602_v28  ;;  %v2809_v16 = vpop.f32.mrb[51].mxu0  ;;  %3729 = vmatpush1.bf16.msra.mxu1 %v2928_v58  ;;  %v2890_v23 = vmax.f32 %v6850_v46, 0.0 }
 0x30b   : > { %v6853_v51 = vadd.f32 %v2809_v16, %v8603_v29  ;;  %v2891_v19 = vmax.f32 %v6851_v47, 0.0  ;;  %v7234_v16 = vld [vmem:[#allocation7 + $0x14] ss:$8 sps:$4 sm:$0xff]   ;;  %v7236_v29 = vld [vmem:[#allocation7 + $0x10] ss:$8 sps:$4 sm:$0xff]  }
 0x30c   : > { %v2892_v30 = vmax.f32 %v6852_v48, 0.0  ;;  %v7231_v48 = vld [vmem:[#allocation7] ss:$8 sps:$4 sm:$0xff]  }
 0x30d   : > { %v2893_v31 = vmax.f32 %v6853_v51, 0.0  ;;  %v7237_v51 = vld [vmem:[#allocation7 + $0x24] ss:$8 sps:$4 sm:$0xff]  }
 0x30e   : > { %v2930_v49 = vpack.c.bf16 %v2892_v30, %v2890_v23  ;;  %v7239_v23 = vld [vmem:[#allocation7 + $0x20] ss:$8 sps:$4 sm:$0xff]   ;;  %v7240_v30 = vld [vmem:[#allocation7 + $0x34] ss:$8 sps:$4 sm:$0xff]  }
 0x30f   : > { %v2931_v20 = vpack.c.bf16 %v2893_v31, %v2891_v19  ;;  %v2813_v63 = vpop.f32.mrb[52].mxu0  ;;  %v7242_v19 = vld [vmem:[#allocation7 + $0x30] ss:$8 sps:$4 sm:$0xff]   ;;  %v7243_v31 = vld [vmem:[#allocation7 + $0x44] ss:$8 sps:$4 sm:$0xff]  }
 0x310   : > { %v6854_v50 = vadd.f32 %v2813_v63, %v8604_v21  ;;  %v2815_v22 = vpop.f32.mrb[53].mxu0  ;;  %v7248_v63 = vld [vmem:[#allocation7 + $0x50] ss:$8 sps:$4 sm:$0xff]   ;;  %v7249_v21 = vld [vmem:[#allocation7 + $0x64] ss:$8 sps:$4 sm:$0xff]  }
 0x311   : > { %v6855_v32 = vadd.f32 %v2815_v22, %v8605_v3  ;;  %v2817_v1 = vpop.f32.mrb[54].mxu0  ;;  %3730 = vmatprep.subr.bf16.mxu1 %v2931_v20  ;;  %v7246_v20 = vld [vmem:[#allocation7 + $0x54] ss:$8 sps:$4 sm:$0xff]   ;;  %v7254_v3 = vld [vmem:[#allocation7 + $0x70] ss:$8 sps:$4 sm:$0xff]  }
 0x312   : > { %v6856_v53 = vadd.f32 %v2817_v1, %v8606_v33  ;;  %v2819_v36 = vpop.f32.mrb[55].mxu0  ;;  %3731 = vmatpush1.bf16.msra.mxu1 %v2930_v49  ;;  %v2894_v60 = vmax.f32 %v6854_v50, 0.0  ;;  %v7245_v49 = vld [vmem:[#allocation7 + $0x40] ss:$8 sps:$4 sm:$0xff]   ;;  %v7252_v22 = vld [vmem:[#allocation7 + $0x74] ss:$8 sps:$4 sm:$0xff]  }
 0x313   : > { %v6857_v37 = vadd.f32 %v2819_v36, %v8607_v2  ;;  %v2895_v54 = vmax.f32 %v6855_v32, 0.0  ;;  %v7251_v50 = vld [vmem:[#allocation7 + $0x60] ss:$8 sps:$4 sm:$0xff]   ;;  %v7255_v32 = vld [vmem:[#allocation7 + $0x84] ss:$8 sps:$4 sm:$0xff]  }
 0x314   : > { %v2896_v5 = vmax.f32 %v6856_v53, 0.0  ;;  %v7257_v1 = vld [vmem:[#allocation7 + $0x80] ss:$8 sps:$4 sm:$0xff]   ;;  %v7258_v33 = vld [vmem:[#allocation7 + $0x94] ss:$8 sps:$4 sm:$0xff]  }
 0x315   : > { %v2897_v17 = vmax.f32 %v6857_v37, 0.0  ;;  %v7260_v53 = vld [vmem:[#allocation7 + $0x90] ss:$8 sps:$4 sm:$0xff]   ;;  %v7261_v36 = vld [vmem:[#allocation7 + $0xa4] ss:$8 sps:$4 sm:$0xff]  }
 0x316   : > { %v2932_v6 = vpack.c.bf16 %v2896_v5, %v2894_v60  ;;  %v7263_v2 = vld [vmem:[#allocation7 + $0xa0] ss:$8 sps:$4 sm:$0xff]   ;;  %v7264_v37 = vld [vmem:[#allocation7 + $0xb4] ss:$8 sps:$4 sm:$0xff]   ;;  %v7266_v60 = vld [vmem:[#allocation7 + $0xb0] ss:$8 sps:$4 sm:$0xff]  }
 0x317   : > { %v2933_v18 = vpack.c.bf16 %v2897_v17, %v2895_v54  ;;  %v2823_v0 = vpop.f32.mrb[56].mxu0  ;;  %v7267_v5 = vld [vmem:[#allocation7 + $0xc4] ss:$8 sps:$4 sm:$0xff]   ;;  %v7269_v54 = vld [vmem:[#allocation7 + $0xc0] ss:$8 sps:$4 sm:$0xff]  }
 0x318   : > { %v6858_v24 = vadd.f32 %v2823_v0, %v8608_v38  ;;  %v2825_v39 = vpop.f32.mrb[57].mxu0  ;;  %v7270_v17 = vld [vmem:[#allocation7 + $0xd4] ss:$8 sps:$4 sm:$0xff]   ;;  %v7275_v0 = vld [vmem:[#allocation7 + $0xe0] ss:$8 sps:$4 sm:$0xff]  }
 0x319   : > { %v6859_v40 = vadd.f32 %v2825_v39, %v8609_v59  ;;  %v2827_v25 = vpop.f32.mrb[58].mxu0  ;;  %3732 = vmatprep.subr.bf16.mxu1 %v2933_v18  ;;  %v7273_v18 = vld [vmem:[#allocation7 + $0xe4] ss:$8 sps:$4 sm:$0xff]   ;;  %v7276_v38 = vld [vmem:[#allocation7 + $0xf4] ss:$8 sps:$4 sm:$0xff]  }
 0x31a   : > { %v6860_v4 = vadd.f32 %v2827_v25, %v8610_v41  ;;  %v2829_v7 = vpop.f32.mrb[59].mxu0  ;;  %3733 = vmatpush1.bf16.msra.mxu1 %v2932_v6  ;;  %v2898_v11 = vmax.f32 %v6858_v24, 0.0  ;;  %v7272_v6 = vld [vmem:[#allocation7 + $0xd0] ss:$8 sps:$4 sm:$0xff]   ;;  %v7279_v39 = vld [vmem:[#allocation7 + $0x104] ss:$8 sps:$4 sm:$0xff]  }
 0x31b   : > { %v6861_v8 = vadd.f32 %v2829_v7, %v8611_v56  ;;  %v2899_v57 = vmax.f32 %v6859_v40, 0.0  ;;  %v7278_v24 = vld [vmem:[#allocation7 + $0xf0] ss:$8 sps:$4 sm:$0xff]   ;;  %v7281_v59 = vld [vmem:[#allocation7 + $0x100] ss:$8 sps:$4 sm:$0xff]  }
 0x31c   : > { %v2900_v9 = vmax.f32 %v6860_v4, 0.0  ;;  %v7282_v40 = vld [vmem:[#allocation7 + $0x114] ss:$8 sps:$4 sm:$0xff]   ;;  %v7284_v25 = vld [vmem:[#allocation7 + $0x110] ss:$8 sps:$4 sm:$0xff]  }
 0x31d   : > { %v2901_v42 = vmax.f32 %v6861_v8, 0.0  ;;  %v7285_v41 = vld [vmem:[#allocation7 + $0x124] ss:$8 sps:$4 sm:$0xff]   ;;  %v7287_v4 = vld [vmem:[#allocation7 + $0x120] ss:$8 sps:$4 sm:$0xff]  }
 0x31e   : > { %v2934_v26 = vpack.c.bf16 %v2900_v9, %v2898_v11  ;;  %v7288_v7 = vld [vmem:[#allocation7 + $0x134] ss:$8 sps:$4 sm:$0xff]   ;;  %v7290_v56 = vld [vmem:[#allocation7 + $0x130] ss:$8 sps:$4 sm:$0xff]   ;;  %v7291_v8 = vld [vmem:[#allocation7 + $0x144] ss:$8 sps:$4 sm:$0xff]  }
 0x31f   : > { %v2935_v43 = vpack.c.bf16 %v2901_v42, %v2899_v57  ;;  %v2833_v10 = vpop.f32.mrb[60].mxu0  ;;  %v7293_v11 = vld [vmem:[#allocation7 + $0x140] ss:$8 sps:$4 sm:$0xff]   ;;  %v7294_v9 = vld [vmem:[#allocation7 + $0x154] ss:$8 sps:$4 sm:$0xff]  }
 0x320   : > { %v6862_v27 = vadd.f32 %v2833_v10, %v8612_v44  ;;  %v2835_v45 = vpop.f32.mrb[61].mxu0  ;;  %v7296_v57 = vld [vmem:[#allocation7 + $0x150] ss:$8 sps:$4 sm:$0xff]   ;;  %v7297_v42 = vld [vmem:[#allocation7 + $0x164] ss:$8 sps:$4 sm:$0xff]  }
 0x321   : > { %v6863_v34 = vadd.f32 %v2835_v45, %v8613_v52  ;;  %v2837_v13 = vpop.f32.mrb[62].mxu0  ;;  %3734 = vmatprep.subr.bf16.mxu1 %v2935_v43  ;;  %v7300_v43 = vld [vmem:[#allocation7 + $0x174] ss:$8 sps:$4 sm:$0xff]   ;;  %v7302_v10 = vld [vmem:[#allocation7 + $0x170] ss:$8 sps:$4 sm:$0xff]  }
 0x322   : > { %v6864_v58 = vadd.f32 %v2837_v13, %v8614_v35  ;;  %v2839_v14 = vpop.f32.mrb[63].mxu0  ;;  %3735 = vmatpush1.bf16.msra.mxu1 %v2934_v26  ;;  %v2902_v46 = vmax.f32 %v6862_v27, 0.0  ;;  %v7299_v26 = vld [vmem:[#allocation7 + $0x160] ss:$8 sps:$4 sm:$0xff]   ;;  %v7303_v44 = vld [vmem:[#allocation7 + $0x184] ss:$8 sps:$4 sm:$0xff]  }
 0x323   : > { %v6865_v61 = vadd.f32 %v2839_v14, %v8615_v12  ;;  %v2903_v62 = vmax.f32 %v6863_v34, 0.0  ;;  %v7305_v27 = vld [vmem:[#allocation7 + $0x180] ss:$8 sps:$4 sm:$0xff]   ;;  %v7306_v45 = vld [vmem:[#allocation7 + $0x194] ss:$8 sps:$4 sm:$0xff]  }
 0x324   : > { %v2904_v15 = vmax.f32 %v6864_v58, 0.0  ;;  %v7308_v52 = vld [vmem:[#allocation7 + $0x190] ss:$8 sps:$4 sm:$0xff]   ;;  %v7309_v34 = vld [vmem:[#allocation7 + $0x1a4] ss:$8 sps:$4 sm:$0xff]  }
 0x325   : > { %v2905_v47 = vmax.f32 %v6865_v61, 0.0  ;;  %v7311_v13 = vld [vmem:[#allocation7 + $0x1a0] ss:$8 sps:$4 sm:$0xff]   ;;  %v7312_v35 = vld [vmem:[#allocation7 + $0x1b4] ss:$8 sps:$4 sm:$0xff]  }
 0x326   : > { %v2936_v55 = vpack.c.bf16 %v2904_v15, %v2902_v46  ;;  %v7435_v58 = vld [vmem:[%s8027_s29] sm:$0xff]  ;;  %v7436_v61 = vld [vmem:[%s8027_s29 + $0x8] sm:$0xff] }
 0x327   : > { %v2937_v28 = vpack.c.bf16 %v2905_v47, %v2903_v62  ;;  %v406_v14 = vunpack.c.l.bf16 %v7435_v58  ;;  %v407_v12 = vunpack.c.h.bf16 %v7435_v58  ;;  %v408_v46 = vunpack.c.l.bf16 %v7436_v61 }
 0x328   : > { %v409_v47 = vunpack.c.h.bf16 %v7436_v61 }
 0x329   : > { %3736 = vmatprep.subr.bf16.mxu1 %v2937_v28  ;;  %v4891_v62 = vmul.f32 0.6, %v406_v14 }
 0x32a   : > { %3737 = vmatpush1.bf16.msra.mxu1 %v2936_v55 }
 0x32d   : > { %3739 = vmatmul.mubr.bf16.vlgmr.msra.gmra.mrb[64].mxu1 %v7231_v48  ;;  %v4892_v48 = vmul.f32 0.6, %v407_v12 }
 0x32e   : > { %3748 = vmatprep.mubr.bf16.mxu1 %v7234_v16  ;;  %v7314_v16 = vld [vmem:[#allocation7 + $0x1b0] ss:$8 sps:$4 sm:$0xff]  }
 0x335   : > { %3749 = vmatmul.mubr.bf16.gmra.mrb[68].mxu1 %v7236_v29 }
 0x336   : > { %3758 = vmatprep.mubr.bf16.mxu1 %v7237_v51 }
 0x33d   : > { %3759 = vmatmul.mubr.bf16.gmra.mrb[72].mxu1 %v7239_v23  ;;  %v4893_v23 = vmul.f32 0.6, %v408_v46 }
 0x33e   : > { %3768 = vmatprep.mubr.bf16.mxu1 %v7240_v30  ;;  %v7315_v30 = vld [vmem:[#allocation7 + $0x1c4] ss:$8 sps:$4 sm:$0xff]  }
 0x345   : > { %3769 = vmatmul.mubr.bf16.gmra.mrb[76].mxu1 %v7242_v19 }
 0x346   : > { %3778 = vmatprep.mubr.bf16.mxu1 %v7243_v31 }
 0x34d   : > { %3779 = vmatmul.mubr.bf16.gmra.mrb[80].mxu1 %v7245_v49 }
 0x34e   : > { %3788 = vmatprep.mubr.bf16.mxu1 %v7246_v20  ;;  %v7437_v20 = vld [vmem:[%s8027_s29 + $0x10] sm:$0xff] }
 0x355   : > { %3789 = vmatmul.mubr.bf16.gmra.mrb[84].mxu1 %v7248_v63  ;;  %v410_v63 = vunpack.c.l.bf16 %v7437_v20 }
 0x356   : > { %3798 = vmatprep.mubr.bf16.mxu1 %v7249_v21  ;;  %v411_v21 = vunpack.c.h.bf16 %v7437_v20 }
 0x35d   : > { %3799 = vmatmul.mubr.bf16.gmra.mrb[88].mxu1 %v7251_v50 }
 0x35e   : > { %3808 = vmatprep.mubr.bf16.mxu1 %v7252_v22 }
 0x365   : > { %3809 = vmatmul.mubr.bf16.gmra.mrb[92].mxu1 %v7254_v3  ;;  %v4894_v3 = vmul.f32 0.6, %v409_v47 }
 0x366   : > { %3818 = vmatprep.mubr.bf16.mxu1 %v7255_v32  ;;  %v7438_v32 = vld [vmem:[%s8027_s29 + $0x18] sm:$0xff] }
 0x36d   : > { %3819 = vmatmul.mubr.bf16.gmra.mrb[96].mxu1 %v7257_v1  ;;  %v412_v1 = vunpack.c.l.bf16 %v7438_v32 }
 0x36e   : > { %3828 = vmatprep.mubr.bf16.mxu1 %v7258_v33 }
 0x375   : > { %3829 = vmatmul.mubr.bf16.gmra.mrb[100].mxu1 %v7260_v53 }
 0x376   : > { %3838 = vmatprep.mubr.bf16.mxu1 %v7261_v36 }
 0x37d   : > { %3839 = vmatmul.mubr.bf16.gmra.mrb[104].mxu1 %v7263_v2 }
 0x37e   : > { %3848 = vmatprep.mubr.bf16.mxu1 %v7264_v37 }
 0x385   : > { %3849 = vmatmul.mubr.bf16.gmra.mrb[108].mxu1 %v7266_v60  ;;  %v4895_v60 = vmul.f32 0.6, %v410_v63 }
 0x386   : > { %3858 = vmatprep.mubr.bf16.mxu1 %v7267_v5  ;;  %v4896_v5 = vmul.f32 0.6, %v411_v21 }
 0x38d   : > { %3859 = vmatmul.mubr.bf16.gmra.mrb[112].mxu1 %v7269_v54  ;;  %v413_v54 = vunpack.c.h.bf16 %v7438_v32 }
 0x38e   : > { %3868 = vmatprep.mubr.bf16.mxu1 %v7270_v17 }
 0x395   : > { %3869 = vmatmul.mubr.bf16.gmra.mrb[116].mxu1 %v7272_v6 }
 0x396   : > { %3878 = vmatprep.mubr.bf16.mxu1 %v7273_v18  ;;  %v4897_v18 = vmul.f32 0.6, %v412_v1 }
 0x39d   : > { %3879 = vmatmul.mubr.bf16.gmra.mrb[120].mxu1 %v7275_v0  ;;  %v7439_v0 = vld [vmem:[%s8027_s29 + $0x20] sm:$0xff] }
 0x39e   : > { %3888 = vmatprep.mubr.bf16.mxu1 %v7276_v38  ;;  %v414_v38 = vunpack.c.l.bf16 %v7439_v0 }
 0x3a0   : > { %v4899_v12 = vmul.f32 0.6, %v414_v38 }
 0x3a5   : > { %3889 = vmatmul.mubr.bf16.gmra.mrb[124].mxu1 %v7278_v24  ;;  %v415_v24 = vunpack.c.h.bf16 %v7439_v0 }
 0x3a6   : > { %3898 = vmatprep.mubr.bf16.mxu1 %v7279_v39 }
 0x3ad   : > { %3899 = vmatmul.mubr.bf16.gmra.mrb[128].mxu1 %v7281_v59 }
 0x3ae   : > { %3908 = vmatprep.mubr.bf16.mxu1 %v7282_v40 }
 0x3b5   : > { %3909 = vmatmul.mubr.bf16.gmra.mrb[132].mxu1 %v7284_v25 }
 0x3b6   : > { %3918 = vmatprep.mubr.bf16.mxu1 %v7285_v41 }
 0x3bd   : > { %3919 = vmatmul.mubr.bf16.gmra.mrb[136].mxu1 %v7287_v4  ;;  %v7317_v4 = vld [vmem:[#allocation7 + $0x1c0] ss:$8 sps:$4 sm:$0xff]  }
 0x3be   : > { %3928 = vmatprep.mubr.bf16.mxu1 %v7288_v7 }
 0x3c5   : > { %3929 = vmatmul.mubr.bf16.gmra.mrb[140].mxu1 %v7290_v56 }
 0x3c6   : > { %3938 = vmatprep.mubr.bf16.mxu1 %v7291_v8 }
 0x3cd   : > { %3939 = vmatmul.mubr.bf16.gmra.mrb[144].mxu1 %v7293_v11 }
 0x3ce   : > { %3948 = vmatprep.mubr.bf16.mxu1 %v7294_v9 }
 0x3d5   : > { %3949 = vmatmul.mubr.bf16.gmra.mrb[148].mxu1 %v7296_v57  ;;  %v7318_v57 = vld [vmem:[#allocation7 + $0x1d4] ss:$8 sps:$4 sm:$0xff]  }
 0x3d6   : > { %3958 = vmatprep.mubr.bf16.mxu1 %v7297_v42 }
 0x3dd   : > { %3959 = vmatmul.mubr.bf16.gmra.mrb[152].mxu1 %v7299_v26 }
 0x3de   : > { %3968 = vmatprep.mubr.bf16.mxu1 %v7300_v43 }
 0x3e5   : > { %3969 = vmatmul.mubr.bf16.gmra.mrb[156].mxu1 %v7302_v10 }
 0x3e6   : > { %3978 = vmatprep.mubr.bf16.mxu1 %v7303_v44  ;;  %v7440_v44 = vld [vmem:[%s8027_s29 + $0x28] sm:$0xff] }
 0x3ed   : > { %3979 = vmatmul.mubr.bf16.gmra.mrb[160].mxu1 %v7305_v27  ;;  %v416_v27 = vunpack.c.l.bf16 %v7440_v44 }
 0x3ee   : > { %3988 = vmatprep.mubr.bf16.mxu1 %v7306_v45  ;;  %v5929_v45 = vld [vmem:[#allocation8] sm:$0xff] }
 0x3f5   : > { %3989 = vmatmul.mubr.bf16.gmra.mrb[164].mxu1 %v7308_v52 }
 0x3f6   : > { %3998 = vmatprep.mubr.bf16.mxu1 %v7309_v34 }
 0x3fd   : > { %3999 = vmatmul.mubr.bf16.gmra.mrb[168].mxu1 %v7311_v13 }
 0x3fe   : > { %4008 = vmatprep.mubr.bf16.mxu1 %v7312_v35  ;;  %v4898_v35 = vmul.f32 0.6, %v413_v54 }
 0x400   : > { %v3740_v15 = vpop.f32.mrb[64].mxu1 }
 0x401   : > { %v4379_v55 = vmax.f32 %v3740_v15, 0.0  ;;  %v3742_v28 = vpop.f32.mrb[65].mxu1  ;;  %v4900_v15 = vmul.f32 0.6, %v415_v24 }
 0x402   : > { %v4380_v29 = vmax.f32 %v3742_v28, 0.0  ;;  %v3744_v51 = vpop.f32.mrb[66].mxu1  ;;  %v4901_v28 = vmul.f32 0.6, %v416_v27 }
 0x403   : > { %v4635_v19 = vmul.f32 0.4, %v4379_v55  ;;  %v4381_v31 = vmax.f32 %v3744_v51, 0.0  ;;  %v3746_v49 = vpop.f32.mrb[67].mxu1 }
 0x404   : > { %v4636_v50 = vmul.f32 0.4, %v4380_v29  ;;  %v4382_v22 = vmax.f32 %v3746_v49, 0.0 }
 0x405   : > { %v5147_v33 = vadd.f32 %v4891_v62, %v4635_v19  ;;  %v4637_v53 = vmul.f32 0.4, %v4381_v31  ;;  %4009 = vmatmul.mubr.bf16.gmra.mrb[172].mxu1 %v7314_v16  ;;  %v6788_v62 = vcombine.high %v5929_v45, %v5929_v45 }
 0x406   : > { %v5148_v36 = vadd.f32 %v4892_v48, %v4636_v50  ;;  %v4638_v2 = vmul.f32 0.4, %v4382_v22  ;;  %4018 = vmatprep.mubr.bf16.mxu1 %v7315_v30  ;;  %v417_v48 = vunpack.c.h.bf16 %v7440_v44  ;;  %v7320_v50 = vld [vmem:[#allocation7 + $0x1d0] ss:$8 sps:$4 sm:$0xff]  }
 0x407   : > { %v5149_v37 = vadd.f32 %v4893_v23, %v4637_v53  ;;  %v5403_v39 = vmul.f32 %v5147_v33, %v5147_v33  ;;  %v7441_v23 = vld [vmem:[%s8027_s29 + $0x30] sm:$0xff]  ;;  %6121 = vmatprep.mubr.bf16.mxu0 %v6788_v62  ;;  %v7321_v53 = vld [vmem:[#allocation7 + $0x1e4] ss:$8 sps:$4 sm:$0xff]  }
 0x408   : > { %v5150_v17 = vadd.f32 %v4894_v3, %v4638_v2  ;;  %v3750_v6 = vpop.f32.mrb[68].mxu1  ;;  %v5404_v7 = vmul.f32 %v5148_v36, %v5148_v36  ;;  %v418_v30 = vunpack.c.l.bf16 %v7441_v23  ;;  %v419_v19 = vunpack.c.h.bf16 %v7441_v23 }
 0x409   : > { %v5405_v59 = vmul.f32 %v5149_v37, %v5149_v37  ;;  %v5933_v40 = vpack.c.bf16 %v5149_v37, %v5147_v33  ;;  %v4383_v25 = vmax.f32 %v3750_v6, 0.0  ;;  %v3752_v41 = vpop.f32.mrb[69].mxu1  ;;  %v4902_v0 = vmul.f32 0.6, %v417_v48 }
 0x40a   : > { %v5406_v56 = vmul.f32 %v5150_v17, %v5150_v17  ;;  %v4384_v8 = vmax.f32 %v3752_v41, 0.0  ;;  %v3754_v11 = vpop.f32.mrb[70].mxu1  ;;  %v5934_v9 = vpack.c.bf16 %v5150_v17, %v5148_v36 }
 0x40b   : > { %v5659_v42 = vadd.f32 %v5405_v59, %v5403_v39  ;;  %v4639_v26 = vmul.f32 0.4, %v4383_v25  ;;  %v4385_v43 = vmax.f32 %v3754_v11, 0.0  ;;  %v3756_v10 = vpop.f32.mrb[71].mxu1  ;;  %v4904_v25 = vmul.f32 0.6, %v419_v19 }
 0x40c   : > { %v5792_v52 = vadd.f32 %v5406_v56, %v5404_v7  ;;  %v4640_v34 = vmul.f32 0.4, %v4384_v8  ;;  %v4386_v13 = vmax.f32 %v3756_v10, 0.0  ;;  %6089 = vmatprep.subr.bf16.mxu0 %v5934_v9 }
 0x40d   : > { %v5151_v58 = vadd.f32 %v4895_v60, %v4639_v26  ;;  %v4641_v14 = vmul.f32 0.4, %v4385_v43  ;;  %4019 = vmatmul.mubr.bf16.gmra.mrb[176].mxu1 %v7317_v4  ;;  %6090 = vmatpush1.bf16.msra.mxu0 %v5933_v40  ;;  %v4903_v40 = vmul.f32 0.6, %v418_v30 }
 0x40e   : > { %v5152_v61 = vadd.f32 %v4896_v5, %v4640_v34  ;;  %v4642_v46 = vmul.f32 0.4, %v4386_v13  ;;  %4028 = vmatprep.mubr.bf16.mxu1 %v7318_v57  ;;  %v7442_v5 = vld [vmem:[%s8027_s29 + $0x38] sm:$0xff]  ;;  %v7443_v57 = vld [vmem:[%s8027_s29 + $0x40] sm:$0xff] }
 0x40f   : > { %v5407_v47 = vmul.f32 %v5151_v58, %v5151_v58  ;;  %v5153_v55 = vadd.f32 %v4897_v18, %v4641_v14  ;;  %v420_v54 = vunpack.c.l.bf16 %v7442_v5  ;;  %v421_v56 = vunpack.c.h.bf16 %v7442_v5 }
 0x410   : > { %v5408_v16 = vmul.f32 %v5152_v61, %v5152_v61  ;;  %v5154_v29 = vadd.f32 %v4898_v35, %v4642_v46  ;;  %v3760_v51 = vpop.f32.mrb[72].mxu1  ;;  %v423_v26 = vunpack.c.h.bf16 %v7443_v57 }
 0x411   : > { %v5660_v31 = vadd.f32 %v5659_v42, %v5407_v47  ;;  %v5409_v49 = vmul.f32 %v5153_v55, %v5153_v55  ;;  %v5935_v20 = vpack.c.bf16 %v5153_v55, %v5151_v58  ;;  %v4387_v63 = vmax.f32 %v3760_v51, 0.0  ;;  %v3762_v21 = vpop.f32.mrb[73].mxu1  ;;  %v7444_v47 = vld [vmem:[%s8027_s29 + $0x48] sm:$0xff] }
 0x412   : > { %v5793_v22 = vadd.f32 %v5792_v52, %v5408_v16  ;;  %v5410_v3 = vmul.f32 %v5154_v29, %v5154_v29  ;;  %v4388_v32 = vmax.f32 %v3762_v21, 0.0  ;;  %v3764_v1 = vpop.f32.mrb[74].mxu1  ;;  %v5936_v33 = vpack.c.bf16 %v5154_v29, %v5152_v61  ;;  %v7323_v52 = vld [vmem:[#allocation7 + $0x1e0] ss:$8 sps:$4 sm:$0xff]  }
 0x413   : > { %v5661_v36 = vadd.f32 %v5660_v31, %v5409_v49  ;;  %v4643_v2 = vmul.f32 0.4, %v4387_v63  ;;  %v4389_v37 = vmax.f32 %v3764_v1, 0.0  ;;  %v3766_v60 = vpop.f32.mrb[75].mxu1  ;;  %v4905_v7 = vmul.f32 0.6, %v420_v54 }
 0x414   : > { %v5794_v17 = vadd.f32 %v5793_v22, %v5410_v3  ;;  %v4644_v6 = vmul.f32 0.4, %v4388_v32  ;;  %v4390_v18 = vmax.f32 %v3766_v60, 0.0  ;;  %6091 = vmatprep.subr.bf16.mxu0 %v5936_v33  ;;  %v422_v42 = vunpack.c.l.bf16 %v7443_v57  ;;  %v7445_v1 = vld [vmem:[%s8027_s29 + $0x50] sm:$0xff] }
 0x415   : > { %v5155_v38 = vadd.f32 %v4899_v12, %v4643_v2  ;;  %v4645_v24 = vmul.f32 0.4, %v4389_v37  ;;  %4029 = vmatmul.mubr.bf16.gmra.mrb[180].mxu1 %v7320_v50  ;;  %6092 = vmatpush1.bf16.msra.mxu0 %v5935_v20  ;;  %v7324_v12 = vld [vmem:[#allocation7 + $0x1f4] ss:$8 sps:$4 sm:$0xff]   ;;  %v424_v55 = vunpack.c.l.bf16 %v7444_v47  ;;  %v4906_v29 = vmul.f32 0.6, %v421_v56 }
 0x416   : > { %v5156_v39 = vadd.f32 %v4900_v15, %v4644_v6  ;;  %v4646_v59 = vmul.f32 0.4, %v4390_v18  ;;  %4038 = vmatprep.mubr.bf16.mxu1 %v7321_v53  ;;  %v4907_v31 = vmul.f32 0.6, %v422_v42  ;;  %v4908_v49 = vmul.f32 0.6, %v423_v26 }
 0x417   : > { %v5411_v41 = vmul.f32 %v5155_v38, %v5155_v38  ;;  %v5157_v4 = vadd.f32 %v4901_v28, %v4645_v24  ;;  %v4909_v21 = vmul.f32 0.6, %v424_v55  ;;  %v425_v50 = vunpack.c.h.bf16 %v7444_v47  ;;  %v7326_v54 = vld [vmem:[#allocation7 + $0x1f0] ss:$8 sps:$4 sm:$0xff]   ;;  %v7327_v24 = vld [vmem:[#allocation7 + $0x204] ss:$8 sps:$4 sm:$0xff]  }
 0x418   : > { %v5412_v8 = vmul.f32 %v5156_v39, %v5156_v39  ;;  %v5158_v11 = vadd.f32 %v4902_v0, %v4646_v59  ;;  %v3770_v9 = vpop.f32.mrb[76].mxu1  ;;  %v426_v33 = vunpack.c.l.bf16 %v7445_v1  ;;  %v427_v53 = vunpack.c.h.bf16 %v7445_v1  ;;  %v7329_v55 = vld [vmem:[#allocation7 + $0x200] ss:$8 sps:$4 sm:$0xff]  }
 0x419   : > { %v5662_v43 = vadd.f32 %v5661_v36, %v5411_v41  ;;  %v5413_v10 = vmul.f32 %v5157_v4, %v5157_v4  ;;  %v5937_v44 = vpack.c.bf16 %v5157_v4, %v5155_v38  ;;  %v4391_v27 = vmax.f32 %v3770_v9, 0.0  ;;  %v3772_v45 = vpop.f32.mrb[77].mxu1  ;;  %v7446_v41 = vld [vmem:[%s8027_s29 + $0x58] sm:$0xff] }
 0x41a   : > { %v5795_v34 = vadd.f32 %v5794_v17, %v5412_v8  ;;  %v5414_v13 = vmul.f32 %v5158_v11, %v5158_v11  ;;  %v4392_v35 = vmax.f32 %v3772_v45, 0.0  ;;  %v3774_v58 = vpop.f32.mrb[78].mxu1  ;;  %v5938_v14 = vpack.c.bf16 %v5158_v11, %v5156_v39 }
 0x41b   : > { %v5663_v61 = vadd.f32 %v5662_v43, %v5413_v10  ;;  %v4647_v46 = vmul.f32 0.4, %v4391_v27  ;;  %v4393_v15 = vmax.f32 %v3774_v58, 0.0  ;;  %v3776_v62 = vpop.f32.mrb[79].mxu1  ;;  %v428_v4 = vunpack.c.l.bf16 %v7446_v41  ;;  %v7447_v58 = vld [vmem:[%s8027_s29 + $0x60] sm:$0xff] }
 0x41c   : > { %v5796_v28 = vadd.f32 %v5795_v34, %v5414_v13  ;;  %v4648_v48 = vmul.f32 0.4, %v4392_v35  ;;  %v4394_v16 = vmax.f32 %v3776_v62, 0.0  ;;  %6093 = vmatprep.subr.bf16.mxu0 %v5938_v14  ;;  %v4910_v11 = vmul.f32 0.6, %v425_v50 }
 0x41d   : > { %v5159_v51 = vadd.f32 %v4903_v40, %v4647_v46  ;;  %v4649_v23 = vmul.f32 0.4, %v4393_v15  ;;  %4039 = vmatmul.mubr.bf16.gmra.mrb[184].mxu1 %v7323_v52  ;;  %6094 = vmatpush1.bf16.msra.mxu0 %v5937_v44  ;;  %v4911_v43 = vmul.f32 0.6, %v426_v33  ;;  %v4912_v10 = vmul.f32 0.6, %v427_v53 }
 0x41e   : > { %v5160_v30 = vadd.f32 %v4904_v25, %v4648_v48  ;;  %v4650_v19 = vmul.f32 0.4, %v4394_v16  ;;  %4048 = vmatprep.mubr.bf16.mxu1 %v7324_v12  ;;  %v4913_v45 = vmul.f32 0.6, %v428_v4  ;;  %v429_v52 = vunpack.c.h.bf16 %v7446_v41  ;;  %v7332_v4 = vld [vmem:[#allocation7 + $0x210] ss:$8 sps:$4 sm:$0xff]  }
 0x41f   : > { %v5415_v20 = vmul.f32 %v5159_v51, %v5159_v51  ;;  %v5161_v63 = vadd.f32 %v4905_v7, %v4649_v23  ;;  %v430_v14 = vunpack.c.l.bf16 %v7447_v58  ;;  %v431_v12 = vunpack.c.h.bf16 %v7447_v58  ;;  %v7330_v23 = vld [vmem:[#allocation7 + $0x214] ss:$8 sps:$4 sm:$0xff]  }
 0x420   : > { %v5416_v22 = vmul.f32 %v5160_v30, %v5160_v30  ;;  %v5162_v3 = vadd.f32 %v4906_v29, %v4650_v19  ;;  %v3780_v32 = vpop.f32.mrb[80].mxu1 }
 0x421   : > { %v5664_v36 = vadd.f32 %v5663_v61, %v5415_v20  ;;  %v5417_v2 = vmul.f32 %v5161_v63, %v5161_v63  ;;  %v5939_v37 = vpack.c.bf16 %v5161_v63, %v5159_v51  ;;  %v4395_v60 = vmax.f32 %v3780_v32, 0.0  ;;  %v3782_v5 = vpop.f32.mrb[81].mxu1  ;;  %v7448_v20 = vld [vmem:[%s8027_s29 + $0x68] sm:$0xff] }
 0x422   : > { %v5797_v17 = vadd.f32 %v5796_v28, %v5416_v22  ;;  %v5418_v6 = vmul.f32 %v5162_v3, %v5162_v3  ;;  %v4396_v18 = vmax.f32 %v3782_v5, 0.0  ;;  %v3784_v0 = vpop.f32.mrb[82].mxu1  ;;  %v5940_v38 = vpack.c.bf16 %v5162_v3, %v5160_v30 }
 0x423   : > { %v5665_v39 = vadd.f32 %v5664_v36, %v5417_v2  ;;  %v4651_v59 = vmul.f32 0.4, %v4395_v60  ;;  %v4397_v40 = vmax.f32 %v3784_v0, 0.0  ;;  %v3786_v25 = vpop.f32.mrb[83].mxu1  ;;  %v432_v63 = vunpack.c.l.bf16 %v7448_v20  ;;  %v7449_v0 = vld [vmem:[%s8027_s29 + $0x70] sm:$0xff] }
 0x424   : > { %v5798_v7 = vadd.f32 %v5797_v17, %v5418_v6  ;;  %v4652_v56 = vmul.f32 0.4, %v4396_v18  ;;  %v4398_v8 = vmax.f32 %v3786_v25, 0.0  ;;  %6095 = vmatprep.subr.bf16.mxu0 %v5940_v38  ;;  %v4914_v3 = vmul.f32 0.6, %v429_v52 }
 0x425   : > { %v5163_v9 = vadd.f32 %v4907_v31, %v4651_v59  ;;  %v4653_v57 = vmul.f32 0.4, %v4397_v40  ;;  %4049 = vmatmul.mubr.bf16.gmra.mrb[188].mxu1 %v7326_v54  ;;  %6096 = vmatpush1.bf16.msra.mxu0 %v5939_v37  ;;  %v4915_v36 = vmul.f32 0.6, %v430_v14  ;;  %v4916_v2 = vmul.f32 0.6, %v431_v12 }
 0x426   : > { %v5164_v42 = vadd.f32 %v4908_v49, %v4652_v56  ;;  %v4654_v26 = vmul.f32 0.4, %v4398_v8  ;;  %4058 = vmatprep.mubr.bf16.mxu1 %v7327_v24  ;;  %v4917_v5 = vmul.f32 0.6, %v432_v63  ;;  %v433_v54 = vunpack.c.h.bf16 %v7448_v20  ;;  %v7335_v63 = vld [vmem:[#allocation7 + $0x220] ss:$8 sps:$4 sm:$0xff]  }
 0x427   : > { %v5419_v44 = vmul.f32 %v5163_v9, %v5163_v9  ;;  %v5165_v27 = vadd.f32 %v4909_v21, %v4653_v57  ;;  %v434_v38 = vunpack.c.l.bf16 %v7449_v0  ;;  %v435_v24 = vunpack.c.h.bf16 %v7449_v0  ;;  %v7333_v57 = vld [vmem:[#allocation7 + $0x224] ss:$8 sps:$4 sm:$0xff]  }
 0x428   : > { %v5420_v34 = vmul.f32 %v5164_v42, %v5164_v42  ;;  %v5166_v13 = vadd.f32 %v4910_v11, %v4654_v26  ;;  %v3790_v35 = vpop.f32.mrb[84].mxu1 }
 0x429   : > { %v5666_v61 = vadd.f32 %v5665_v39, %v5419_v44  ;;  %v5421_v46 = vmul.f32 %v5165_v27, %v5165_v27  ;;  %v5941_v15 = vpack.c.bf16 %v5165_v27, %v5163_v9  ;;  %v4399_v62 = vmax.f32 %v3790_v35, 0.0  ;;  %v3792_v47 = vpop.f32.mrb[85].mxu1  ;;  %v7450_v44 = vld [vmem:[%s8027_s29 + $0x78] sm:$0xff] }
 0x42a   : > { %v5799_v28 = vadd.f32 %v5798_v7, %v5420_v34  ;;  %v5422_v48 = vmul.f32 %v5166_v13, %v5166_v13  ;;  %v4400_v16 = vmax.f32 %v3792_v47, 0.0  ;;  %v3794_v29 = vpop.f32.mrb[86].mxu1  ;;  %v5942_v51 = vpack.c.bf16 %v5166_v13, %v5164_v42 }
 0x42b   : > { %v5667_v30 = vadd.f32 %v5666_v61, %v5421_v46  ;;  %v4655_v19 = vmul.f32 0.4, %v4399_v62  ;;  %v4401_v31 = vmax.f32 %v3794_v29, 0.0  ;;  %v3796_v49 = vpop.f32.mrb[87].mxu1  ;;  %v436_v27 = vunpack.c.l.bf16 %v7450_v44  ;;  %v7451_v29 = vld [vmem:[%s8027_s29 + $0x80] sm:$0xff] }
 0x42c   : > { %v5800_v21 = vadd.f32 %v5799_v28, %v5422_v48  ;;  %v4656_v50 = vmul.f32 0.4, %v4400_v16  ;;  %v4402_v22 = vmax.f32 %v3796_v49, 0.0  ;;  %6097 = vmatprep.subr.bf16.mxu0 %v5942_v51  ;;  %v4918_v13 = vmul.f32 0.6, %v433_v54 }
 0x42d   : > { %v5167_v32 = vadd.f32 %v4911_v43, %v4655_v19  ;;  %v4657_v1 = vmul.f32 0.4, %v4401_v31  ;;  %4059 = vmatmul.mubr.bf16.gmra.mrb[192].mxu1 %v7329_v55  ;;  %6098 = vmatpush1.bf16.msra.mxu0 %v5941_v15  ;;  %v4919_v61 = vmul.f32 0.6, %v434_v38  ;;  %v4920_v46 = vmul.f32 0.6, %v435_v24 }
 0x42e   : > { %v5168_v33 = vadd.f32 %v4912_v10, %v4656_v50  ;;  %v4658_v53 = vmul.f32 0.4, %v4402_v22  ;;  %4068 = vmatprep.mubr.bf16.mxu1 %v7330_v23  ;;  %v4921_v47 = vmul.f32 0.6, %v436_v27  ;;  %v437_v55 = vunpack.c.h.bf16 %v7450_v44  ;;  %v7338_v27 = vld [vmem:[#allocation7 + $0x230] ss:$8 sps:$4 sm:$0xff]  }
 0x42f   : > { %v5423_v37 = vmul.f32 %v5167_v32, %v5167_v32  ;;  %v5169_v60 = vadd.f32 %v4913_v45, %v4657_v1  ;;  %v438_v51 = vunpack.c.l.bf16 %v7451_v29  ;;  %v439_v23 = vunpack.c.h.bf16 %v7451_v29  ;;  %v7336_v1 = vld [vmem:[#allocation7 + $0x234] ss:$8 sps:$4 sm:$0xff]  }
 0x430   : > { %v5424_v17 = vmul.f32 %v5168_v33, %v5168_v33  ;;  %v5170_v6 = vadd.f32 %v4914_v3, %v4658_v53  ;;  %v3800_v18 = vpop.f32.mrb[88].mxu1 }
 0x431   : > { %v5668_v39 = vadd.f32 %v5667_v30, %v5423_v37  ;;  %v5425_v59 = vmul.f32 %v5169_v60, %v5169_v60  ;;  %v5943_v40 = vpack.c.bf16 %v5169_v60, %v5167_v32  ;;  %v4403_v25 = vmax.f32 %v3800_v18, 0.0  ;;  %v3802_v41 = vpop.f32.mrb[89].mxu1  ;;  %v7452_v37 = vld [vmem:[%s8027_s29 + $0x88] sm:$0xff] }
 0x432   : > { %v5801_v7 = vadd.f32 %v5800_v21, %v5424_v17  ;;  %v5426_v56 = vmul.f32 %v5170_v6, %v5170_v6  ;;  %v4404_v8 = vmax.f32 %v3802_v41, 0.0  ;;  %v3804_v11 = vpop.f32.mrb[90].mxu1  ;;  %v5944_v9 = vpack.c.bf16 %v5170_v6, %v5168_v33 }
 0x433   : > { %v5669_v42 = vadd.f32 %v5668_v39, %v5425_v59  ;;  %v4659_v26 = vmul.f32 0.4, %v4403_v25  ;;  %v4405_v43 = vmax.f32 %v3804_v11, 0.0  ;;  %v3806_v10 = vpop.f32.mrb[91].mxu1  ;;  %v440_v60 = vunpack.c.l.bf16 %v7452_v37  ;;  %v7453_v11 = vld [vmem:[%s8027_s29 + $0x90] sm:$0xff] }
 0x434   : > { %v5802_v45 = vadd.f32 %v5801_v7, %v5426_v56  ;;  %v4660_v52 = vmul.f32 0.4, %v4404_v8  ;;  %v4406_v34 = vmax.f32 %v3806_v10, 0.0  ;;  %6099 = vmatprep.subr.bf16.mxu0 %v5944_v9  ;;  %v4922_v6 = vmul.f32 0.6, %v437_v55 }
 0x435   : > { %v5171_v35 = vadd.f32 %v4915_v36, %v4659_v26  ;;  %v4661_v58 = vmul.f32 0.4, %v4405_v43  ;;  %4069 = vmatmul.mubr.bf16.gmra.mrb[196].mxu1 %v7332_v4  ;;  %6100 = vmatpush1.bf16.msra.mxu0 %v5943_v40  ;;  %v4923_v39 = vmul.f32 0.6, %v438_v51  ;;  %v4924_v59 = vmul.f32 0.6, %v439_v23 }
 0x436   : > { %v5172_v14 = vadd.f32 %v4916_v2, %v4660_v52  ;;  %v4662_v12 = vmul.f32 0.4, %v4406_v34  ;;  %4078 = vmatprep.mubr.bf16.mxu1 %v7333_v57  ;;  %v4925_v41 = vmul.f32 0.6, %v440_v60  ;;  %v441_v4 = vunpack.c.h.bf16 %v7452_v37  ;;  %v7341_v60 = vld [vmem:[#allocation7 + $0x240] ss:$8 sps:$4 sm:$0xff]  }
 0x437   : > { %v5427_v15 = vmul.f32 %v5171_v35, %v5171_v35  ;;  %v5173_v62 = vadd.f32 %v4917_v5, %v4661_v58  ;;  %v442_v9 = vunpack.c.l.bf16 %v7453_v11  ;;  %v443_v57 = vunpack.c.h.bf16 %v7453_v11  ;;  %v7339_v58 = vld [vmem:[#allocation7 + $0x244] ss:$8 sps:$4 sm:$0xff]  }
 0x438   : > { %v5428_v28 = vmul.f32 %v5172_v14, %v5172_v14  ;;  %v5174_v48 = vadd.f32 %v4918_v13, %v4662_v12  ;;  %v3810_v16 = vpop.f32.mrb[92].mxu1 }
 0x439   : > { %v5670_v30 = vadd.f32 %v5669_v42, %v5427_v15  ;;  %v5429_v19 = vmul.f32 %v5173_v62, %v5173_v62  ;;  %v5945_v31 = vpack.c.bf16 %v5173_v62, %v5171_v35  ;;  %v4407_v49 = vmax.f32 %v3810_v16, 0.0  ;;  %v3812_v20 = vpop.f32.mrb[93].mxu1  ;;  %v7454_v15 = vld [vmem:[%s8027_s29 + $0x98] sm:$0xff] }
 0x43a   : > { %v5803_v21 = vadd.f32 %v5802_v45, %v5428_v28  ;;  %v5430_v50 = vmul.f32 %v5174_v48, %v5174_v48  ;;  %v4408_v22 = vmax.f32 %v3812_v20, 0.0  ;;  %v3814_v3 = vpop.f32.mrb[94].mxu1  ;;  %v5946_v32 = vpack.c.bf16 %v5174_v48, %v5172_v14 }
 0x43b   : > { %v5671_v33 = vadd.f32 %v5670_v30, %v5429_v19  ;;  %v4663_v53 = vmul.f32 0.4, %v4407_v49  ;;  %v4409_v36 = vmax.f32 %v3814_v3, 0.0  ;;  %v3816_v2 = vpop.f32.mrb[95].mxu1  ;;  %v444_v62 = vunpack.c.l.bf16 %v7454_v15  ;;  %v7455_v3 = vld [vmem:[%s8027_s29 + $0xa0] sm:$0xff] }
 0x43c   : > { %v5804_v5 = vadd.f32 %v5803_v21, %v5430_v50  ;;  %v4664_v54 = vmul.f32 0.4, %v4408_v22  ;;  %v4410_v17 = vmax.f32 %v3816_v2, 0.0  ;;  %6101 = vmatprep.subr.bf16.mxu0 %v5946_v32  ;;  %v4926_v48 = vmul.f32 0.6, %v441_v4 }
 0x43d   : > { %v5175_v18 = vadd.f32 %v4919_v61, %v4663_v53  ;;  %v4665_v0 = vmul.f32 0.4, %v4409_v36  ;;  %4079 = vmatmul.mubr.bf16.gmra.mrb[200].mxu1 %v7335_v63  ;;  %6102 = vmatpush1.bf16.msra.mxu0 %v5945_v31  ;;  %v4927_v30 = vmul.f32 0.6, %v442_v9  ;;  %v4928_v19 = vmul.f32 0.6, %v443_v57 }
 0x43e   : > { %v5176_v38 = vadd.f32 %v4920_v46, %v4664_v54  ;;  %v4666_v24 = vmul.f32 0.4, %v4410_v17  ;;  %4088 = vmatprep.mubr.bf16.mxu1 %v7336_v1  ;;  %v4929_v20 = vmul.f32 0.6, %v444_v62  ;;  %v445_v63 = vunpack.c.h.bf16 %v7454_v15  ;;  %v7344_v62 = vld [vmem:[#allocation7 + $0x250] ss:$8 sps:$4 sm:$0xff]  }
 0x43f   : > { %v5431_v40 = vmul.f32 %v5175_v18, %v5175_v18  ;;  %v5177_v25 = vadd.f32 %v4921_v47, %v4665_v0  ;;  %v446_v32 = vunpack.c.l.bf16 %v7455_v3  ;;  %v447_v1 = vunpack.c.h.bf16 %v7455_v3  ;;  %v7342_v0 = vld [vmem:[#allocation7 + $0x254] ss:$8 sps:$4 sm:$0xff]  }
 0x440   : > { %v5432_v7 = vmul.f32 %v5176_v38, %v5176_v38  ;;  %v5178_v56 = vadd.f32 %v4922_v6, %v4666_v24  ;;  %v3820_v8 = vpop.f32.mrb[96].mxu1 }
 0x441   : > { %v5672_v42 = vadd.f32 %v5671_v33, %v5431_v40  ;;  %v5433_v26 = vmul.f32 %v5177_v25, %v5177_v25  ;;  %v5947_v43 = vpack.c.bf16 %v5177_v25, %v5175_v18  ;;  %v4411_v10 = vmax.f32 %v3820_v8, 0.0  ;;  %v3822_v44 = vpop.f32.mrb[97].mxu1  ;;  %v7456_v40 = vld [vmem:[%s8027_s29 + $0xa8] sm:$0xff] }
 0x442   : > { %v5805_v45 = vadd.f32 %v5804_v5, %v5432_v7  ;;  %v5434_v52 = vmul.f32 %v5178_v56, %v5178_v56  ;;  %v4412_v34 = vmax.f32 %v3822_v44, 0.0  ;;  %v3824_v13 = vpop.f32.mrb[98].mxu1  ;;  %v5948_v35 = vpack.c.bf16 %v5178_v56, %v5176_v38 }
 0x443   : > { %v5673_v14 = vadd.f32 %v5672_v42, %v5433_v26  ;;  %v4667_v12 = vmul.f32 0.4, %v4411_v10  ;;  %v4413_v61 = vmax.f32 %v3824_v13, 0.0  ;;  %v3826_v46 = vpop.f32.mrb[99].mxu1  ;;  %v448_v25 = vunpack.c.l.bf16 %v7456_v40  ;;  %v7457_v13 = vld [vmem:[%s8027_s29 + $0xb0] sm:$0xff] }
 0x444   : > { %v5806_v47 = vadd.f32 %v5805_v45, %v5434_v52  ;;  %v4668_v55 = vmul.f32 0.4, %v4412_v34  ;;  %v4414_v28 = vmax.f32 %v3826_v46, 0.0  ;;  %6103 = vmatprep.subr.bf16.mxu0 %v5948_v35  ;;  %v4930_v56 = vmul.f32 0.6, %v445_v63 }
 0x445   : > { %v5179_v16 = vadd.f32 %v4923_v39, %v4667_v12  ;;  %v4669_v29 = vmul.f32 0.4, %v4413_v61  ;;  %4089 = vmatmul.mubr.bf16.gmra.mrb[204].mxu1 %v7338_v27  ;;  %6104 = vmatpush1.bf16.msra.mxu0 %v5947_v43  ;;  %v4931_v42 = vmul.f32 0.6, %v446_v32  ;;  %v4932_v26 = vmul.f32 0.6, %v447_v1 }
 0x446   : > { %v5180_v51 = vadd.f32 %v4924_v59, %v4668_v55  ;;  %v4670_v23 = vmul.f32 0.4, %v4414_v28  ;;  %4098 = vmatprep.mubr.bf16.mxu1 %v7339_v58  ;;  %v4933_v44 = vmul.f32 0.6, %v448_v25  ;;  %v449_v27 = vunpack.c.h.bf16 %v7456_v40  ;;  %v7347_v25 = vld [vmem:[#allocation7 + $0x260] ss:$8 sps:$4 sm:$0xff]  }
 0x447   : > { %v5435_v31 = vmul.f32 %v5179_v16, %v5179_v16  ;;  %v5181_v49 = vadd.f32 %v4925_v41, %v4669_v29  ;;  %v450_v35 = vunpack.c.l.bf16 %v7457_v13  ;;  %v451_v58 = vunpack.c.h.bf16 %v7457_v13  ;;  %v7345_v29 = vld [vmem:[#allocation7 + $0x264] ss:$8 sps:$4 sm:$0xff]  }
 0x448   : > { %v5436_v21 = vmul.f32 %v5180_v51, %v5180_v51  ;;  %v5182_v50 = vadd.f32 %v4926_v48, %v4670_v23  ;;  %v3830_v22 = vpop.f32.mrb[100].mxu1 }
 0x449   : > { %v5674_v33 = vadd.f32 %v5673_v14, %v5435_v31  ;;  %v5437_v53 = vmul.f32 %v5181_v49, %v5181_v49  ;;  %v5949_v36 = vpack.c.bf16 %v5181_v49, %v5179_v16  ;;  %v4415_v2 = vmax.f32 %v3830_v22, 0.0  ;;  %v3832_v37 = vpop.f32.mrb[101].mxu1  ;;  %v7458_v31 = vld [vmem:[%s8027_s29 + $0xb8] sm:$0xff] }
 0x44a   : > { %v5807_v5 = vadd.f32 %v5806_v47, %v5436_v21  ;;  %v5438_v54 = vmul.f32 %v5182_v50, %v5182_v50  ;;  %v4416_v17 = vmax.f32 %v3832_v37, 0.0  ;;  %v3834_v6 = vpop.f32.mrb[102].mxu1  ;;  %v5950_v18 = vpack.c.bf16 %v5182_v50, %v5180_v51 }
 0x44b   : > { %v5675_v38 = vadd.f32 %v5674_v33, %v5437_v53  ;;  %v4671_v24 = vmul.f32 0.4, %v4415_v2  ;;  %v4417_v39 = vmax.f32 %v3834_v6, 0.0  ;;  %v3836_v59 = vpop.f32.mrb[103].mxu1  ;;  %v452_v49 = vunpack.c.l.bf16 %v7458_v31  ;;  %v7459_v6 = vld [vmem:[%s8027_s29 + $0xc0] sm:$0xff] }
 0x44c   : > { %v5808_v41 = vadd.f32 %v5807_v5, %v5438_v54  ;;  %v4672_v4 = vmul.f32 0.4, %v4416_v17  ;;  %v4418_v7 = vmax.f32 %v3836_v59, 0.0  ;;  %6105 = vmatprep.subr.bf16.mxu0 %v5950_v18  ;;  %v4934_v50 = vmul.f32 0.6, %v449_v27 }
 0x44d   : > { %v5183_v8 = vadd.f32 %v4927_v30, %v4671_v24  ;;  %v4673_v11 = vmul.f32 0.4, %v4417_v39  ;;  %4099 = vmatmul.mubr.bf16.gmra.mrb[208].mxu1 %v7341_v60  ;;  %6106 = vmatpush1.bf16.msra.mxu0 %v5949_v36  ;;  %v4935_v33 = vmul.f32 0.6, %v450_v35  ;;  %v4936_v53 = vmul.f32 0.6, %v451_v58 }
 0x44e   : > { %v5184_v9 = vadd.f32 %v4928_v19, %v4672_v4  ;;  %v4674_v57 = vmul.f32 0.4, %v4418_v7  ;;  %4108 = vmatprep.mubr.bf16.mxu1 %v7342_v0  ;;  %v4937_v37 = vmul.f32 0.6, %v452_v49  ;;  %v453_v60 = vunpack.c.h.bf16 %v7458_v31  ;;  %v7350_v49 = vld [vmem:[#allocation7 + $0x270] ss:$8 sps:$4 sm:$0xff]  }
 0x44f   : > { %v5439_v43 = vmul.f32 %v5183_v8, %v5183_v8  ;;  %v5185_v10 = vadd.f32 %v4929_v20, %v4673_v11  ;;  %v454_v18 = vunpack.c.l.bf16 %v7459_v6  ;;  %v455_v0 = vunpack.c.h.bf16 %v7459_v6  ;;  %v7348_v11 = vld [vmem:[#allocation7 + $0x274] ss:$8 sps:$4 sm:$0xff]  }
 0x450   : > { %v5440_v45 = vmul.f32 %v5184_v9, %v5184_v9  ;;  %v5186_v52 = vadd.f32 %v4930_v56, %v4674_v57  ;;  %v3840_v34 = vpop.f32.mrb[104].mxu1 }
 0x451   : > { %v5676_v14 = vadd.f32 %v5675_v38, %v5439_v43  ;;  %v5441_v12 = vmul.f32 %v5185_v10, %v5185_v10  ;;  %v5951_v61 = vpack.c.bf16 %v5185_v10, %v5183_v8  ;;  %v4419_v46 = vmax.f32 %v3840_v34, 0.0  ;;  %v3842_v15 = vpop.f32.mrb[105].mxu1  ;;  %v7460_v43 = vld [vmem:[%s8027_s29 + $0xc8] sm:$0xff] }
 0x452   : > { %v5809_v47 = vadd.f32 %v5808_v41, %v5440_v45  ;;  %v5442_v55 = vmul.f32 %v5186_v52, %v5186_v52  ;;  %v4420_v28 = vmax.f32 %v3842_v15, 0.0  ;;  %v3844_v48 = vpop.f32.mrb[106].mxu1  ;;  %v5952_v16 = vpack.c.bf16 %v5186_v52, %v5184_v9 }
 0x453   : > { %v5677_v51 = vadd.f32 %v5676_v14, %v5441_v12  ;;  %v4675_v23 = vmul.f32 0.4, %v4419_v46  ;;  %v4421_v30 = vmax.f32 %v3844_v48, 0.0  ;;  %v3846_v19 = vpop.f32.mrb[107].mxu1  ;;  %v456_v10 = vunpack.c.l.bf16 %v7460_v43  ;;  %v7461_v48 = vld [vmem:[%s8027_s29 + $0xd0] sm:$0xff] }
 0x454   : > { %v5810_v20 = vadd.f32 %v5809_v47, %v5442_v55  ;;  %v4676_v63 = vmul.f32 0.4, %v4420_v28  ;;  %v4422_v21 = vmax.f32 %v3846_v19, 0.0  ;;  %6107 = vmatprep.subr.bf16.mxu0 %v5952_v16  ;;  %v4938_v52 = vmul.f32 0.6, %v453_v60 }
 0x455   : > { %v5187_v22 = vadd.f32 %v4931_v42, %v4675_v23  ;;  %v4677_v3 = vmul.f32 0.4, %v4421_v30  ;;  %4109 = vmatmul.mubr.bf16.gmra.mrb[212].mxu1 %v7344_v62  ;;  %6108 = vmatpush1.bf16.msra.mxu0 %v5951_v61  ;;  %v4939_v14 = vmul.f32 0.6, %v454_v18  ;;  %v4940_v12 = vmul.f32 0.6, %v455_v0 }
 0x456   : > { %v5188_v32 = vadd.f32 %v4932_v26, %v4676_v63  ;;  %v4678_v1 = vmul.f32 0.4, %v4422_v21  ;;  %4118 = vmatprep.mubr.bf16.mxu1 %v7345_v29  ;;  %v4941_v15 = vmul.f32 0.6, %v456_v10  ;;  %v457_v62 = vunpack.c.h.bf16 %v7460_v43  ;;  %v7353_v10 = vld [vmem:[#allocation7 + $0x280] ss:$8 sps:$4 sm:$0xff]  }
 0x457   : > { %v5443_v36 = vmul.f32 %v5187_v22, %v5187_v22  ;;  %v5189_v2 = vadd.f32 %v4933_v44, %v4677_v3  ;;  %v458_v16 = vunpack.c.l.bf16 %v7461_v48  ;;  %v459_v29 = vunpack.c.h.bf16 %v7461_v48  ;;  %v7351_v3 = vld [vmem:[#allocation7 + $0x284] ss:$8 sps:$4 sm:$0xff]  }
 0x458   : > { %v5444_v5 = vmul.f32 %v5188_v32, %v5188_v32  ;;  %v5190_v54 = vadd.f32 %v4934_v50, %v4678_v1  ;;  %v3850_v17 = vpop.f32.mrb[108].mxu1 }
 0x459   : > { %v5678_v38 = vadd.f32 %v5677_v51, %v5443_v36  ;;  %v5445_v24 = vmul.f32 %v5189_v2, %v5189_v2  ;;  %v5953_v39 = vpack.c.bf16 %v5189_v2, %v5187_v22  ;;  %v4423_v59 = vmax.f32 %v3850_v17, 0.0  ;;  %v3852_v40 = vpop.f32.mrb[109].mxu1  ;;  %v7462_v36 = vld [vmem:[%s8027_s29 + $0xd8] sm:$0xff] }
 0x45a   : > { %v5811_v41 = vadd.f32 %v5810_v20, %v5444_v5  ;;  %v5446_v4 = vmul.f32 %v5190_v54, %v5190_v54  ;;  %v4424_v7 = vmax.f32 %v3852_v40, 0.0  ;;  %v3854_v56 = vpop.f32.mrb[110].mxu1  ;;  %v5954_v8 = vpack.c.bf16 %v5190_v54, %v5188_v32 }
 0x45b   : > { %v5679_v9 = vadd.f32 %v5678_v38, %v5445_v24  ;;  %v4679_v57 = vmul.f32 0.4, %v4423_v59  ;;  %v4425_v42 = vmax.f32 %v3854_v56, 0.0  ;;  %v3856_v26 = vpop.f32.mrb[111].mxu1  ;;  %v460_v2 = vunpack.c.l.bf16 %v7462_v36  ;;  %v7463_v56 = vld [vmem:[%s8027_s29 + $0xe0] sm:$0xff] }
 0x45c   : > { %v5812_v44 = vadd.f32 %v5811_v41, %v5446_v4  ;;  %v4680_v27 = vmul.f32 0.4, %v4424_v7  ;;  %v4426_v45 = vmax.f32 %v3856_v26, 0.0  ;;  %6109 = vmatprep.subr.bf16.mxu0 %v5954_v8  ;;  %v4942_v54 = vmul.f32 0.6, %v457_v62 }
 0x45d   : > { %v5191_v34 = vadd.f32 %v4935_v33, %v4679_v57  ;;  %v4681_v13 = vmul.f32 0.4, %v4425_v42  ;;  %4119 = vmatmul.mubr.bf16.gmra.mrb[216].mxu1 %v7347_v25  ;;  %6110 = vmatpush1.bf16.msra.mxu0 %v5953_v39  ;;  %v4943_v38 = vmul.f32 0.6, %v458_v16  ;;  %v4944_v24 = vmul.f32 0.6, %v459_v29 }
 0x45e   : > { %v5192_v35 = vadd.f32 %v4936_v53, %v4680_v27  ;;  %v4682_v58 = vmul.f32 0.4, %v4426_v45  ;;  %4128 = vmatprep.mubr.bf16.mxu1 %v7348_v11  ;;  %v4945_v40 = vmul.f32 0.6, %v460_v2  ;;  %v461_v25 = vunpack.c.h.bf16 %v7462_v36  ;;  %v7356_v2 = vld [vmem:[#allocation7 + $0x290] ss:$8 sps:$4 sm:$0xff]  }
 0x45f   : > { %v5447_v61 = vmul.f32 %v5191_v34, %v5191_v34  ;;  %v5193_v46 = vadd.f32 %v4937_v37, %v4681_v13  ;;  %v462_v8 = vunpack.c.l.bf16 %v7463_v56  ;;  %v463_v11 = vunpack.c.h.bf16 %v7463_v56  ;;  %v7354_v13 = vld [vmem:[#allocation7 + $0x294] ss:$8 sps:$4 sm:$0xff]  }
 0x460   : > { %v5448_v47 = vmul.f32 %v5192_v35, %v5192_v35  ;;  %v5194_v55 = vadd.f32 %v4938_v52, %v4682_v58  ;;  %v3860_v28 = vpop.f32.mrb[112].mxu1 }
 0x461   : > { %v5680_v51 = vadd.f32 %v5679_v9, %v5447_v61  ;;  %v5449_v23 = vmul.f32 %v5193_v46, %v5193_v46  ;;  %v5955_v30 = vpack.c.bf16 %v5193_v46, %v5191_v34  ;;  %v4427_v19 = vmax.f32 %v3860_v28, 0.0  ;;  %v3862_v31 = vpop.f32.mrb[113].mxu1  ;;  %v7464_v61 = vld [vmem:[%s8027_s29 + $0xe8] sm:$0xff] }
 0x462   : > { %v5813_v20 = vadd.f32 %v5812_v44, %v5448_v47  ;;  %v5450_v63 = vmul.f32 %v5194_v55, %v5194_v55  ;;  %v4428_v21 = vmax.f32 %v3862_v31, 0.0  ;;  %v3864_v50 = vpop.f32.mrb[114].mxu1  ;;  %v5956_v22 = vpack.c.bf16 %v5194_v55, %v5192_v35 }
 0x463   : > { %v5681_v32 = vadd.f32 %v5680_v51, %v5449_v23  ;;  %v4683_v1 = vmul.f32 0.4, %v4427_v19  ;;  %v4429_v33 = vmax.f32 %v3864_v50, 0.0  ;;  %v3866_v53 = vpop.f32.mrb[115].mxu1  ;;  %v464_v46 = vunpack.c.l.bf16 %v7464_v61  ;;  %v7465_v50 = vld [vmem:[%s8027_s29 + $0xf0] sm:$0xff] }
 0x464   : > { %v5814_v37 = vadd.f32 %v5813_v20, %v5450_v63  ;;  %v4684_v60 = vmul.f32 0.4, %v4428_v21  ;;  %v4430_v5 = vmax.f32 %v3866_v53, 0.0  ;;  %6111 = vmatprep.subr.bf16.mxu0 %v5956_v22  ;;  %v4946_v55 = vmul.f32 0.6, %v461_v25 }
 0x465   : > { %v5195_v17 = vadd.f32 %v4939_v14, %v4683_v1  ;;  %v4685_v6 = vmul.f32 0.4, %v4429_v33  ;;  %4129 = vmatmul.mubr.bf16.gmra.mrb[220].mxu1 %v7350_v49  ;;  %6112 = vmatpush1.bf16.msra.mxu0 %v5955_v30  ;;  %v4947_v51 = vmul.f32 0.6, %v462_v8  ;;  %v4948_v23 = vmul.f32 0.6, %v463_v11 }
 0x466   : > { %v5196_v18 = vadd.f32 %v4940_v12, %v4684_v60  ;;  %v4686_v0 = vmul.f32 0.4, %v4430_v5  ;;  %4138 = vmatprep.mubr.bf16.mxu1 %v7351_v3  ;;  %v4949_v31 = vmul.f32 0.6, %v464_v46  ;;  %v465_v49 = vunpack.c.h.bf16 %v7464_v61 }
 0x467   : > { %v5451_v39 = vmul.f32 %v5195_v17, %v5195_v17  ;;  %v5197_v59 = vadd.f32 %v4941_v15, %v4685_v6  ;;  %v466_v22 = vunpack.c.l.bf16 %v7465_v50  ;;  %v467_v3 = vunpack.c.h.bf16 %v7465_v50  ;;  %v7357_v6 = vld [vmem:[#allocation7 + $0x2a4] ss:$8 sps:$4 sm:$0xff]  }
 0x468   : > { %v5452_v41 = vmul.f32 %v5196_v18, %v5196_v18  ;;  %v5198_v4 = vadd.f32 %v4942_v54, %v4686_v0  ;;  %v3870_v7 = vpop.f32.mrb[116].mxu1 }
 0x469   : > { %v5682_v9 = vadd.f32 %v5681_v32, %v5451_v39  ;;  %v5453_v57 = vmul.f32 %v5197_v59, %v5197_v59  ;;  %v5957_v42 = vpack.c.bf16 %v5197_v59, %v5195_v17  ;;  %v4431_v26 = vmax.f32 %v3870_v7, 0.0  ;;  %v3872_v43 = vpop.f32.mrb[117].mxu1  ;;  %v7466_v39 = vld [vmem:[%s8027_s29 + $0xf8] sm:$0xff] }
 0x46a   : > { %v5815_v44 = vadd.f32 %v5814_v37, %v5452_v41  ;;  %v5454_v27 = vmul.f32 %v5198_v4, %v5198_v4  ;;  %v4432_v45 = vmax.f32 %v3872_v43, 0.0  ;;  %v3874_v52 = vpop.f32.mrb[118].mxu1  ;;  %v5958_v34 = vpack.c.bf16 %v5198_v4, %v5196_v18 }
 0x46b   : > { %v5683_v35 = vadd.f32 %v5682_v9, %v5453_v57  ;;  %v4687_v58 = vmul.f32 0.4, %v4431_v26  ;;  %v4433_v14 = vmax.f32 %v3874_v52, 0.0  ;;  %v3876_v12 = vpop.f32.mrb[119].mxu1  ;;  %v468_v59 = vunpack.c.l.bf16 %v7466_v39 }
 0x46c   : > { %v5816_v15 = vadd.f32 %v5815_v44, %v5454_v27  ;;  %v4688_v62 = vmul.f32 0.4, %v4432_v45  ;;  %v4434_v47 = vmax.f32 %v3876_v12, 0.0  ;;  %6113 = vmatprep.subr.bf16.mxu0 %v5958_v34  ;;  %v4950_v4 = vmul.f32 0.6, %v465_v49  ;;  %v7467_v44 = vld [vmem:[%s8027_s29 + $0x100] sm:$0xff] }
 0x46d   : > { %v5199_v28 = vadd.f32 %v4943_v38, %v4687_v58  ;;  %v4689_v48 = vmul.f32 0.4, %v4433_v14  ;;  %4139 = vmatmul.mubr.bf16.gmra.mrb[224].mxu1 %v7353_v10  ;;  %6114 = vmatpush1.bf16.msra.mxu0 %v5957_v42  ;;  %v4951_v8 = vmul.f32 0.6, %v466_v22  ;;  %v4952_v57 = vmul.f32 0.6, %v467_v3 }
 0x46e   : > { %v5200_v16 = vadd.f32 %v4944_v24, %v4688_v62  ;;  %v4690_v29 = vmul.f32 0.4, %v4434_v47  ;;  %4148 = vmatprep.mubr.bf16.mxu1 %v7354_v13  ;;  %v469_v42 = vunpack.c.h.bf16 %v7466_v39  ;;  %v4953_v10 = vmul.f32 0.6, %v468_v59  ;;  %v7359_v62 = vld [vmem:[#allocation7 + $0x2a0] ss:$8 sps:$4 sm:$0xff]  }
 0x46f   : > { %v5455_v30 = vmul.f32 %v5199_v28, %v5199_v28  ;;  %v5201_v19 = vadd.f32 %v4945_v40, %v4689_v48  ;;  %v470_v27 = vunpack.c.l.bf16 %v7467_v44  ;;  %v471_v13 = vunpack.c.h.bf16 %v7467_v44 }
 0x470   : > { %v5456_v20 = vmul.f32 %v5200_v16, %v5200_v16  ;;  %v5202_v63 = vadd.f32 %v4946_v55, %v4690_v29  ;;  %v3880_v21 = vpop.f32.mrb[120].mxu1  ;;  %v7360_v29 = vld [vmem:[#allocation7 + $0x2b4] ss:$8 sps:$4 sm:$0xff]  }
 0x471   : > { %v5684_v32 = vadd.f32 %v5683_v35, %v5455_v30  ;;  %v5457_v1 = vmul.f32 %v5201_v19, %v5201_v19  ;;  %v5959_v33 = vpack.c.bf16 %v5201_v19, %v5199_v28  ;;  %v4435_v53 = vmax.f32 %v3880_v21, 0.0  ;;  %v3882_v36 = vpop.f32.mrb[121].mxu1  ;;  %v7468_v35 = vld [vmem:[%s8027_s29 + $0x108] sm:$0xff] }
 0x472   : > { %v5817_v37 = vadd.f32 %v5816_v15, %v5456_v20  ;;  %v5458_v60 = vmul.f32 %v5202_v63, %v5202_v63  ;;  %v4436_v5 = vmax.f32 %v3882_v36, 0.0  ;;  %v3884_v54 = vpop.f32.mrb[122].mxu1  ;;  %v5960_v17 = vpack.c.bf16 %v5202_v63, %v5200_v16 }
 0x473   : > { %v5685_v18 = vadd.f32 %v5684_v32, %v5457_v1  ;;  %v4691_v0 = vmul.f32 0.4, %v4435_v53  ;;  %v4437_v38 = vmax.f32 %v3884_v54, 0.0  ;;  %v3886_v24 = vpop.f32.mrb[123].mxu1  ;;  %v472_v58 = vunpack.c.l.bf16 %v7468_v35 }
 0x474   : > { %v5818_v40 = vadd.f32 %v5817_v37, %v5458_v60  ;;  %v4692_v25 = vmul.f32 0.4, %v4436_v5  ;;  %v4438_v41 = vmax.f32 %v3886_v24, 0.0  ;;  %6115 = vmatprep.subr.bf16.mxu0 %v5960_v17  ;;  %v4954_v21 = vmul.f32 0.6, %v469_v42  ;;  %v7469_v17 = vld [vmem:[%s8027_s29 + $0x110] sm:$0xff] }
 0x475   : > { %v5203_v7 = vadd.f32 %v4947_v51, %v4691_v0  ;;  %v4693_v56 = vmul.f32 0.4, %v4437_v38  ;;  %4149 = vmatmul.mubr.bf16.gmra.mrb[228].mxu1 %v7356_v2  ;;  %6116 = vmatpush1.bf16.msra.mxu0 %v5959_v33  ;;  %v4955_v1 = vmul.f32 0.6, %v470_v27  ;;  %v4956_v33 = vmul.f32 0.6, %v471_v13 }
 0x476   : > { %v5204_v11 = vadd.f32 %v4948_v23, %v4692_v25  ;;  %v4694_v9 = vmul.f32 0.4, %v4438_v41  ;;  %4158 = vmatprep.mubr.bf16.mxu1 %v7357_v6  ;;  %v4957_v2 = vmul.f32 0.6, %v472_v58  ;;  %v474_v6 = vunpack.c.l.bf16 %v7469_v17 }
 0x477   : > { %v5459_v26 = vmul.f32 %v5203_v7, %v5203_v7  ;;  %v5205_v43 = vadd.f32 %v4949_v31, %v4693_v56  ;;  %v473_v31 = vunpack.c.h.bf16 %v7468_v35 }
 0x478   : > { %v5460_v45 = vmul.f32 %v5204_v11, %v5204_v11  ;;  %v5206_v52 = vadd.f32 %v4950_v4, %v4694_v9  ;;  %v3890_v34 = vpop.f32.mrb[124].mxu1 }
 0x479   : > { %v5686_v14 = vadd.f32 %v5685_v18, %v5459_v26  ;;  %v5461_v12 = vmul.f32 %v5205_v43, %v5205_v43  ;;  %v5961_v61 = vpack.c.bf16 %v5205_v43, %v5203_v7  ;;  %v4439_v46 = vmax.f32 %v3890_v34, 0.0  ;;  %v3892_v15 = vpop.f32.mrb[125].mxu1  ;;  %v7470_v26 = vld [vmem:[%s8027_s29 + $0x118] sm:$0xff] }
 0x47a   : > { %v5819_v47 = vadd.f32 %v5818_v40, %v5460_v45  ;;  %v5462_v55 = vmul.f32 %v5206_v52, %v5206_v52  ;;  %v4440_v28 = vmax.f32 %v3892_v15, 0.0  ;;  %v3894_v48 = vpop.f32.mrb[126].mxu1  ;;  %v5962_v16 = vpack.c.bf16 %v5206_v52, %v5204_v11  ;;  %v7362_v40 = vld [vmem:[#allocation7 + $0x2b0] ss:$8 sps:$4 sm:$0xff]   ;;  %v7471_v45 = vld [vmem:[#allocation8] sm:$0xff] }
 0x47b   : > { %v5687_v51 = vadd.f32 %v5686_v14, %v5461_v12  ;;  %v4695_v23 = vmul.f32 0.4, %v4439_v46  ;;  %v4441_v30 = vmax.f32 %v3894_v48, 0.0  ;;  %v3896_v19 = vpop.f32.mrb[127].mxu1  ;;  %v4958_v37 = vmul.f32 0.6, %v473_v31 }
 0x47c   : > { %v5820_v49 = vadd.f32 %v5819_v47, %v5462_v55  ;;  %v4696_v20 = vmul.f32 0.4, %v4440_v28  ;;  %v4442_v63 = vmax.f32 %v3896_v19, 0.0  ;;  %6117 = vmatprep.subr.bf16.mxu0 %v5962_v16  ;;  %v475_v18 = vunpack.c.h.bf16 %v7469_v17  ;;  %v7472_v48 = vld [vmem:[%s8027_s29 + $0x120] sm:$0xff] }
 0x47d   : > { %v5207_v50 = vadd.f32 %v4951_v8, %v4695_v23  ;;  %v4697_v22 = vmul.f32 0.4, %v4441_v30  ;;  %4159 = vmatmul.mubr.bf16.gmra.mrb[232].mxu1 %v7359_v62  ;;  %6118 = vmatpush1.bf16.msra.mxu0 %v5961_v61  ;;  %v7363_v8 = vld [vmem:[#allocation7 + $0x2c4] ss:$8 sps:$4 sm:$0xff]   ;;  %v476_v43 = vunpack.c.l.bf16 %v7470_v26  ;;  %v6787_v52 = vcombine.low %v7471_v45, %v7471_v45 }
 0x47e   : > { %v5208_v3 = vadd.f32 %v4952_v57, %v4696_v20  ;;  %v4698_v32 = vmul.f32 0.4, %v4442_v63  ;;  %4168 = vmatprep.mubr.bf16.mxu1 %v7360_v29  ;;  %v4959_v14 = vmul.f32 0.6, %v474_v6  ;;  %v4960_v12 = vmul.f32 0.6, %v475_v18 }
 0x47f   : > { %v5463_v53 = vmul.f32 %v5207_v50, %v5207_v50  ;;  %v5209_v36 = vadd.f32 %v4953_v10, %v4697_v22  ;;  %v4961_v15 = vmul.f32 0.6, %v476_v43  ;;  %v477_v62 = vunpack.c.h.bf16 %v7470_v26 }
 0x480   : > { %v5464_v60 = vmul.f32 %v5208_v3, %v5208_v3  ;;  %v5210_v5 = vadd.f32 %v4954_v21, %v4698_v32  ;;  %v3900_v54 = vpop.f32.mrb[128].mxu1  ;;  %v478_v16 = vunpack.c.l.bf16 %v7472_v48  ;;  %v479_v29 = vunpack.c.h.bf16 %v7472_v48 }
 0x481   : > { %v5688_v0 = vadd.f32 %v5687_v51, %v5463_v53  ;;  %v5465_v38 = vmul.f32 %v5209_v36, %v5209_v36  ;;  %v5963_v24 = vpack.c.bf16 %v5209_v36, %v5207_v50  ;;  %v4443_v39 = vmax.f32 %v3900_v54, 0.0  ;;  %v3902_v59 = vpop.f32.mrb[129].mxu1  ;;  %v7473_v36 = vld [vmem:[%s8027_s29 + $0x128] sm:$0xff] }
 0x482   : > { %v5821_v25 = vadd.f32 %v5820_v49, %v5464_v60  ;;  %v5466_v41 = vmul.f32 %v5210_v5, %v5210_v5  ;;  %v4444_v4 = vmax.f32 %v3902_v59, 0.0  ;;  %v3904_v7 = vpop.f32.mrb[130].mxu1  ;;  %v5964_v56 = vpack.c.bf16 %v5210_v5, %v5208_v3  ;;  %v7365_v49 = vld [vmem:[#allocation7 + $0x2c0] ss:$8 sps:$4 sm:$0xff]   ;;  %v7368_v3 = vld [vmem:[#allocation7 + $0x2d4] ss:$8 sps:$4 sm:$0xff]  }
 0x483   : > { %v5689_v11 = vadd.f32 %v5688_v0, %v5465_v38  ;;  %v4699_v9 = vmul.f32 0.4, %v4443_v39  ;;  %v4445_v57 = vmax.f32 %v3904_v7, 0.0  ;;  %v3906_v42 = vpop.f32.mrb[131].mxu1  ;;  %v4962_v54 = vmul.f32 0.6, %v477_v62 }
 0x484   : > { %v5822_v10 = vadd.f32 %v5821_v25, %v5466_v41  ;;  %v4700_v44 = vmul.f32 0.4, %v4444_v4  ;;  %v4446_v27 = vmax.f32 %v3906_v42, 0.0  ;;  %6119 = vmatprep.subr.bf16.mxu0 %v5964_v56  ;;  %v4963_v18 = vmul.f32 0.6, %v478_v16  ;;  %v5930_v0 = vld [vmem:[#allocation8 + $0x8] sm:$0xff] }
 0x485   : > { %v5211_v34 = vadd.f32 %v4955_v1, %v4699_v9  ;;  %v4701_v13 = vmul.f32 0.4, %v4445_v57  ;;  %4169 = vmatmul.mubr.bf16.gmra.mrb[236].mxu1 %v7362_v40  ;;  %6120 = vmatpush1.bf16.msra.mxu0 %v5963_v24  ;;  %v4964_v39 = vmul.f32 0.6, %v479_v29  ;;  %v481_v59 = vunpack.c.h.bf16 %v7473_v36  ;;  %v7474_v4 = vld [vmem:[%s8027_s29 + $0x130] sm:$0xff] }
 0x486   : > { %v5212_v35 = vadd.f32 %v4956_v33, %v4700_v44  ;;  %v4702_v58 = vmul.f32 0.4, %v4446_v27  ;;  %4178 = vmatprep.mubr.bf16.mxu1 %v7363_v8  ;;  %v482_v7 = vunpack.c.l.bf16 %v7474_v4  ;;  %v483_v9 = vunpack.c.h.bf16 %v7474_v4  ;;  %v7370_v27 = vld [vmem:[#allocation7 + $0x2d0] ss:$8 sps:$4 sm:$0xff]  }
 0x487   : > { %v5467_v61 = vmul.f32 %v5211_v34, %v5211_v34  ;;  %v5213_v46 = vadd.f32 %v4957_v2, %v4701_v13  ;;  %v480_v2 = vunpack.c.l.bf16 %v7473_v36  ;;  %v6790_v57 = vcombine.high %v5930_v0, %v5930_v0  ;;  %v7374_v0 = vld [vmem:[#allocation7 + $0x2f4] ss:$8 sps:$4 sm:$0xff]  }
 0x488   : > { %v5468_v47 = vmul.f32 %v5212_v35, %v5212_v35  ;;  %v5214_v55 = vadd.f32 %v4958_v37, %v4702_v58  ;;  %v3910_v28 = vpop.f32.mrb[132].mxu1  ;;  %6122 = vmatmul.mubr.bf16.vlgmr.msra.gmra.mrb[64].mxu0 %v6787_v52  ;;  %v7371_v58 = vld [vmem:[#allocation7 + $0x2e4] ss:$8 sps:$4 sm:$0xff]   ;;  %v4966_v48 = vmul.f32 0.6, %v481_v59 }
 0x489   : > { %v5690_v51 = vadd.f32 %v5689_v11, %v5467_v61  ;;  %v5469_v23 = vmul.f32 %v5213_v46, %v5213_v46  ;;  %v5965_v30 = vpack.c.bf16 %v5213_v46, %v5211_v34  ;;  %v4447_v19 = vmax.f32 %v3910_v28, 0.0  ;;  %v3912_v31 = vpop.f32.mrb[133].mxu1  ;;  %6162 = vmatprep.mubr.bf16.mxu0 %v6790_v57 }
 0x48a   : > { %v5823_v20 = vadd.f32 %v5822_v10, %v5468_v47  ;;  %v5470_v63 = vmul.f32 %v5214_v55, %v5214_v55  ;;  %v4448_v21 = vmax.f32 %v3912_v31, 0.0  ;;  %v3914_v50 = vpop.f32.mrb[134].mxu1  ;;  %v5966_v22 = vpack.c.bf16 %v5214_v55, %v5212_v35 }
 0x48b   : > { %v5691_v32 = vadd.f32 %v5690_v51, %v5469_v23  ;;  %v4703_v1 = vmul.f32 0.4, %v4447_v19  ;;  %v4449_v33 = vmax.f32 %v3914_v50, 0.0  ;;  %v3916_v53 = vpop.f32.mrb[135].mxu1  ;;  %v4965_v41 = vmul.f32 0.6, %v480_v2 }
 0x48c   : > { %v5824_v37 = vadd.f32 %v5823_v20, %v5470_v63  ;;  %v4704_v60 = vmul.f32 0.4, %v4448_v21  ;;  %v4450_v5 = vmax.f32 %v3916_v53, 0.0  ;;  %6130 = vmatprep.subr.bf16.mxu0 %v5966_v22  ;;  %v4968_v19 = vmul.f32 0.6, %v483_v9 }
 0x48d   : > { %v5215_v17 = vadd.f32 %v4959_v14, %v4703_v1  ;;  %v4705_v6 = vmul.f32 0.4, %v4449_v33  ;;  %4179 = vmatmul.mubr.bf16.gmra.mrb[240].mxu1 %v7365_v49  ;;  %6131 = vmatpush1.bf16.msra.mxu0 %v5965_v30  ;;  %v4967_v30 = vmul.f32 0.6, %v482_v7 }
 0x48e   : > { %v5216_v38 = vadd.f32 %v4960_v12, %v4704_v60  ;;  %v4706_v24 = vmul.f32 0.4, %v4450_v5  ;;  %4188 = vmatprep.mubr.bf16.mxu1 %v7368_v3  ;;  %v7476_v3 = vld [vmem:[%s8027_s29 + $0x140] sm:$0xff] }
 0x48f   : > { %v5471_v40 = vmul.f32 %v5215_v17, %v5215_v17  ;;  %v5217_v25 = vadd.f32 %v4961_v15, %v4705_v6  ;;  %v7475_v15 = vld [vmem:[%s8027_s29 + $0x138] sm:$0xff]  ;;  %v487_v1 = vunpack.c.h.bf16 %v7476_v3  ;;  %v7373_v60 = vld [vmem:[#allocation7 + $0x2e0] ss:$8 sps:$4 sm:$0xff]  }
 0x490   : > { %v5472_v56 = vmul.f32 %v5216_v38, %v5216_v38  ;;  %v5218_v8 = vadd.f32 %v4962_v54, %v4706_v24  ;;  %v3920_v11 = vpop.f32.mrb[136].mxu1  ;;  %v484_v62 = vunpack.c.l.bf16 %v7475_v15  ;;  %v485_v63 = vunpack.c.h.bf16 %v7475_v15 }
 0x491   : > { %v5692_v42 = vadd.f32 %v5691_v32, %v5471_v40  ;;  %v5473_v26 = vmul.f32 %v5217_v25, %v5217_v25  ;;  %v5967_v43 = vpack.c.bf16 %v5217_v25, %v5215_v17  ;;  %v4451_v10 = vmax.f32 %v3920_v11, 0.0  ;;  %v3922_v44 = vpop.f32.mrb[137].mxu1  ;;  %v7477_v40 = vld [vmem:[%s8027_s29 + $0x148] sm:$0xff] }
 0x492   : > { %v5825_v45 = vadd.f32 %v5824_v37, %v5472_v56  ;;  %v5474_v52 = vmul.f32 %v5218_v8, %v5218_v8  ;;  %v4452_v34 = vmax.f32 %v3922_v44, 0.0  ;;  %v3924_v13 = vpop.f32.mrb[138].mxu1  ;;  %v5968_v35 = vpack.c.bf16 %v5218_v8, %v5216_v38 }
 0x493   : > { %v5693_v14 = vadd.f32 %v5692_v42, %v5473_v26  ;;  %v4707_v12 = vmul.f32 0.4, %v4451_v10  ;;  %v4453_v61 = vmax.f32 %v3924_v13, 0.0  ;;  %v3926_v46 = vpop.f32.mrb[139].mxu1  ;;  %v4969_v20 = vmul.f32 0.6, %v484_v62 }
 0x494   : > { %v5826_v47 = vadd.f32 %v5825_v45, %v5474_v52  ;;  %v4708_v55 = vmul.f32 0.4, %v4452_v34  ;;  %v4454_v28 = vmax.f32 %v3926_v46, 0.0  ;;  %6132 = vmatprep.subr.bf16.mxu0 %v5968_v35  ;;  %v486_v32 = vunpack.c.l.bf16 %v7476_v3  ;;  %v7478_v13 = vld [vmem:[%s8027_s29 + $0x150] sm:$0xff] }
 0x495   : > { %v5219_v16 = vadd.f32 %v4963_v18, %v4707_v12  ;;  %v4709_v29 = vmul.f32 0.4, %v4453_v61  ;;  %4189 = vmatmul.mubr.bf16.gmra.mrb[244].mxu1 %v7370_v27  ;;  %6133 = vmatpush1.bf16.msra.mxu0 %v5967_v43  ;;  %v488_v25 = vunpack.c.l.bf16 %v7477_v40  ;;  %v4970_v56 = vmul.f32 0.6, %v485_v63  ;;  %v7376_v62 = vld [vmem:[#allocation7 + $0x2f0] ss:$8 sps:$4 sm:$0xff]  }
 0x496   : > { %v5220_v51 = vadd.f32 %v4964_v39, %v4708_v55  ;;  %v4710_v23 = vmul.f32 0.4, %v4454_v28  ;;  %4198 = vmatprep.mubr.bf16.mxu1 %v7371_v58  ;;  %v4971_v42 = vmul.f32 0.6, %v486_v32  ;;  %v4972_v26 = vmul.f32 0.6, %v487_v1 }
 0x497   : > { %v5475_v31 = vmul.f32 %v5219_v16, %v5219_v16  ;;  %v5221_v49 = vadd.f32 %v4965_v41, %v4709_v29  ;;  %v4973_v44 = vmul.f32 0.6, %v488_v25  ;;  %v489_v27 = vunpack.c.h.bf16 %v7477_v40  ;;  %v7379_v29 = vld [vmem:[#allocation7 + $0x304] ss:$8 sps:$4 sm:$0xff]   ;;  %v7377_v25 = vld [vmem:[#allocation7 + $0x300] ss:$8 sps:$4 sm:$0xff]  }
 0x498   : > { %v5476_v21 = vmul.f32 %v5220_v51, %v5220_v51  ;;  %v5222_v50 = vadd.f32 %v4966_v48, %v4710_v23  ;;  %v3930_v22 = vpop.f32.mrb[140].mxu1  ;;  %v490_v35 = vunpack.c.l.bf16 %v7478_v13  ;;  %v491_v58 = vunpack.c.h.bf16 %v7478_v13 }
 0x499   : > { %v5694_v33 = vadd.f32 %v5693_v14, %v5475_v31  ;;  %v5477_v53 = vmul.f32 %v5221_v49, %v5221_v49  ;;  %v5969_v36 = vpack.c.bf16 %v5221_v49, %v5219_v16  ;;  %v4455_v2 = vmax.f32 %v3930_v22, 0.0  ;;  %v3932_v37 = vpop.f32.mrb[141].mxu1  ;;  %v7479_v31 = vld [vmem:[%s8027_s29 + $0x158] sm:$0xff] }
 0x49a   : > { %v5827_v5 = vadd.f32 %v5826_v47, %v5476_v21  ;;  %v5478_v54 = vmul.f32 %v5222_v50, %v5222_v50  ;;  %v4456_v17 = vmax.f32 %v3932_v37, 0.0  ;;  %v3934_v6 = vpop.f32.mrb[142].mxu1  ;;  %v5970_v18 = vpack.c.bf16 %v5222_v50, %v5220_v51 }
 0x49b   : > { %v5695_v38 = vadd.f32 %v5694_v33, %v5477_v53  ;;  %v4711_v24 = vmul.f32 0.4, %v4455_v2  ;;  %v4457_v39 = vmax.f32 %v3934_v6, 0.0  ;;  %v3936_v59 = vpop.f32.mrb[143].mxu1  ;;  %v492_v49 = vunpack.c.l.bf16 %v7479_v31  ;;  %v7480_v6 = vld [vmem:[%s8027_s29 + $0x160] sm:$0xff] }
 0x49c   : > { %v5828_v41 = vadd.f32 %v5827_v5, %v5478_v54  ;;  %v4712_v4 = vmul.f32 0.4, %v4456_v17  ;;  %v4458_v7 = vmax.f32 %v3936_v59, 0.0  ;;  %6134 = vmatprep.subr.bf16.mxu0 %v5970_v18  ;;  %v4974_v50 = vmul.f32 0.6, %v489_v27 }
 0x49d   : > { %v5223_v8 = vadd.f32 %v4967_v30, %v4711_v24  ;;  %v4713_v11 = vmul.f32 0.4, %v4457_v39  ;;  %4199 = vmatmul.mubr.bf16.gmra.mrb[248].mxu1 %v7373_v60  ;;  %6135 = vmatpush1.bf16.msra.mxu0 %v5969_v36  ;;  %v4975_v33 = vmul.f32 0.6, %v490_v35  ;;  %v4976_v53 = vmul.f32 0.6, %v491_v58 }
 0x49e   : > { %v5224_v9 = vadd.f32 %v4968_v19, %v4712_v4  ;;  %v4714_v57 = vmul.f32 0.4, %v4458_v7  ;;  %4208 = vmatprep.mubr.bf16.mxu1 %v7374_v0  ;;  %v4977_v37 = vmul.f32 0.6, %v492_v49  ;;  %v493_v60 = vunpack.c.h.bf16 %v7479_v31  ;;  %v7380_v49 = vld [vmem:[#allocation7 + $0x310] ss:$8 sps:$4 sm:$0xff]  }
 0x49f   : > { %v5479_v43 = vmul.f32 %v5223_v8, %v5223_v8  ;;  %v5225_v10 = vadd.f32 %v4969_v20, %v4713_v11  ;;  %v494_v18 = vunpack.c.l.bf16 %v7480_v6  ;;  %v495_v0 = vunpack.c.h.bf16 %v7480_v6  ;;  %v7382_v11 = vld [vmem:[#allocation7 + $0x314] ss:$8 sps:$4 sm:$0xff]  }
 0x4a0   : > { %v5480_v45 = vmul.f32 %v5224_v9, %v5224_v9  ;;  %v5226_v52 = vadd.f32 %v4970_v56, %v4714_v57  ;;  %v3940_v34 = vpop.f32.mrb[144].mxu1 }
 0x4a1   : > { %v5696_v14 = vadd.f32 %v5695_v38, %v5479_v43  ;;  %v5481_v12 = vmul.f32 %v5225_v10, %v5225_v10  ;;  %v5971_v61 = vpack.c.bf16 %v5225_v10, %v5223_v8  ;;  %v4459_v46 = vmax.f32 %v3940_v34, 0.0  ;;  %v3942_v15 = vpop.f32.mrb[145].mxu1  ;;  %v7481_v43 = vld [vmem:[%s8027_s29 + $0x168] sm:$0xff] }
 0x4a2   : > { %v5829_v47 = vadd.f32 %v5828_v41, %v5480_v45  ;;  %v5482_v55 = vmul.f32 %v5226_v52, %v5226_v52  ;;  %v4460_v28 = vmax.f32 %v3942_v15, 0.0  ;;  %v3944_v48 = vpop.f32.mrb[146].mxu1  ;;  %v5972_v16 = vpack.c.bf16 %v5226_v52, %v5224_v9 }
 0x4a3   : > { %v5697_v51 = vadd.f32 %v5696_v14, %v5481_v12  ;;  %v4715_v23 = vmul.f32 0.4, %v4459_v46  ;;  %v4461_v30 = vmax.f32 %v3944_v48, 0.0  ;;  %v3946_v19 = vpop.f32.mrb[147].mxu1  ;;  %v496_v10 = vunpack.c.l.bf16 %v7481_v43  ;;  %v7482_v48 = vld [vmem:[%s8027_s29 + $0x170] sm:$0xff] }
 0x4a4   : > { %v5830_v20 = vadd.f32 %v5829_v47, %v5482_v55  ;;  %v4716_v63 = vmul.f32 0.4, %v4460_v28  ;;  %v4462_v21 = vmax.f32 %v3946_v19, 0.0  ;;  %6136 = vmatprep.subr.bf16.mxu0 %v5972_v16  ;;  %v4978_v52 = vmul.f32 0.6, %v493_v60 }
 0x4a5   : > { %v5227_v22 = vadd.f32 %v4971_v42, %v4715_v23  ;;  %v4717_v3 = vmul.f32 0.4, %v4461_v30  ;;  %4209 = vmatmul.mubr.bf16.gmra.mrb[252].mxu1 %v7376_v62  ;;  %6137 = vmatpush1.bf16.msra.mxu0 %v5971_v61  ;;  %v4979_v14 = vmul.f32 0.6, %v494_v18  ;;  %v4980_v12 = vmul.f32 0.6, %v495_v0 }
 0x4a6   : > { %v5228_v32 = vadd.f32 %v4972_v26, %v4716_v63  ;;  %v4718_v1 = vmul.f32 0.4, %v4462_v21  ;;  %4218 = vmatprep.mubr.bf16.mxu1 %v7379_v29  ;;  %v4981_v15 = vmul.f32 0.6, %v496_v10  ;;  %v497_v62 = vunpack.c.h.bf16 %v7481_v43  ;;  %v7383_v10 = vld [vmem:[#allocation7 + $0x320] ss:$8 sps:$4 sm:$0xff]  }
 0x4a7   : > { %v5483_v36 = vmul.f32 %v5227_v22, %v5227_v22  ;;  %v5229_v2 = vadd.f32 %v4973_v44, %v4717_v3  ;;  %v498_v16 = vunpack.c.l.bf16 %v7482_v48  ;;  %v499_v29 = vunpack.c.h.bf16 %v7482_v48  ;;  %v7385_v3 = vld [vmem:[#allocation7 + $0x324] ss:$8 sps:$4 sm:$0xff]  }
 0x4a8   : > { %v5484_v5 = vmul.f32 %v5228_v32, %v5228_v32  ;;  %v5230_v54 = vadd.f32 %v4974_v50, %v4718_v1  ;;  %v3950_v17 = vpop.f32.mrb[148].mxu1 }
 0x4a9   : > { %v5698_v38 = vadd.f32 %v5697_v51, %v5483_v36  ;;  %v5485_v24 = vmul.f32 %v5229_v2, %v5229_v2  ;;  %v5973_v39 = vpack.c.bf16 %v5229_v2, %v5227_v22  ;;  %v4463_v59 = vmax.f32 %v3950_v17, 0.0  ;;  %v3952_v40 = vpop.f32.mrb[149].mxu1  ;;  %v7483_v36 = vld [vmem:[%s8027_s29 + $0x178] sm:$0xff] }
 0x4aa   : > { %v5831_v41 = vadd.f32 %v5830_v20, %v5484_v5  ;;  %v5486_v4 = vmul.f32 %v5230_v54, %v5230_v54  ;;  %v4464_v7 = vmax.f32 %v3952_v40, 0.0  ;;  %v3954_v56 = vpop.f32.mrb[150].mxu1  ;;  %v5974_v8 = vpack.c.bf16 %v5230_v54, %v5228_v32 }
 0x4ab   : > { %v5699_v9 = vadd.f32 %v5698_v38, %v5485_v24  ;;  %v4719_v57 = vmul.f32 0.4, %v4463_v59  ;;  %v4465_v42 = vmax.f32 %v3954_v56, 0.0  ;;  %v3956_v26 = vpop.f32.mrb[151].mxu1  ;;  %v500_v2 = vunpack.c.l.bf16 %v7483_v36  ;;  %v7484_v56 = vld [vmem:[%s8027_s29 + $0x180] sm:$0xff] }
 0x4ac   : > { %v5832_v44 = vadd.f32 %v5831_v41, %v5486_v4  ;;  %v4720_v27 = vmul.f32 0.4, %v4464_v7  ;;  %v4466_v45 = vmax.f32 %v3956_v26, 0.0  ;;  %6138 = vmatprep.subr.bf16.mxu0 %v5974_v8  ;;  %v4982_v54 = vmul.f32 0.6, %v497_v62 }
 0x4ad   : > { %v5231_v34 = vadd.f32 %v4975_v33, %v4719_v57  ;;  %v4721_v13 = vmul.f32 0.4, %v4465_v42  ;;  %4219 = vmatmul.mubr.bf16.gmra.mrb[0].mxu1 %v7377_v25  ;;  %6139 = vmatpush1.bf16.msra.mxu0 %v5973_v39  ;;  %v4983_v38 = vmul.f32 0.6, %v498_v16  ;;  %v4984_v24 = vmul.f32 0.6, %v499_v29 }
 0x4ae   : > { %v5232_v35 = vadd.f32 %v4976_v53, %v4720_v27  ;;  %v4722_v58 = vmul.f32 0.4, %v4466_v45  ;;  %4228 = vmatprep.mubr.bf16.mxu1 %v7382_v11  ;;  %v4985_v40 = vmul.f32 0.6, %v500_v2  ;;  %v501_v25 = vunpack.c.h.bf16 %v7483_v36  ;;  %v7386_v2 = vld [vmem:[#allocation7 + $0x330] ss:$8 sps:$4 sm:$0xff]  }
 0x4af   : > { %v5487_v61 = vmul.f32 %v5231_v34, %v5231_v34  ;;  %v5233_v46 = vadd.f32 %v4977_v37, %v4721_v13  ;;  %v502_v8 = vunpack.c.l.bf16 %v7484_v56  ;;  %v503_v11 = vunpack.c.h.bf16 %v7484_v56  ;;  %v7388_v13 = vld [vmem:[#allocation7 + $0x334] ss:$8 sps:$4 sm:$0xff]  }
 0x4b0   : > { %v5488_v47 = vmul.f32 %v5232_v35, %v5232_v35  ;;  %v5234_v55 = vadd.f32 %v4978_v52, %v4722_v58  ;;  %v3960_v28 = vpop.f32.mrb[152].mxu1 }
 0x4b1   : > { %v5700_v51 = vadd.f32 %v5699_v9, %v5487_v61  ;;  %v5489_v23 = vmul.f32 %v5233_v46, %v5233_v46  ;;  %v5975_v30 = vpack.c.bf16 %v5233_v46, %v5231_v34  ;;  %v4467_v19 = vmax.f32 %v3960_v28, 0.0  ;;  %v3962_v31 = vpop.f32.mrb[153].mxu1  ;;  %v7485_v61 = vld [vmem:[%s8027_s29 + $0x188] sm:$0xff] }
 0x4b2   : > { %v5833_v20 = vadd.f32 %v5832_v44, %v5488_v47  ;;  %v5490_v63 = vmul.f32 %v5234_v55, %v5234_v55  ;;  %v4468_v21 = vmax.f32 %v3962_v31, 0.0  ;;  %v3964_v50 = vpop.f32.mrb[154].mxu1  ;;  %v5976_v22 = vpack.c.bf16 %v5234_v55, %v5232_v35 }
 0x4b3   : > { %v5701_v32 = vadd.f32 %v5700_v51, %v5489_v23  ;;  %v4723_v1 = vmul.f32 0.4, %v4467_v19  ;;  %v4469_v33 = vmax.f32 %v3964_v50, 0.0  ;;  %v3966_v53 = vpop.f32.mrb[155].mxu1  ;;  %v504_v46 = vunpack.c.l.bf16 %v7485_v61  ;;  %v7486_v50 = vld [vmem:[%s8027_s29 + $0x190] sm:$0xff] }
 0x4b4   : > { %v5834_v37 = vadd.f32 %v5833_v20, %v5490_v63  ;;  %v4724_v60 = vmul.f32 0.4, %v4468_v21  ;;  %v4470_v5 = vmax.f32 %v3966_v53, 0.0  ;;  %6140 = vmatprep.subr.bf16.mxu0 %v5976_v22  ;;  %v4986_v55 = vmul.f32 0.6, %v501_v25 }
 0x4b5   : > { %v5235_v17 = vadd.f32 %v4979_v14, %v4723_v1  ;;  %v4725_v6 = vmul.f32 0.4, %v4469_v33  ;;  %4229 = vmatmul.mubr.bf16.gmra.mrb[4].mxu1 %v7380_v49  ;;  %6141 = vmatpush1.bf16.msra.mxu0 %v5975_v30  ;;  %v4987_v51 = vmul.f32 0.6, %v502_v8  ;;  %v4988_v23 = vmul.f32 0.6, %v503_v11 }
 0x4b6   : > { %v5236_v18 = vadd.f32 %v4980_v12, %v4724_v60  ;;  %v4726_v0 = vmul.f32 0.4, %v4470_v5  ;;  %4238 = vmatprep.mubr.bf16.mxu1 %v7385_v3  ;;  %v4989_v31 = vmul.f32 0.6, %v504_v46  ;;  %v505_v49 = vunpack.c.h.bf16 %v7485_v61  ;;  %v7389_v46 = vld [vmem:[#allocation7 + $0x340] ss:$8 sps:$4 sm:$0xff]  }
 0x4b7   : > { %v5491_v39 = vmul.f32 %v5235_v17, %v5235_v17  ;;  %v5237_v59 = vadd.f32 %v4981_v15, %v4725_v6  ;;  %v506_v22 = vunpack.c.l.bf16 %v7486_v50  ;;  %v507_v3 = vunpack.c.h.bf16 %v7486_v50  ;;  %v7391_v6 = vld [vmem:[#allocation7 + $0x344] ss:$8 sps:$4 sm:$0xff]  }
 0x4b8   : > { %v5492_v41 = vmul.f32 %v5236_v18, %v5236_v18  ;;  %v5238_v4 = vadd.f32 %v4982_v54, %v4726_v0  ;;  %v3970_v7 = vpop.f32.mrb[156].mxu1 }
 0x4b9   : > { %v5702_v9 = vadd.f32 %v5701_v32, %v5491_v39  ;;  %v5493_v57 = vmul.f32 %v5237_v59, %v5237_v59  ;;  %v5977_v42 = vpack.c.bf16 %v5237_v59, %v5235_v17  ;;  %v4471_v26 = vmax.f32 %v3970_v7, 0.0  ;;  %v3972_v43 = vpop.f32.mrb[157].mxu1  ;;  %v7487_v39 = vld [vmem:[%s8027_s29 + $0x198] sm:$0xff] }
 0x4ba   : > { %v5835_v44 = vadd.f32 %v5834_v37, %v5492_v41  ;;  %v5494_v27 = vmul.f32 %v5238_v4, %v5238_v4  ;;  %v4472_v45 = vmax.f32 %v3972_v43, 0.0  ;;  %v3974_v52 = vpop.f32.mrb[158].mxu1  ;;  %v5978_v34 = vpack.c.bf16 %v5238_v4, %v5236_v18 }
 0x4bb   : > { %v5703_v35 = vadd.f32 %v5702_v9, %v5493_v57  ;;  %v4727_v58 = vmul.f32 0.4, %v4471_v26  ;;  %v4473_v14 = vmax.f32 %v3974_v52, 0.0  ;;  %v3976_v12 = vpop.f32.mrb[159].mxu1  ;;  %v508_v59 = vunpack.c.l.bf16 %v7487_v39  ;;  %v7488_v52 = vld [vmem:[%s8027_s29 + $0x1a0] sm:$0xff] }
 0x4bc   : > { %v5836_v15 = vadd.f32 %v5835_v44, %v5494_v27  ;;  %v4728_v62 = vmul.f32 0.4, %v4472_v45  ;;  %v4474_v47 = vmax.f32 %v3976_v12, 0.0  ;;  %6142 = vmatprep.subr.bf16.mxu0 %v5978_v34  ;;  %v4990_v4 = vmul.f32 0.6, %v505_v49 }
 0x4bd   : > { %v5239_v28 = vadd.f32 %v4983_v38, %v4727_v58  ;;  %v4729_v48 = vmul.f32 0.4, %v4473_v14  ;;  %4239 = vmatmul.mubr.bf16.gmra.mrb[8].mxu1 %v7383_v10  ;;  %6143 = vmatpush1.bf16.msra.mxu0 %v5977_v42  ;;  %v4991_v9 = vmul.f32 0.6, %v506_v22  ;;  %v4992_v57 = vmul.f32 0.6, %v507_v3 }
 0x4be   : > { %v5240_v16 = vadd.f32 %v4984_v24, %v4728_v62  ;;  %v4730_v29 = vmul.f32 0.4, %v4474_v47  ;;  %4248 = vmatprep.mubr.bf16.mxu1 %v7388_v13  ;;  %v4993_v43 = vmul.f32 0.6, %v508_v59  ;;  %v509_v10 = vunpack.c.h.bf16 %v7487_v39  ;;  %v7392_v59 = vld [vmem:[#allocation7 + $0x350] ss:$8 sps:$4 sm:$0xff]  }
 0x4bf   : > { %v5495_v30 = vmul.f32 %v5239_v28, %v5239_v28  ;;  %v5241_v19 = vadd.f32 %v4985_v40, %v4729_v48  ;;  %v510_v34 = vunpack.c.l.bf16 %v7488_v52  ;;  %v511_v13 = vunpack.c.h.bf16 %v7488_v52  ;;  %v7394_v48 = vld [vmem:[#allocation7 + $0x354] ss:$8 sps:$4 sm:$0xff]  }
 0x4c0   : > { %v5496_v20 = vmul.f32 %v5240_v16, %v5240_v16  ;;  %v5242_v63 = vadd.f32 %v4986_v55, %v4730_v29  ;;  %v3980_v21 = vpop.f32.mrb[160].mxu1 }
 0x4c1   : > { %v5704_v32 = vadd.f32 %v5703_v35, %v5495_v30  ;;  %v5497_v1 = vmul.f32 %v5241_v19, %v5241_v19  ;;  %v5979_v33 = vpack.c.bf16 %v5241_v19, %v5239_v28  ;;  %v4475_v53 = vmax.f32 %v3980_v21, 0.0  ;;  %v3982_v36 = vpop.f32.mrb[161].mxu1  ;;  %v7489_v30 = vld [vmem:[%s8027_s29 + $0x1a8] sm:$0xff] }
 0x4c2   : > { %v5837_v37 = vadd.f32 %v5836_v15, %v5496_v20  ;;  %v5498_v60 = vmul.f32 %v5242_v63, %v5242_v63  ;;  %v4476_v5 = vmax.f32 %v3982_v36, 0.0  ;;  %v3984_v54 = vpop.f32.mrb[162].mxu1  ;;  %v5980_v17 = vpack.c.bf16 %v5242_v63, %v5240_v16 }
 0x4c3   : > { %v5705_v18 = vadd.f32 %v5704_v32, %v5497_v1  ;;  %v4731_v0 = vmul.f32 0.4, %v4475_v53  ;;  %v4477_v38 = vmax.f32 %v3984_v54, 0.0  ;;  %v3986_v24 = vpop.f32.mrb[163].mxu1  ;;  %v512_v19 = vunpack.c.l.bf16 %v7489_v30  ;;  %v7490_v54 = vld [vmem:[%s8027_s29 + $0x1b0] sm:$0xff] }
 0x4c4   : > { %v5838_v40 = vadd.f32 %v5837_v37, %v5498_v60  ;;  %v4732_v25 = vmul.f32 0.4, %v4476_v5  ;;  %v4478_v41 = vmax.f32 %v3986_v24, 0.0  ;;  %6144 = vmatprep.subr.bf16.mxu0 %v5980_v17  ;;  %v4994_v63 = vmul.f32 0.6, %v509_v10 }
 0x4c5   : > { %v5243_v7 = vadd.f32 %v4987_v51, %v4731_v0  ;;  %v4733_v56 = vmul.f32 0.4, %v4477_v38  ;;  %4249 = vmatmul.mubr.bf16.gmra.mrb[12].mxu1 %v7386_v2  ;;  %6145 = vmatpush1.bf16.msra.mxu0 %v5979_v33  ;;  %v4995_v32 = vmul.f32 0.6, %v510_v34  ;;  %v4996_v1 = vmul.f32 0.6, %v511_v13 }
 0x4c6   : > { %v5244_v8 = vadd.f32 %v4988_v23, %v4732_v25  ;;  %v4734_v11 = vmul.f32 0.4, %v4478_v41  ;;  %4258 = vmatprep.mubr.bf16.mxu1 %v7391_v6  ;;  %v4997_v36 = vmul.f32 0.6, %v512_v19  ;;  %v513_v2 = vunpack.c.h.bf16 %v7489_v30  ;;  %v7395_v19 = vld [vmem:[#allocation7 + $0x360] ss:$8 sps:$4 sm:$0xff]  }
 0x4c7   : > { %v5499_v42 = vmul.f32 %v5243_v7, %v5243_v7  ;;  %v5245_v26 = vadd.f32 %v4989_v31, %v4733_v56  ;;  %v514_v17 = vunpack.c.l.bf16 %v7490_v54  ;;  %v515_v6 = vunpack.c.h.bf16 %v7490_v54  ;;  %v7397_v56 = vld [vmem:[#allocation7 + $0x364] ss:$8 sps:$4 sm:$0xff]  }
 0x4c8   : > { %v5500_v44 = vmul.f32 %v5244_v8, %v5244_v8  ;;  %v5246_v27 = vadd.f32 %v4990_v4, %v4734_v11  ;;  %v3990_v45 = vpop.f32.mrb[164].mxu1 }
 0x4c9   : > { %v5706_v35 = vadd.f32 %v5705_v18, %v5499_v42  ;;  %v5501_v58 = vmul.f32 %v5245_v26, %v5245_v26  ;;  %v5981_v14 = vpack.c.bf16 %v5245_v26, %v5243_v7  ;;  %v4479_v12 = vmax.f32 %v3990_v45, 0.0  ;;  %v3992_v61 = vpop.f32.mrb[165].mxu1  ;;  %v7491_v42 = vld [vmem:[%s8027_s29 + $0x1b8] sm:$0xff] }
 0x4ca   : > { %v5839_v15 = vadd.f32 %v5838_v40, %v5500_v44  ;;  %v5502_v62 = vmul.f32 %v5246_v27, %v5246_v27  ;;  %v4480_v47 = vmax.f32 %v3992_v61, 0.0  ;;  %v3994_v55 = vpop.f32.mrb[166].mxu1  ;;  %v5982_v28 = vpack.c.bf16 %v5246_v27, %v5244_v8 }
 0x4cb   : > { %v5707_v16 = vadd.f32 %v5706_v35, %v5501_v58  ;;  %v4735_v29 = vmul.f32 0.4, %v4479_v12  ;;  %v4481_v51 = vmax.f32 %v3994_v55, 0.0  ;;  %v3996_v23 = vpop.f32.mrb[167].mxu1  ;;  %v516_v26 = vunpack.c.l.bf16 %v7491_v42  ;;  %v7492_v55 = vld [vmem:[%s8027_s29 + $0x1c0] sm:$0xff] }
 0x4cc   : > { %v5840_v31 = vadd.f32 %v5839_v15, %v5502_v62  ;;  %v4736_v49 = vmul.f32 0.4, %v4480_v47  ;;  %v4482_v20 = vmax.f32 %v3996_v23, 0.0  ;;  %6146 = vmatprep.subr.bf16.mxu0 %v5982_v28  ;;  %v4998_v27 = vmul.f32 0.6, %v513_v2 }
 0x4cd   : > { %v5247_v21 = vadd.f32 %v4991_v9, %v4735_v29  ;;  %v4737_v50 = vmul.f32 0.4, %v4481_v51  ;;  %4259 = vmatmul.mubr.bf16.gmra.mrb[16].mxu1 %v7389_v46  ;;  %6147 = vmatpush1.bf16.msra.mxu0 %v5981_v14  ;;  %v4999_v35 = vmul.f32 0.6, %v514_v17  ;;  %v5000_v58 = vmul.f32 0.6, %v515_v6 }
 0x4ce   : > { %v5248_v22 = vadd.f32 %v4992_v57, %v4736_v49  ;;  %v4738_v3 = vmul.f32 0.4, %v4482_v20  ;;  %4268 = vmatprep.mubr.bf16.mxu1 %v7394_v48  ;;  %v5001_v61 = vmul.f32 0.6, %v516_v26  ;;  %v517_v46 = vunpack.c.h.bf16 %v7491_v42  ;;  %v7398_v26 = vld [vmem:[#allocation7 + $0x370] ss:$8 sps:$4 sm:$0xff]  }
 0x4cf   : > { %v5503_v33 = vmul.f32 %v5247_v21, %v5247_v21  ;;  %v5249_v53 = vadd.f32 %v4993_v43, %v4737_v50  ;;  %v518_v28 = vunpack.c.l.bf16 %v7492_v55  ;;  %v519_v48 = vunpack.c.h.bf16 %v7492_v55  ;;  %v7400_v50 = vld [vmem:[#allocation7 + $0x374] ss:$8 sps:$4 sm:$0xff]  }
 0x4d0   : > { %v5504_v37 = vmul.f32 %v5248_v22, %v5248_v22  ;;  %v5250_v60 = vadd.f32 %v4994_v63, %v4738_v3  ;;  %v4000_v5 = vpop.f32.mrb[168].mxu1 }
 0x4d1   : > { %v5708_v18 = vadd.f32 %v5707_v16, %v5503_v33  ;;  %v5505_v0 = vmul.f32 %v5249_v53, %v5249_v53  ;;  %v5983_v38 = vpack.c.bf16 %v5249_v53, %v5247_v21  ;;  %v4483_v24 = vmax.f32 %v4000_v5, 0.0  ;;  %v4002_v39 = vpop.f32.mrb[169].mxu1  ;;  %v7493_v33 = vld [vmem:[%s8027_s29 + $0x1c8] sm:$0xff] }
 0x4d2   : > { %v5841_v40 = vadd.f32 %v5840_v31, %v5504_v37  ;;  %v5506_v25 = vmul.f32 %v5250_v60, %v5250_v60  ;;  %v4484_v41 = vmax.f32 %v4002_v39, 0.0  ;;  %v4004_v4 = vpop.f32.mrb[170].mxu1  ;;  %v5984_v7 = vpack.c.bf16 %v5250_v60, %v5248_v22 }
 0x4d3   : > { %v5709_v8 = vadd.f32 %v5708_v18, %v5505_v0  ;;  %v4739_v11 = vmul.f32 0.4, %v4483_v24  ;;  %v4485_v9 = vmax.f32 %v4004_v4, 0.0  ;;  %v4006_v57 = vpop.f32.mrb[171].mxu1  ;;  %v520_v53 = vunpack.c.l.bf16 %v7493_v33  ;;  %v7494_v4 = vld [vmem:[%s8027_s29 + $0x1d0] sm:$0xff] }
 0x4d4   : > { %v5842_v43 = vadd.f32 %v5841_v40, %v5506_v25  ;;  %v4740_v10 = vmul.f32 0.4, %v4484_v41  ;;  %v4486_v44 = vmax.f32 %v4006_v57, 0.0  ;;  %6148 = vmatprep.subr.bf16.mxu0 %v5984_v7  ;;  %v5002_v60 = vmul.f32 0.6, %v517_v46 }
 0x4d5   : > { %v5251_v45 = vadd.f32 %v4995_v32, %v4739_v11  ;;  %v4741_v52 = vmul.f32 0.4, %v4485_v9  ;;  %4269 = vmatmul.mubr.bf16.gmra.mrb[20].mxu1 %v7392_v59  ;;  %6149 = vmatpush1.bf16.msra.mxu0 %v5983_v38  ;;  %v5003_v18 = vmul.f32 0.6, %v518_v28  ;;  %v5004_v0 = vmul.f32 0.6, %v519_v48 }
 0x4d6   : > { %v5252_v34 = vadd.f32 %v4996_v1, %v4740_v10  ;;  %v4742_v13 = vmul.f32 0.4, %v4486_v44  ;;  %4278 = vmatprep.mubr.bf16.mxu1 %v7397_v56  ;;  %v5005_v39 = vmul.f32 0.6, %v520_v53  ;;  %v521_v59 = vunpack.c.h.bf16 %v7493_v33  ;;  %v7401_v53 = vld [vmem:[#allocation7 + $0x380] ss:$8 sps:$4 sm:$0xff]  }
 0x4d7   : > { %v5507_v14 = vmul.f32 %v5251_v45, %v5251_v45  ;;  %v5253_v12 = vadd.f32 %v4997_v36, %v4741_v52  ;;  %v522_v7 = vunpack.c.l.bf16 %v7494_v4  ;;  %v523_v56 = vunpack.c.h.bf16 %v7494_v4  ;;  %v7403_v52 = vld [vmem:[#allocation7 + $0x384] ss:$8 sps:$4 sm:$0xff]  }
 0x4d8   : > { %v5508_v15 = vmul.f32 %v5252_v34, %v5252_v34  ;;  %v5254_v62 = vadd.f32 %v4998_v27, %v4742_v13  ;;  %v4010_v47 = vpop.f32.mrb[172].mxu1 }
 0x4d9   : > { %v5710_v16 = vadd.f32 %v5709_v8, %v5507_v14  ;;  %v5509_v29 = vmul.f32 %v5253_v12, %v5253_v12  ;;  %v5985_v51 = vpack.c.bf16 %v5253_v12, %v5251_v45  ;;  %v4487_v23 = vmax.f32 %v4010_v47, 0.0  ;;  %v4012_v30 = vpop.f32.mrb[173].mxu1  ;;  %v7495_v14 = vld [vmem:[%s8027_s29 + $0x1d8] sm:$0xff] }
 0x4da   : > { %v5843_v31 = vadd.f32 %v5842_v43, %v5508_v15  ;;  %v5510_v49 = vmul.f32 %v5254_v62, %v5254_v62  ;;  %v4488_v20 = vmax.f32 %v4012_v30, 0.0  ;;  %v4014_v63 = vpop.f32.mrb[174].mxu1  ;;  %v5986_v21 = vpack.c.bf16 %v5254_v62, %v5252_v34 }
 0x4db   : > { %v5711_v22 = vadd.f32 %v5710_v16, %v5509_v29  ;;  %v4743_v3 = vmul.f32 0.4, %v4487_v23  ;;  %v4489_v32 = vmax.f32 %v4014_v63, 0.0  ;;  %v4016_v1 = vpop.f32.mrb[175].mxu1  ;;  %v524_v12 = vunpack.c.l.bf16 %v7495_v14  ;;  %v7496_v63 = vld [vmem:[%s8027_s29 + $0x1e0] sm:$0xff] }
 0x4dc   : > { %v5844_v36 = vadd.f32 %v5843_v31, %v5510_v49  ;;  %v4744_v2 = vmul.f32 0.4, %v4488_v20  ;;  %v4490_v37 = vmax.f32 %v4016_v1, 0.0  ;;  %6150 = vmatprep.subr.bf16.mxu0 %v5986_v21  ;;  %v5006_v62 = vmul.f32 0.6, %v521_v59 }
 0x4dd   : > { %v5255_v5 = vadd.f32 %v4999_v35, %v4743_v3  ;;  %v4745_v54 = vmul.f32 0.4, %v4489_v32  ;;  %4279 = vmatmul.mubr.bf16.gmra.mrb[24].mxu1 %v7395_v19  ;;  %6151 = vmatpush1.bf16.msra.mxu0 %v5985_v51  ;;  %v5007_v16 = vmul.f32 0.6, %v522_v7  ;;  %v5008_v29 = vmul.f32 0.6, %v523_v56 }
 0x4de   : > { %v5256_v17 = vadd.f32 %v5000_v58, %v4744_v2  ;;  %v4746_v6 = vmul.f32 0.4, %v4490_v37  ;;  %4288 = vmatprep.mubr.bf16.mxu1 %v7400_v50  ;;  %v5009_v30 = vmul.f32 0.6, %v524_v12  ;;  %v525_v19 = vunpack.c.h.bf16 %v7495_v14  ;;  %v7404_v12 = vld [vmem:[#allocation7 + $0x390] ss:$8 sps:$4 sm:$0xff]  }
 0x4df   : > { %v5511_v38 = vmul.f32 %v5255_v5, %v5255_v5  ;;  %v5257_v24 = vadd.f32 %v5001_v61, %v4745_v54  ;;  %v526_v21 = vunpack.c.l.bf16 %v7496_v63  ;;  %v527_v50 = vunpack.c.h.bf16 %v7496_v63  ;;  %v7406_v54 = vld [vmem:[#allocation7 + $0x394] ss:$8 sps:$4 sm:$0xff]  }
 0x4e0   : > { %v5512_v40 = vmul.f32 %v5256_v17, %v5256_v17  ;;  %v5258_v25 = vadd.f32 %v5002_v60, %v4746_v6  ;;  %v4020_v41 = vpop.f32.mrb[176].mxu1 }
 0x4e1   : > { %v5712_v8 = vadd.f32 %v5711_v22, %v5511_v38  ;;  %v5513_v11 = vmul.f32 %v5257_v24, %v5257_v24  ;;  %v5987_v9 = vpack.c.bf16 %v5257_v24, %v5255_v5  ;;  %v4491_v57 = vmax.f32 %v4020_v41, 0.0  ;;  %v4022_v42 = vpop.f32.mrb[177].mxu1  ;;  %v7497_v38 = vld [vmem:[%s8027_s29 + $0x1e8] sm:$0xff] }
 0x4e2   : > { %v5845_v43 = vadd.f32 %v5844_v36, %v5512_v40  ;;  %v5514_v10 = vmul.f32 %v5258_v25, %v5258_v25  ;;  %v4492_v44 = vmax.f32 %v4022_v42, 0.0  ;;  %v4024_v27 = vpop.f32.mrb[178].mxu1  ;;  %v5988_v45 = vpack.c.bf16 %v5258_v25, %v5256_v17 }
 0x4e3   : > { %v5713_v34 = vadd.f32 %v5712_v8, %v5513_v11  ;;  %v4747_v13 = vmul.f32 0.4, %v4491_v57  ;;  %v4493_v35 = vmax.f32 %v4024_v27, 0.0  ;;  %v4026_v58 = vpop.f32.mrb[179].mxu1  ;;  %v528_v24 = vunpack.c.l.bf16 %v7497_v38  ;;  %v7498_v27 = vld [vmem:[%s8027_s29 + $0x1f0] sm:$0xff] }
 0x4e4   : > { %v5846_v61 = vadd.f32 %v5845_v43, %v5514_v10  ;;  %v4748_v46 = vmul.f32 0.4, %v4492_v44  ;;  %v4494_v15 = vmax.f32 %v4026_v58, 0.0  ;;  %6152 = vmatprep.subr.bf16.mxu0 %v5988_v45  ;;  %v5010_v25 = vmul.f32 0.6, %v525_v19 }
 0x4e5   : > { %v5259_v47 = vadd.f32 %v5003_v18, %v4747_v13  ;;  %v4749_v55 = vmul.f32 0.4, %v4493_v35  ;;  %4289 = vmatmul.mubr.bf16.gmra.mrb[28].mxu1 %v7398_v26  ;;  %6153 = vmatpush1.bf16.msra.mxu0 %v5987_v9  ;;  %v5011_v8 = vmul.f32 0.6, %v526_v21  ;;  %v5012_v11 = vmul.f32 0.6, %v527_v50 }
 0x4e6   : > { %v5260_v28 = vadd.f32 %v5004_v0, %v4748_v46  ;;  %v4750_v48 = vmul.f32 0.4, %v4494_v15  ;;  %4298 = vmatprep.mubr.bf16.mxu1 %v7403_v52  ;;  %v5013_v42 = vmul.f32 0.6, %v528_v24  ;;  %v529_v26 = vunpack.c.h.bf16 %v7497_v38 }
 0x4e7   : > { %v5515_v51 = vmul.f32 %v5259_v47, %v5259_v47  ;;  %v5261_v23 = vadd.f32 %v5005_v39, %v4749_v55  ;;  %v530_v45 = vunpack.c.l.bf16 %v7498_v27  ;;  %v531_v52 = vunpack.c.h.bf16 %v7498_v27  ;;  %v7409_v55 = vld [vmem:[#allocation7 + $0x3a4] ss:$8 sps:$4 sm:$0xff]  }
 0x4e8   : > { %v5516_v31 = vmul.f32 %v5260_v28, %v5260_v28  ;;  %v5262_v49 = vadd.f32 %v5006_v62, %v4750_v48  ;;  %v4030_v20 = vpop.f32.mrb[180].mxu1 }
 0x4e9   : > { %v5714_v22 = vadd.f32 %v5713_v34, %v5515_v51  ;;  %v5517_v3 = vmul.f32 %v5261_v23, %v5261_v23  ;;  %v5989_v32 = vpack.c.bf16 %v5261_v23, %v5259_v47  ;;  %v4495_v1 = vmax.f32 %v4030_v20, 0.0  ;;  %v4032_v33 = vpop.f32.mrb[181].mxu1  ;;  %v7499_v51 = vld [vmem:[%s8027_s29 + $0x1f8] sm:$0xff] }
 0x4ea   : > { %v5847_v36 = vadd.f32 %v5846_v61, %v5516_v31  ;;  %v5518_v2 = vmul.f32 %v5262_v49, %v5262_v49  ;;  %v4496_v37 = vmax.f32 %v4032_v33, 0.0  ;;  %v4034_v60 = vpop.f32.mrb[182].mxu1  ;;  %v5990_v5 = vpack.c.bf16 %v5262_v49, %v5260_v28 }
 0x4eb   : > { %v5715_v17 = vadd.f32 %v5714_v22, %v5517_v3  ;;  %v4751_v6 = vmul.f32 0.4, %v4495_v1  ;;  %v4497_v18 = vmax.f32 %v4034_v60, 0.0  ;;  %v4036_v0 = vpop.f32.mrb[183].mxu1  ;;  %v532_v23 = vunpack.c.l.bf16 %v7499_v51 }
 0x4ec   : > { %v5848_v39 = vadd.f32 %v5847_v36, %v5518_v2  ;;  %v4752_v59 = vmul.f32 0.4, %v4496_v37  ;;  %v4498_v40 = vmax.f32 %v4036_v0, 0.0  ;;  %6154 = vmatprep.subr.bf16.mxu0 %v5990_v5  ;;  %v5014_v49 = vmul.f32 0.6, %v529_v26  ;;  %v7500_v36 = vld [vmem:[%s8027_s29 + $0x200] sm:$0xff] }
 0x4ed   : > { %v5263_v41 = vadd.f32 %v5007_v16, %v4751_v6  ;;  %v4753_v4 = vmul.f32 0.4, %v4497_v18  ;;  %4299 = vmatmul.mubr.bf16.gmra.mrb[32].mxu1 %v7401_v53  ;;  %6155 = vmatpush1.bf16.msra.mxu0 %v5989_v32  ;;  %v5015_v21 = vmul.f32 0.6, %v530_v45  ;;  %v5016_v3 = vmul.f32 0.6, %v531_v52 }
 0x4ee   : > { %v5264_v7 = vadd.f32 %v5008_v29, %v4752_v59  ;;  %v4754_v56 = vmul.f32 0.4, %v4498_v40  ;;  %4308 = vmatprep.mubr.bf16.mxu1 %v7406_v54  ;;  %v533_v32 = vunpack.c.h.bf16 %v7499_v51  ;;  %v5017_v53 = vmul.f32 0.6, %v532_v23  ;;  %v7407_v59 = vld [vmem:[#allocation7 + $0x3a0] ss:$8 sps:$4 sm:$0xff]  }
 0x4ef   : > { %v5519_v9 = vmul.f32 %v5263_v41, %v5263_v41  ;;  %v5265_v57 = vadd.f32 %v5009_v30, %v4753_v4  ;;  %v534_v2 = vunpack.c.l.bf16 %v7500_v36  ;;  %v535_v54 = vunpack.c.h.bf16 %v7500_v36 }
 0x4f0   : > { %v5520_v43 = vmul.f32 %v5264_v7, %v5264_v7  ;;  %v5266_v10 = vadd.f32 %v5010_v25, %v4754_v56  ;;  %v4040_v44 = vpop.f32.mrb[184].mxu1  ;;  %v7412_v56 = vld [vmem:[#allocation7 + $0x3b4] ss:$8 sps:$4 sm:$0xff]  }
 0x4f1   : > { %v5716_v34 = vadd.f32 %v5715_v17, %v5519_v9  ;;  %v5521_v13 = vmul.f32 %v5265_v57, %v5265_v57  ;;  %v5991_v35 = vpack.c.bf16 %v5265_v57, %v5263_v41  ;;  %v4499_v58 = vmax.f32 %v4040_v44, 0.0  ;;  %v4042_v14 = vpop.f32.mrb[185].mxu1  ;;  %v7501_v17 = vld [vmem:[%s8027_s29 + $0x208] sm:$0xff] }
 0x4f2   : > { %v5849_v61 = vadd.f32 %v5848_v39, %v5520_v43  ;;  %v5522_v46 = vmul.f32 %v5266_v10, %v5266_v10  ;;  %v4500_v15 = vmax.f32 %v4042_v14, 0.0  ;;  %v4044_v62 = vpop.f32.mrb[186].mxu1  ;;  %v5992_v47 = vpack.c.bf16 %v5266_v10, %v5264_v7 }
 0x4f3   : > { %v5717_v28 = vadd.f32 %v5716_v34, %v5521_v13  ;;  %v4755_v48 = vmul.f32 0.4, %v4499_v58  ;;  %v4501_v16 = vmax.f32 %v4044_v62, 0.0  ;;  %v4046_v29 = vpop.f32.mrb[187].mxu1  ;;  %v536_v6 = vunpack.c.l.bf16 %v7501_v17 }
 0x4f4   : > { %v5850_v30 = vadd.f32 %v5849_v61, %v5522_v46  ;;  %v4756_v19 = vmul.f32 0.4, %v4500_v15  ;;  %v4502_v31 = vmax.f32 %v4046_v29, 0.0  ;;  %6156 = vmatprep.subr.bf16.mxu0 %v5992_v47  ;;  %v5018_v44 = vmul.f32 0.6, %v533_v32  ;;  %v7502_v47 = vld [vmem:[%s8027_s29 + $0x210] sm:$0xff] }
 0x4f5   : > { %v5267_v20 = vadd.f32 %v5011_v8, %v4755_v48  ;;  %v4757_v63 = vmul.f32 0.4, %v4501_v16  ;;  %4309 = vmatmul.mubr.bf16.gmra.mrb[36].mxu1 %v7404_v12  ;;  %6157 = vmatpush1.bf16.msra.mxu0 %v5991_v35  ;;  %v5019_v13 = vmul.f32 0.6, %v534_v2  ;;  %v5020_v35 = vmul.f32 0.6, %v535_v54 }
 0x4f6   : > { %v5268_v50 = vadd.f32 %v5012_v11, %v4756_v19  ;;  %v4758_v22 = vmul.f32 0.4, %v4502_v31  ;;  %4318 = vmatprep.mubr.bf16.mxu1 %v7409_v55  ;;  %v5021_v12 = vmul.f32 0.6, %v536_v6  ;;  %v538_v55 = vunpack.c.l.bf16 %v7502_v47 }
 0x4f7   : > { %v5523_v1 = vmul.f32 %v5267_v20, %v5267_v20  ;;  %v5269_v33 = vadd.f32 %v5013_v42, %v4757_v63  ;;  %v537_v42 = vunpack.c.h.bf16 %v7501_v17 }
 0x4f8   : > { %v5524_v37 = vmul.f32 %v5268_v50, %v5268_v50  ;;  %v5270_v60 = vadd.f32 %v5014_v49, %v4758_v22  ;;  %v4050_v5 = vpop.f32.mrb[188].mxu1 }
 0x4f9   : > { %v5718_v18 = vadd.f32 %v5717_v28, %v5523_v1  ;;  %v5525_v0 = vmul.f32 %v5269_v33, %v5269_v33  ;;  %v5993_v38 = vpack.c.bf16 %v5269_v33, %v5267_v20  ;;  %v4503_v24 = vmax.f32 %v4050_v5, 0.0  ;;  %v4052_v39 = vpop.f32.mrb[189].mxu1  ;;  %v7503_v1 = vld [vmem:[%s8027_s29 + $0x218] sm:$0xff] }
 0x4fa   : > { %v5851_v40 = vadd.f32 %v5850_v30, %v5524_v37  ;;  %v5526_v25 = vmul.f32 %v5270_v60, %v5270_v60  ;;  %v4504_v41 = vmax.f32 %v4052_v39, 0.0  ;;  %v4054_v4 = vpop.f32.mrb[190].mxu1  ;;  %v5994_v7 = vpack.c.bf16 %v5270_v60, %v5268_v50  ;;  %v7410_v30 = vld [vmem:[#allocation7 + $0x3b0] ss:$8 sps:$4 sm:$0xff]   ;;  %v7504_v37 = vld [vmem:[#allocation8 + $0x8] sm:$0xff] }
 0x4fb   : > { %v5719_v8 = vadd.f32 %v5718_v18, %v5525_v0  ;;  %v4759_v11 = vmul.f32 0.4, %v4503_v24  ;;  %v4505_v9 = vmax.f32 %v4054_v4, 0.0  ;;  %v4056_v57 = vpop.f32.mrb[191].mxu1  ;;  %v5022_v61 = vmul.f32 0.6, %v537_v42 }
 0x4fc   : > { %v5852_v26 = vadd.f32 %v5851_v40, %v5526_v25  ;;  %v4760_v43 = vmul.f32 0.4, %v4504_v41  ;;  %v4506_v10 = vmax.f32 %v4056_v57, 0.0  ;;  %6158 = vmatprep.subr.bf16.mxu0 %v5994_v7  ;;  %v539_v28 = vunpack.c.h.bf16 %v7502_v47  ;;  %v7505_v4 = vld [vmem:[%s8027_s29 + $0x220] sm:$0xff] }
 0x4fd   : > { %v5271_v27 = vadd.f32 %v5015_v21, %v4759_v11  ;;  %v4761_v45 = vmul.f32 0.4, %v4505_v9  ;;  %4319 = vmatmul.mubr.bf16.gmra.mrb[40].mxu1 %v7407_v59  ;;  %6159 = vmatpush1.bf16.msra.mxu0 %v5993_v38  ;;  %v7415_v21 = vld [vmem:[#allocation7 + $0x3c4] ss:$8 sps:$4 sm:$0xff]   ;;  %v540_v33 = vunpack.c.l.bf16 %v7503_v1  ;;  %v6789_v60 = vcombine.low %v7504_v37, %v7504_v37 }
 0x4fe   : > { %v5272_v52 = vadd.f32 %v5016_v3, %v4760_v43  ;;  %v4762_v34 = vmul.f32 0.4, %v4506_v10  ;;  %4328 = vmatprep.mubr.bf16.mxu1 %v7412_v56  ;;  %v5023_v18 = vmul.f32 0.6, %v538_v55  ;;  %v5024_v0 = vmul.f32 0.6, %v539_v28 }
 0x4ff   : > { %v5527_v58 = vmul.f32 %v5271_v27, %v5271_v27  ;;  %v5273_v14 = vadd.f32 %v5017_v53, %v4761_v45  ;;  %v5025_v39 = vmul.f32 0.6, %v540_v33  ;;  %v541_v59 = vunpack.c.h.bf16 %v7503_v1 }
 0x500   : > { %v5528_v46 = vmul.f32 %v5272_v52, %v5272_v52  ;;  %v5274_v15 = vadd.f32 %v5018_v44, %v4762_v34  ;;  %v4060_v62 = vpop.f32.mrb[192].mxu1  ;;  %v542_v7 = vunpack.c.l.bf16 %v7505_v4  ;;  %v543_v56 = vunpack.c.h.bf16 %v7505_v4 }
 0x501   : > { %v5720_v48 = vadd.f32 %v5719_v8, %v5527_v58  ;;  %v5529_v16 = vmul.f32 %v5273_v14, %v5273_v14  ;;  %v5995_v29 = vpack.c.bf16 %v5273_v14, %v5271_v27  ;;  %v4507_v51 = vmax.f32 %v4060_v62, 0.0  ;;  %v4062_v23 = vpop.f32.mrb[193].mxu1  ;;  %v7506_v14 = vld [vmem:[%s8027_s29 + $0x228] sm:$0xff] }
 0x502   : > { %v5853_v19 = vadd.f32 %v5852_v26, %v5528_v46  ;;  %v5530_v31 = vmul.f32 %v5274_v15, %v5274_v15  ;;  %v4508_v49 = vmax.f32 %v4062_v23, 0.0  ;;  %v4064_v20 = vpop.f32.mrb[194].mxu1  ;;  %v5996_v63 = vpack.c.bf16 %v5274_v15, %v5272_v52  ;;  %v7413_v26 = vld [vmem:[#allocation7 + $0x3c0] ss:$8 sps:$4 sm:$0xff]   ;;  %v7420_v52 = vld [vmem:[#allocation7 + $0x3d4] ss:$8 sps:$4 sm:$0xff]  }
 0x503   : > { %v5721_v50 = vadd.f32 %v5720_v48, %v5529_v16  ;;  %v4763_v22 = vmul.f32 0.4, %v4507_v51  ;;  %v4509_v3 = vmax.f32 %v4064_v20, 0.0  ;;  %v4066_v32 = vpop.f32.mrb[195].mxu1  ;;  %v5026_v62 = vmul.f32 0.6, %v541_v59 }
 0x504   : > { %v5854_v53 = vadd.f32 %v5853_v19, %v5530_v31  ;;  %v4764_v36 = vmul.f32 0.4, %v4508_v49  ;;  %v4510_v2 = vmax.f32 %v4066_v32, 0.0  ;;  %6160 = vmatprep.subr.bf16.mxu0 %v5996_v63  ;;  %v5027_v28 = vmul.f32 0.6, %v542_v7  ;;  %v5931_v48 = vld [vmem:[#allocation8 + $0x10] sm:$0xff] }
 0x505   : > { %v5275_v5 = vadd.f32 %v5019_v13, %v4763_v22  ;;  %v4765_v54 = vmul.f32 0.4, %v4509_v3  ;;  %4329 = vmatmul.mubr.bf16.gmra.mrb[44].mxu1 %v7410_v30  ;;  %6161 = vmatpush1.bf16.msra.mxu0 %v5995_v29  ;;  %v5028_v51 = vmul.f32 0.6, %v543_v56  ;;  %v545_v23 = vunpack.c.h.bf16 %v7506_v14  ;;  %v7507_v49 = vld [vmem:[%s8027_s29 + $0x230] sm:$0xff] }
 0x506   : > { %v5276_v17 = vadd.f32 %v5020_v35, %v4764_v36  ;;  %v4766_v6 = vmul.f32 0.4, %v4510_v2  ;;  %4338 = vmatprep.mubr.bf16.mxu1 %v7415_v21  ;;  %v546_v20 = vunpack.c.l.bf16 %v7507_v49  ;;  %v547_v22 = vunpack.c.h.bf16 %v7507_v49  ;;  %v7418_v2 = vld [vmem:[#allocation7 + $0x3d0] ss:$8 sps:$4 sm:$0xff]  }
 0x507   : > { %v5531_v38 = vmul.f32 %v5275_v5, %v5275_v5  ;;  %v5277_v24 = vadd.f32 %v5021_v12, %v4765_v54  ;;  %v544_v12 = vunpack.c.l.bf16 %v7506_v14  ;;  %v6792_v3 = vcombine.high %v5931_v48, %v5931_v48  ;;  %v7426_v48 = vld [vmem:[#allocation7 + $0x3f4] ss:$8 sps:$4 sm:$0xff]  }
 0x508   : > { %v5532_v40 = vmul.f32 %v5276_v17, %v5276_v17  ;;  %v5278_v25 = vadd.f32 %v5022_v61, %v4766_v6  ;;  %v4070_v41 = vpop.f32.mrb[196].mxu1  ;;  %6163 = vmatmul.mubr.bf16.vlgmr.msra.gmra.mrb[64].mxu0 %v6789_v60  ;;  %v7423_v6 = vld [vmem:[#allocation7 + $0x3e4] ss:$8 sps:$4 sm:$0xff]   ;;  %v5030_v4 = vmul.f32 0.6, %v545_v23 }
 0x509   : > { %v5722_v8 = vadd.f32 %v5721_v50, %v5531_v38  ;;  %v5533_v11 = vmul.f32 %v5277_v24, %v5277_v24  ;;  %v5997_v9 = vpack.c.bf16 %v5277_v24, %v5275_v5  ;;  %v4511_v57 = vmax.f32 %v4070_v41, 0.0  ;;  %v4072_v42 = vpop.f32.mrb[197].mxu1  ;;  %6203 = vmatprep.mubr.bf16.mxu0 %v6792_v3 }
 0x50a   : > { %v5855_v43 = vadd.f32 %v5854_v53, %v5532_v40  ;;  %v5534_v10 = vmul.f32 %v5278_v25, %v5278_v25  ;;  %v4512_v44 = vmax.f32 %v4072_v42, 0.0  ;;  %v4074_v27 = vpop.f32.mrb[198].mxu1  ;;  %v5998_v45 = vpack.c.bf16 %v5278_v25, %v5276_v17 }
 0x50b   : > { %v5723_v34 = vadd.f32 %v5722_v8, %v5533_v11  ;;  %v4767_v13 = vmul.f32 0.4, %v4511_v57  ;;  %v4513_v35 = vmax.f32 %v4074_v27, 0.0  ;;  %v4076_v58 = vpop.f32.mrb[199].mxu1  ;;  %v5029_v31 = vmul.f32 0.6, %v544_v12 }
 0x50c   : > { %v5856_v61 = vadd.f32 %v5855_v43, %v5534_v10  ;;  %v4768_v46 = vmul.f32 0.4, %v4512_v44  ;;  %v4514_v15 = vmax.f32 %v4076_v58, 0.0  ;;  %6171 = vmatprep.subr.bf16.mxu0 %v5998_v45  ;;  %v5032_v57 = vmul.f32 0.6, %v547_v22 }
 0x50d   : > { %v5279_v47 = vadd.f32 %v5023_v18, %v4767_v13  ;;  %v4769_v55 = vmul.f32 0.4, %v4513_v35  ;;  %4339 = vmatmul.mubr.bf16.gmra.mrb[48].mxu1 %v7413_v26  ;;  %6172 = vmatpush1.bf16.msra.mxu0 %v5997_v9  ;;  %v5031_v9 = vmul.f32 0.6, %v546_v20 }
 0x50e   : > { %v5280_v16 = vadd.f32 %v5024_v0, %v4768_v46  ;;  %v4770_v29 = vmul.f32 0.4, %v4514_v15  ;;  %4348 = vmatprep.mubr.bf16.mxu1 %v7420_v52  ;;  %v7509_v52 = vld [vmem:[%s8027_s29 + $0x240] sm:$0xff] }
 0x50f   : > { %v5535_v30 = vmul.f32 %v5279_v47, %v5279_v47  ;;  %v5281_v19 = vadd.f32 %v5025_v39, %v4769_v55  ;;  %v7508_v39 = vld [vmem:[%s8027_s29 + $0x238] sm:$0xff]  ;;  %v551_v13 = vunpack.c.h.bf16 %v7509_v52  ;;  %v7421_v46 = vld [vmem:[#allocation7 + $0x3e0] ss:$8 sps:$4 sm:$0xff]  }
 0x510   : > { %v5536_v63 = vmul.f32 %v5280_v16, %v5280_v16  ;;  %v5282_v21 = vadd.f32 %v5026_v62, %v4770_v29  ;;  %v4080_v50 = vpop.f32.mrb[200].mxu1  ;;  %v548_v59 = vunpack.c.l.bf16 %v7508_v39  ;;  %v549_v10 = vunpack.c.h.bf16 %v7508_v39 }
 0x511   : > { %v5724_v32 = vadd.f32 %v5723_v34, %v5535_v30  ;;  %v5537_v1 = vmul.f32 %v5281_v19, %v5281_v19  ;;  %v5999_v33 = vpack.c.bf16 %v5281_v19, %v5279_v47  ;;  %v4515_v53 = vmax.f32 %v4080_v50, 0.0  ;;  %v4082_v36 = vpop.f32.mrb[201].mxu1  ;;  %v7510_v30 = vld [vmem:[%s8027_s29 + $0x248] sm:$0xff] }
 0x512   : > { %v5857_v37 = vadd.f32 %v5856_v61, %v5536_v63  ;;  %v5538_v60 = vmul.f32 %v5282_v21, %v5282_v21  ;;  %v4516_v5 = vmax.f32 %v4082_v36, 0.0  ;;  %v4084_v54 = vpop.f32.mrb[202].mxu1  ;;  %v6000_v17 = vpack.c.bf16 %v5282_v21, %v5280_v16 }
 0x513   : > { %v5725_v18 = vadd.f32 %v5724_v32, %v5537_v1  ;;  %v4771_v0 = vmul.f32 0.4, %v4515_v53  ;;  %v4517_v38 = vmax.f32 %v4084_v54, 0.0  ;;  %v4086_v24 = vpop.f32.mrb[203].mxu1  ;;  %v5033_v43 = vmul.f32 0.6, %v548_v59 }
 0x514   : > { %v5858_v40 = vadd.f32 %v5857_v37, %v5538_v60  ;;  %v4772_v25 = vmul.f32 0.4, %v4516_v5  ;;  %v4518_v41 = vmax.f32 %v4086_v24, 0.0  ;;  %6173 = vmatprep.subr.bf16.mxu0 %v6000_v17  ;;  %v550_v34 = vunpack.c.l.bf16 %v7509_v52  ;;  %v7511_v54 = vld [vmem:[%s8027_s29 + $0x250] sm:$0xff] }
 0x515   : > { %v5283_v7 = vadd.f32 %v5027_v28, %v4771_v0  ;;  %v4773_v56 = vmul.f32 0.4, %v4517_v38  ;;  %4349 = vmatmul.mubr.bf16.gmra.mrb[52].mxu1 %v7418_v2  ;;  %6174 = vmatpush1.bf16.msra.mxu0 %v5999_v33  ;;  %v552_v19 = vunpack.c.l.bf16 %v7510_v30  ;;  %v5034_v63 = vmul.f32 0.6, %v549_v10  ;;  %v7424_v59 = vld [vmem:[#allocation7 + $0x3f0] ss:$8 sps:$4 sm:$0xff]  }
 0x516   : > { %v5284_v8 = vadd.f32 %v5028_v51, %v4772_v25  ;;  %v4774_v11 = vmul.f32 0.4, %v4518_v41  ;;  %4358 = vmatprep.mubr.bf16.mxu1 %v7423_v6  ;;  %v5035_v32 = vmul.f32 0.6, %v550_v34  ;;  %v5036_v1 = vmul.f32 0.6, %v551_v13 }
 0x517   : > { %v5539_v42 = vmul.f32 %v5283_v7, %v5283_v7  ;;  %v5285_v26 = vadd.f32 %v5029_v31, %v4773_v56  ;;  %v5037_v36 = vmul.f32 0.6, %v552_v19  ;;  %v553_v2 = vunpack.c.h.bf16 %v7510_v30 }
 0x518   : > { %v5540_v44 = vmul.f32 %v5284_v8, %v5284_v8  ;;  %v5286_v27 = vadd.f32 %v5030_v4, %v4774_v11  ;;  %v4090_v45 = vpop.f32.mrb[204].mxu1  ;;  %v554_v17 = vunpack.c.l.bf16 %v7511_v54  ;;  %v555_v6 = vunpack.c.h.bf16 %v7511_v54 }
 0x519   : > { %v5726_v35 = vadd.f32 %v5725_v18, %v5539_v42  ;;  %v5541_v58 = vmul.f32 %v5285_v26, %v5285_v26  ;;  %v6001_v14 = vpack.c.bf16 %v5285_v26, %v5283_v7  ;;  %v4519_v12 = vmax.f32 %v4090_v45, 0.0  ;;  %v4092_v61 = vpop.f32.mrb[205].mxu1 }
 0x51a   : > { %v5859_v15 = vadd.f32 %v5858_v40, %v5540_v44  ;;  %v5542_v62 = vmul.f32 %v5286_v27, %v5286_v27  ;;  %v4520_v47 = vmax.f32 %v4092_v61, 0.0  ;;  %v4094_v55 = vpop.f32.mrb[206].mxu1  ;;  %v6002_v28 = vpack.c.bf16 %v5286_v27, %v5284_v8 }
 0x51b   : > { %v5727_v16 = vadd.f32 %v5726_v35, %v5541_v58  ;;  %v4775_v29 = vmul.f32 0.4, %v4519_v12  ;;  %v4521_v51 = vmax.f32 %v4094_v55, 0.0  ;;  %v4096_v23 = vpop.f32.mrb[207].mxu1  ;;  %v5038_v44 = vmul.f32 0.6, %v553_v2 }
 0x51c   : > { %v5860_v31 = vadd.f32 %v5859_v15, %v5542_v62  ;;  %v4776_v49 = vmul.f32 0.4, %v4520_v47  ;;  %v4522_v20 = vmax.f32 %v4096_v23, 0.0  ;;  %6175 = vmatprep.subr.bf16.mxu0 %v6002_v28  ;;  %v5039_v13 = vmul.f32 0.6, %v554_v17  ;;  %v7513_v47 = vld [vmem:[%s8027_s29 + $0x260] sm:$0xff] }
 0x51d   : > { %v5287_v21 = vadd.f32 %v5031_v9, %v4775_v29  ;;  %v4777_v50 = vmul.f32 0.4, %v4521_v51  ;;  %4359 = vmatmul.mubr.bf16.gmra.mrb[56].mxu1 %v7421_v46  ;;  %6176 = vmatpush1.bf16.msra.mxu0 %v6001_v14  ;;  %v5040_v35 = vmul.f32 0.6, %v555_v6  ;;  %v558_v55 = vunpack.c.l.bf16 %v7513_v47 }
 0x51e   : > { %v5288_v22 = vadd.f32 %v5032_v57, %v4776_v49  ;;  %v4778_v3 = vmul.f32 0.4, %v4522_v20  ;;  %4368 = vmatprep.mubr.bf16.mxu1 %v7426_v48  ;;  %v7512_v57 = vld [vmem:[%s8027_s29 + $0x258] sm:$0xff]  ;;  %v559_v28 = vunpack.c.h.bf16 %v7513_v47 }
 0x51f   : > { %v5543_v33 = vmul.f32 %v5287_v21, %v5287_v21  ;;  %v5289_v53 = vadd.f32 %v5033_v43, %v4777_v50  ;;  %v556_v42 = vunpack.c.l.bf16 %v7512_v57  ;;  %v557_v61 = vunpack.c.h.bf16 %v7512_v57 }
 0x520   : > { %v5544_v37 = vmul.f32 %v5288_v22, %v5288_v22  ;;  %v5290_v60 = vadd.f32 %v5034_v63, %v4778_v3  ;;  %v4100_v5 = vpop.f32.mrb[208].mxu1  ;;  %v7514_v3 = vld [vmem:[%s8027_s29 + $0x268] sm:$0xff]  ;;  %v5043_v54 = vmul.f32 0.6, %v558_v55  ;;  %v5044_v17 = vmul.f32 0.6, %v559_v28 }
 0x521   : > { %v5728_v18 = vadd.f32 %v5727_v16, %v5543_v33  ;;  %v5545_v0 = vmul.f32 %v5289_v53, %v5289_v53  ;;  %v6003_v38 = vpack.c.bf16 %v5289_v53, %v5287_v21  ;;  %v4523_v24 = vmax.f32 %v4100_v5, 0.0  ;;  %v4102_v39 = vpop.f32.mrb[209].mxu1 }
 0x522   : > { %v5861_v40 = vadd.f32 %v5860_v31, %v5544_v37  ;;  %v5546_v25 = vmul.f32 %v5290_v60, %v5290_v60  ;;  %v4524_v41 = vmax.f32 %v4102_v39, 0.0  ;;  %v4104_v4 = vpop.f32.mrb[210].mxu1  ;;  %v6004_v7 = vpack.c.bf16 %v5290_v60, %v5288_v22 }
 0x523   : > { %v5729_v56 = vadd.f32 %v5728_v18, %v5545_v0  ;;  %v4779_v8 = vmul.f32 0.4, %v4523_v24  ;;  %v4525_v11 = vmax.f32 %v4104_v4, 0.0  ;;  %v4106_v9 = vpop.f32.mrb[211].mxu1  ;;  %v5041_v12 = vmul.f32 0.6, %v556_v42 }
 0x524   : > { %v5862_v26 = vadd.f32 %v5861_v40, %v5546_v25  ;;  %v4780_v43 = vmul.f32 0.4, %v4524_v41  ;;  %v4526_v10 = vmax.f32 %v4106_v9, 0.0  ;;  %6177 = vmatprep.subr.bf16.mxu0 %v6004_v7  ;;  %v7515_v40 = vld [vmem:[%s8027_s29 + $0x270] sm:$0xff] }
 0x525   : > { %v5291_v27 = vadd.f32 %v5035_v32, %v4779_v8  ;;  %v4781_v45 = vmul.f32 0.4, %v4525_v11  ;;  %4369 = vmatmul.mubr.bf16.gmra.mrb[60].mxu1 %v7424_v59  ;;  %6178 = vmatpush1.bf16.msra.mxu0 %v6003_v38  ;;  %v560_v32 = vunpack.c.l.bf16 %v7514_v3  ;;  %v561_v38 = vunpack.c.h.bf16 %v7514_v3 }
 0x526   : > { %v5292_v52 = vadd.f32 %v5036_v1, %v4780_v43  ;;  %v4782_v34 = vmul.f32 0.4, %v4526_v10  ;;  %v562_v25 = vunpack.c.l.bf16 %v7515_v40  ;;  %v563_v41 = vunpack.c.h.bf16 %v7515_v40 }
 0x527   : > { %v5547_v58 = vmul.f32 %v5291_v27, %v5291_v27  ;;  %v5293_v14 = vadd.f32 %v5037_v36, %v4781_v45  ;;  %v5042_v36 = vmul.f32 0.6, %v557_v61  ;;  %v5045_v0 = vmul.f32 0.6, %v560_v32 }
 0x528   : > { %v5548_v46 = vmul.f32 %v5292_v52, %v5292_v52  ;;  %v5294_v15 = vadd.f32 %v5038_v44, %v4782_v34  ;;  %v4110_v62 = vpop.f32.mrb[212].mxu1  ;;  %v5048_v47 = vmul.f32 0.6, %v563_v41 }
 0x529   : > { %v5730_v48 = vadd.f32 %v5729_v56, %v5547_v58  ;;  %v5549_v16 = vmul.f32 %v5293_v14, %v5293_v14  ;;  %v6005_v29 = vpack.c.bf16 %v5293_v14, %v5291_v27  ;;  %v4527_v51 = vmax.f32 %v4110_v62, 0.0  ;;  %v4112_v23 = vpop.f32.mrb[213].mxu1 }
 0x52a   : > { %v5863_v30 = vadd.f32 %v5862_v26, %v5548_v46  ;;  %v5550_v19 = vmul.f32 %v5294_v15, %v5294_v15  ;;  %v4528_v31 = vmax.f32 %v4112_v23, 0.0  ;;  %v4114_v49 = vpop.f32.mrb[214].mxu1  ;;  %v6006_v20 = vpack.c.bf16 %v5294_v15, %v5292_v52  ;;  %v7516_v52 = vld [vmem:[%s8027_s29 + $0x278] sm:$0xff] }
 0x52b   : > { %v5731_v63 = vadd.f32 %v5730_v48, %v5549_v16  ;;  %v4783_v21 = vmul.f32 0.4, %v4527_v51  ;;  %v4529_v50 = vmax.f32 %v4114_v49, 0.0  ;;  %v4116_v22 = vpop.f32.mrb[215].mxu1  ;;  %v564_v34 = vunpack.c.l.bf16 %v7516_v52 }
 0x52c   : > { %v5864_v1 = vadd.f32 %v5863_v30, %v5550_v19  ;;  %v4784_v33 = vmul.f32 0.4, %v4528_v31  ;;  %v4530_v53 = vmax.f32 %v4116_v22, 0.0  ;;  %6179 = vmatprep.subr.bf16.mxu0 %v6006_v20  ;;  %v5046_v14 = vmul.f32 0.6, %v561_v38  ;;  %v7517_v30 = vld [vmem:[%s8027_s29 + $0x280] sm:$0xff] }
 0x52d   : > { %v5295_v2 = vadd.f32 %v5039_v13, %v4783_v21  ;;  %v4785_v37 = vmul.f32 0.4, %v4529_v50  ;;  %6180 = vmatpush1.bf16.msra.mxu0 %v6005_v29  ;;  %v5047_v62 = vmul.f32 0.6, %v562_v25  ;;  %v5049_v48 = vmul.f32 0.6, %v564_v34 }
 0x52e   : > { %v5296_v60 = vadd.f32 %v5040_v35, %v4784_v33  ;;  %v4786_v5 = vmul.f32 0.4, %v4530_v53  ;;  %v565_v16 = vunpack.c.h.bf16 %v7516_v52  ;;  %v566_v19 = vunpack.c.l.bf16 %v7517_v30 }
 0x52f   : > { %v5551_v6 = vmul.f32 %v5295_v2, %v5295_v2  ;;  %v5297_v18 = vadd.f32 %v5041_v12, %v4785_v37  ;;  %v567_v31 = vunpack.c.h.bf16 %v7517_v30 }
 0x530   : > { %v5552_v24 = vmul.f32 %v5296_v60, %v5296_v60  ;;  %v5298_v39 = vadd.f32 %v5042_v36, %v4786_v5  ;;  %v4120_v59 = vpop.f32.mrb[216].mxu1 }
 0x531   : > { %v5732_v4 = vadd.f32 %v5731_v63, %v5551_v6  ;;  %v5553_v7 = vmul.f32 %v5297_v18, %v5297_v18  ;;  %v6007_v56 = vpack.c.bf16 %v5297_v18, %v5295_v2  ;;  %v4531_v8 = vmax.f32 %v4120_v59, 0.0  ;;  %v4122_v11 = vpop.f32.mrb[217].mxu1 }
 0x532   : > { %v5865_v9 = vadd.f32 %v5864_v1, %v5552_v24  ;;  %v5554_v57 = vmul.f32 %v5298_v39, %v5298_v39  ;;  %v4532_v42 = vmax.f32 %v4122_v11, 0.0  ;;  %v4124_v26 = vpop.f32.mrb[218].mxu1  ;;  %v6008_v43 = vpack.c.bf16 %v5298_v39, %v5296_v60  ;;  %v7518_v60 = vld [vmem:[%s8027_s29 + $0x288] sm:$0xff] }
 0x533   : > { %v5733_v10 = vadd.f32 %v5732_v4, %v5553_v7  ;;  %v4787_v44 = vmul.f32 0.4, %v4531_v8  ;;  %v4533_v27 = vmax.f32 %v4124_v26, 0.0  ;;  %v4126_v45 = vpop.f32.mrb[219].mxu1  ;;  %v568_v5 = vunpack.c.l.bf16 %v7518_v60 }
 0x534   : > { %v5866_v13 = vadd.f32 %v5865_v9, %v5554_v57  ;;  %v4788_v35 = vmul.f32 0.4, %v4532_v42  ;;  %v4534_v58 = vmax.f32 %v4126_v45, 0.0  ;;  %6181 = vmatprep.subr.bf16.mxu0 %v6008_v43  ;;  %v5050_v18 = vmul.f32 0.6, %v565_v16  ;;  %v7519_v9 = vld [vmem:[%s8027_s29 + $0x290] sm:$0xff] }
 0x535   : > { %v5299_v12 = vadd.f32 %v5043_v54, %v4787_v44  ;;  %v4789_v61 = vmul.f32 0.4, %v4533_v27  ;;  %6182 = vmatpush1.bf16.msra.mxu0 %v6007_v56  ;;  %v5051_v59 = vmul.f32 0.6, %v566_v19  ;;  %v5052_v40 = vmul.f32 0.6, %v567_v31 }
 0x536   : > { %v5300_v46 = vadd.f32 %v5044_v17, %v4788_v35  ;;  %v4790_v15 = vmul.f32 0.4, %v4534_v58  ;;  %v5053_v4 = vmul.f32 0.6, %v568_v5  ;;  %v569_v7 = vunpack.c.h.bf16 %v7518_v60 }
 0x537   : > { %v5555_v55 = vmul.f32 %v5299_v12, %v5299_v12  ;;  %v5301_v28 = vadd.f32 %v5045_v0, %v4789_v61  ;;  %v570_v57 = vunpack.c.l.bf16 %v7519_v9  ;;  %v571_v42 = vunpack.c.h.bf16 %v7519_v9 }
 0x538   : > { %v5556_v29 = vmul.f32 %v5300_v46, %v5300_v46  ;;  %v5302_v51 = vadd.f32 %v5046_v14, %v4790_v15  ;;  %v4130_v23 = vpop.f32.mrb[220].mxu1 }
 0x539   : > { %v5734_v49 = vadd.f32 %v5733_v10, %v5555_v55  ;;  %v5557_v20 = vmul.f32 %v5301_v28, %v5301_v28  ;;  %v6009_v63 = vpack.c.bf16 %v5301_v28, %v5299_v12  ;;  %v4535_v21 = vmax.f32 %v4130_v23, 0.0  ;;  %v4132_v50 = vpop.f32.mrb[221].mxu1 }
 0x53a   : > { %v5867_v22 = vadd.f32 %v5866_v13, %v5556_v29  ;;  %v5558_v3 = vmul.f32 %v5302_v51, %v5302_v51  ;;  %v4536_v32 = vmax.f32 %v4132_v50, 0.0  ;;  %v4134_v1 = vpop.f32.mrb[222].mxu1  ;;  %v6010_v33 = vpack.c.bf16 %v5302_v51, %v5300_v46  ;;  %v7520_v46 = vld [vmem:[%s8027_s29 + $0x298] sm:$0xff] }
 0x53b   : > { %v5735_v53 = vadd.f32 %v5734_v49, %v5557_v20  ;;  %v4791_v36 = vmul.f32 0.4, %v4535_v21  ;;  %v4537_v2 = vmax.f32 %v4134_v1, 0.0  ;;  %v4136_v37 = vpop.f32.mrb[223].mxu1  ;;  %v572_v15 = vunpack.c.l.bf16 %v7520_v46 }
 0x53c   : > { %v5868_v54 = vadd.f32 %v5867_v22, %v5558_v3  ;;  %v4792_v17 = vmul.f32 0.4, %v4536_v32  ;;  %v4538_v6 = vmax.f32 %v4136_v37, 0.0  ;;  %6183 = vmatprep.subr.bf16.mxu0 %v6010_v33  ;;  %v5054_v28 = vmul.f32 0.6, %v569_v7  ;;  %v7521_v22 = vld [vmem:[%s8027_s29 + $0x2a0] sm:$0xff] }
 0x53d   : > { %v5303_v0 = vadd.f32 %v5047_v62, %v4791_v36  ;;  %v4793_v38 = vmul.f32 0.4, %v4537_v2  ;;  %6184 = vmatpush1.bf16.msra.mxu0 %v6009_v63  ;;  %v5055_v23 = vmul.f32 0.6, %v570_v57  ;;  %v5056_v30 = vmul.f32 0.6, %v571_v42 }
 0x53e   : > { %v5304_v24 = vadd.f32 %v5048_v47, %v4792_v17  ;;  %v4794_v39 = vmul.f32 0.4, %v4538_v6  ;;  %v5057_v49 = vmul.f32 0.6, %v572_v15  ;;  %v573_v20 = vunpack.c.h.bf16 %v7520_v46 }
 0x53f   : > { %v5559_v25 = vmul.f32 %v5303_v0, %v5303_v0  ;;  %v5305_v41 = vadd.f32 %v5049_v48, %v4793_v38  ;;  %v574_v3 = vunpack.c.l.bf16 %v7521_v22  ;;  %v575_v32 = vunpack.c.h.bf16 %v7521_v22 }
 0x540   : > { %v5560_v56 = vmul.f32 %v5304_v24, %v5304_v24  ;;  %v5306_v8 = vadd.f32 %v5050_v18, %v4794_v39  ;;  %v4140_v11 = vpop.f32.mrb[224].mxu1 }
 0x541   : > { %v5736_v26 = vadd.f32 %v5735_v53, %v5559_v25  ;;  %v5561_v43 = vmul.f32 %v5305_v41, %v5305_v41  ;;  %v6011_v10 = vpack.c.bf16 %v5305_v41, %v5303_v0  ;;  %v4539_v44 = vmax.f32 %v4140_v11, 0.0  ;;  %v4142_v27 = vpop.f32.mrb[225].mxu1 }
 0x542   : > { %v5869_v45 = vadd.f32 %v5868_v54, %v5560_v56  ;;  %v5562_v52 = vmul.f32 %v5306_v8, %v5306_v8  ;;  %v4540_v34 = vmax.f32 %v4142_v27, 0.0  ;;  %v4144_v13 = vpop.f32.mrb[226].mxu1  ;;  %v6012_v35 = vpack.c.bf16 %v5306_v8, %v5304_v24  ;;  %v7522_v24 = vld [vmem:[%s8027_s29 + $0x2a8] sm:$0xff] }
 0x543   : > { %v5737_v58 = vadd.f32 %v5736_v26, %v5561_v43  ;;  %v4795_v14 = vmul.f32 0.4, %v4539_v44  ;;  %v4541_v12 = vmax.f32 %v4144_v13, 0.0  ;;  %v4146_v61 = vpop.f32.mrb[227].mxu1  ;;  %v576_v39 = vunpack.c.l.bf16 %v7522_v24 }
 0x544   : > { %v5870_v62 = vadd.f32 %v5869_v45, %v5562_v52  ;;  %v4796_v47 = vmul.f32 0.4, %v4540_v34  ;;  %v4542_v55 = vmax.f32 %v4146_v61, 0.0  ;;  %6185 = vmatprep.subr.bf16.mxu0 %v6012_v35  ;;  %v5058_v41 = vmul.f32 0.6, %v573_v20  ;;  %v7523_v45 = vld [vmem:[%s8027_s29 + $0x2b0] sm:$0xff] }
 0x545   : > { %v5307_v48 = vadd.f32 %v5051_v59, %v4795_v14  ;;  %v4797_v16 = vmul.f32 0.4, %v4541_v12  ;;  %6186 = vmatpush1.bf16.msra.mxu0 %v6011_v10  ;;  %v5059_v11 = vmul.f32 0.6, %v574_v3  ;;  %v5060_v9 = vmul.f32 0.6, %v575_v32 }
 0x546   : > { %v5308_v29 = vadd.f32 %v5052_v40, %v4796_v47  ;;  %v4798_v51 = vmul.f32 0.4, %v4542_v55  ;;  %v5061_v26 = vmul.f32 0.6, %v576_v39  ;;  %v577_v43 = vunpack.c.h.bf16 %v7522_v24 }
 0x547   : > { %v5563_v19 = vmul.f32 %v5307_v48, %v5307_v48  ;;  %v5309_v31 = vadd.f32 %v5053_v4, %v4797_v16  ;;  %v578_v52 = vunpack.c.l.bf16 %v7523_v45  ;;  %v579_v34 = vunpack.c.h.bf16 %v7523_v45 }
 0x548   : > { %v5564_v63 = vmul.f32 %v5308_v29, %v5308_v29  ;;  %v5310_v21 = vadd.f32 %v5054_v28, %v4798_v51  ;;  %v4150_v50 = vpop.f32.mrb[228].mxu1 }
 0x549   : > { %v5738_v1 = vadd.f32 %v5737_v58, %v5563_v19  ;;  %v5565_v33 = vmul.f32 %v5309_v31, %v5309_v31  ;;  %v6013_v53 = vpack.c.bf16 %v5309_v31, %v5307_v48  ;;  %v4543_v36 = vmax.f32 %v4150_v50, 0.0  ;;  %v4152_v2 = vpop.f32.mrb[229].mxu1 }
 0x54a   : > { %v5871_v37 = vadd.f32 %v5870_v62, %v5564_v63  ;;  %v5566_v60 = vmul.f32 %v5310_v21, %v5310_v21  ;;  %v4544_v5 = vmax.f32 %v4152_v2, 0.0  ;;  %v4154_v54 = vpop.f32.mrb[230].mxu1  ;;  %v6014_v17 = vpack.c.bf16 %v5310_v21, %v5308_v29  ;;  %v7524_v29 = vld [vmem:[%s8027_s29 + $0x2b8] sm:$0xff] }
 0x54b   : > { %v5739_v6 = vadd.f32 %v5738_v1, %v5565_v33  ;;  %v4799_v18 = vmul.f32 0.4, %v4543_v36  ;;  %v4545_v0 = vmax.f32 %v4154_v54, 0.0  ;;  %v4156_v38 = vpop.f32.mrb[231].mxu1  ;;  %v580_v51 = vunpack.c.l.bf16 %v7524_v29 }
 0x54c   : > { %v5872_v59 = vadd.f32 %v5871_v37, %v5566_v60  ;;  %v4800_v40 = vmul.f32 0.4, %v4544_v5  ;;  %v4546_v25 = vmax.f32 %v4156_v38, 0.0  ;;  %6187 = vmatprep.subr.bf16.mxu0 %v6014_v17  ;;  %v5062_v31 = vmul.f32 0.6, %v577_v43  ;;  %v7525_v37 = vld [vmem:[%s8027_s29 + $0x2c0] sm:$0xff] }
 0x54d   : > { %v5311_v4 = vadd.f32 %v5055_v23, %v4799_v18  ;;  %v4801_v7 = vmul.f32 0.4, %v4545_v0  ;;  %6188 = vmatpush1.bf16.msra.mxu0 %v6013_v53  ;;  %v5063_v50 = vmul.f32 0.6, %v578_v52  ;;  %v5064_v22 = vmul.f32 0.6, %v579_v34 }
 0x54e   : > { %v5312_v56 = vadd.f32 %v5056_v30, %v4800_v40  ;;  %v4802_v8 = vmul.f32 0.4, %v4546_v25  ;;  %v5065_v1 = vmul.f32 0.6, %v580_v51  ;;  %v581_v33 = vunpack.c.h.bf16 %v7524_v29 }
 0x54f   : > { %v5567_v57 = vmul.f32 %v5311_v4, %v5311_v4  ;;  %v5313_v42 = vadd.f32 %v5057_v49, %v4801_v7  ;;  %v582_v60 = vunpack.c.l.bf16 %v7525_v37  ;;  %v583_v5 = vunpack.c.h.bf16 %v7525_v37 }
 0x550   : > { %v5568_v10 = vmul.f32 %v5312_v56, %v5312_v56  ;;  %v5314_v44 = vadd.f32 %v5058_v41, %v4802_v8  ;;  %v4160_v27 = vpop.f32.mrb[232].mxu1 }
 0x551   : > { %v5740_v13 = vadd.f32 %v5739_v6, %v5567_v57  ;;  %v5569_v35 = vmul.f32 %v5313_v42, %v5313_v42  ;;  %v6015_v58 = vpack.c.bf16 %v5313_v42, %v5311_v4  ;;  %v4547_v14 = vmax.f32 %v4160_v27, 0.0  ;;  %v4162_v12 = vpop.f32.mrb[233].mxu1 }
 0x552   : > { %v5873_v61 = vadd.f32 %v5872_v59, %v5568_v10  ;;  %v5570_v46 = vmul.f32 %v5314_v44, %v5314_v44  ;;  %v4548_v15 = vmax.f32 %v4162_v12, 0.0  ;;  %v4164_v62 = vpop.f32.mrb[234].mxu1  ;;  %v6016_v47 = vpack.c.bf16 %v5314_v44, %v5312_v56  ;;  %v7526_v56 = vld [vmem:[%s8027_s29 + $0x2c8] sm:$0xff] }
 0x553   : > { %v5741_v55 = vadd.f32 %v5740_v13, %v5569_v35  ;;  %v4803_v28 = vmul.f32 0.4, %v4547_v14  ;;  %v4549_v48 = vmax.f32 %v4164_v62, 0.0  ;;  %v4166_v16 = vpop.f32.mrb[235].mxu1  ;;  %v584_v8 = vunpack.c.l.bf16 %v7526_v56 }
 0x554   : > { %v5874_v23 = vadd.f32 %v5873_v61, %v5570_v46  ;;  %v4804_v30 = vmul.f32 0.4, %v4548_v15  ;;  %v4550_v19 = vmax.f32 %v4166_v16, 0.0  ;;  %6189 = vmatprep.subr.bf16.mxu0 %v6016_v47  ;;  %v5066_v42 = vmul.f32 0.6, %v581_v33  ;;  %v7527_v61 = vld [vmem:[%s8027_s29 + $0x2d0] sm:$0xff] }
 0x555   : > { %v5315_v49 = vadd.f32 %v5059_v11, %v4803_v28  ;;  %v4805_v20 = vmul.f32 0.4, %v4549_v48  ;;  %6190 = vmatpush1.bf16.msra.mxu0 %v6015_v58  ;;  %v5067_v27 = vmul.f32 0.6, %v582_v60  ;;  %v5068_v45 = vmul.f32 0.6, %v583_v5 }
 0x556   : > { %v5316_v63 = vadd.f32 %v5060_v9, %v4804_v30  ;;  %v4806_v21 = vmul.f32 0.4, %v4550_v19  ;;  %v5069_v13 = vmul.f32 0.6, %v584_v8  ;;  %v585_v35 = vunpack.c.h.bf16 %v7526_v56 }
 0x557   : > { %v5571_v3 = vmul.f32 %v5315_v49, %v5315_v49  ;;  %v5317_v32 = vadd.f32 %v5061_v26, %v4805_v20  ;;  %v586_v46 = vunpack.c.l.bf16 %v7527_v61  ;;  %v587_v15 = vunpack.c.h.bf16 %v7527_v61 }
 0x558   : > { %v5572_v53 = vmul.f32 %v5316_v63, %v5316_v63  ;;  %v5318_v36 = vadd.f32 %v5062_v31, %v4806_v21  ;;  %v4170_v2 = vpop.f32.mrb[236].mxu1 }
 0x559   : > { %v5742_v54 = vadd.f32 %v5741_v55, %v5571_v3  ;;  %v5573_v17 = vmul.f32 %v5317_v32, %v5317_v32  ;;  %v6017_v6 = vpack.c.bf16 %v5317_v32, %v5315_v49  ;;  %v4551_v18 = vmax.f32 %v4170_v2, 0.0  ;;  %v4172_v0 = vpop.f32.mrb[237].mxu1 }
 0x55a   : > { %v5875_v38 = vadd.f32 %v5874_v23, %v5572_v53  ;;  %v5574_v24 = vmul.f32 %v5318_v36, %v5318_v36  ;;  %v4552_v39 = vmax.f32 %v4172_v0, 0.0  ;;  %v4174_v59 = vpop.f32.mrb[238].mxu1  ;;  %v6018_v40 = vpack.c.bf16 %v5318_v36, %v5316_v63  ;;  %v7528_v63 = vld [vmem:[%s8027_s29 + $0x2d8] sm:$0xff] }
 0x55b   : > { %v5743_v25 = vadd.f32 %v5742_v54, %v5573_v17  ;;  %v4807_v41 = vmul.f32 0.4, %v4551_v18  ;;  %v4553_v4 = vmax.f32 %v4174_v59, 0.0  ;;  %v4176_v7 = vpop.f32.mrb[239].mxu1  ;;  %v588_v21 = vunpack.c.l.bf16 %v7528_v63 }
 0x55c   : > { %v5876_v11 = vadd.f32 %v5875_v38, %v5574_v24  ;;  %v4808_v9 = vmul.f32 0.4, %v4552_v39  ;;  %v4554_v57 = vmax.f32 %v4176_v7, 0.0  ;;  %6191 = vmatprep.subr.bf16.mxu0 %v6018_v40  ;;  %v5070_v32 = vmul.f32 0.6, %v585_v35  ;;  %v7529_v38 = vld [vmem:[%s8027_s29 + $0x2e0] sm:$0xff] }
 0x55d   : > { %v5319_v26 = vadd.f32 %v5063_v50, %v4807_v41  ;;  %v4809_v43 = vmul.f32 0.4, %v4553_v4  ;;  %6192 = vmatpush1.bf16.msra.mxu0 %v6017_v6  ;;  %v5071_v2 = vmul.f32 0.6, %v586_v46  ;;  %v5072_v37 = vmul.f32 0.6, %v587_v15 }
 0x55e   : > { %v5320_v10 = vadd.f32 %v5064_v22, %v4808_v9  ;;  %v4810_v44 = vmul.f32 0.4, %v4554_v57  ;;  %v5073_v54 = vmul.f32 0.6, %v588_v21  ;;  %v589_v17 = vunpack.c.h.bf16 %v7528_v63 }
 0x55f   : > { %v5575_v52 = vmul.f32 %v5319_v26, %v5319_v26  ;;  %v5321_v34 = vadd.f32 %v5065_v1, %v4809_v43  ;;  %v590_v24 = vunpack.c.l.bf16 %v7529_v38  ;;  %v591_v39 = vunpack.c.h.bf16 %v7529_v38 }
 0x560   : > { %v5576_v58 = vmul.f32 %v5320_v10, %v5320_v10  ;;  %v5322_v14 = vadd.f32 %v5066_v42, %v4810_v44  ;;  %v4180_v12 = vpop.f32.mrb[240].mxu1 }
 0x561   : > { %v5744_v62 = vadd.f32 %v5743_v25, %v5575_v52  ;;  %v5577_v47 = vmul.f32 %v5321_v34, %v5321_v34  ;;  %v6019_v55 = vpack.c.bf16 %v5321_v34, %v5319_v26  ;;  %v4555_v28 = vmax.f32 %v4180_v12, 0.0  ;;  %v4182_v48 = vpop.f32.mrb[241].mxu1 }
 0x562   : > { %v5877_v16 = vadd.f32 %v5876_v11, %v5576_v58  ;;  %v5578_v29 = vmul.f32 %v5322_v14, %v5322_v14  ;;  %v4556_v51 = vmax.f32 %v4182_v48, 0.0  ;;  %v4184_v23 = vpop.f32.mrb[242].mxu1  ;;  %v6020_v30 = vpack.c.bf16 %v5322_v14, %v5320_v10  ;;  %v7530_v10 = vld [vmem:[%s8027_s29 + $0x2e8] sm:$0xff] }
 0x563   : > { %v5745_v19 = vadd.f32 %v5744_v62, %v5577_v47  ;;  %v4811_v31 = vmul.f32 0.4, %v4555_v28  ;;  %v4557_v49 = vmax.f32 %v4184_v23, 0.0  ;;  %v4186_v20 = vpop.f32.mrb[243].mxu1  ;;  %v592_v44 = vunpack.c.l.bf16 %v7530_v10 }
 0x564   : > { %v5878_v50 = vadd.f32 %v5877_v16, %v5578_v29  ;;  %v4812_v22 = vmul.f32 0.4, %v4556_v51  ;;  %v4558_v3 = vmax.f32 %v4186_v20, 0.0  ;;  %6193 = vmatprep.subr.bf16.mxu0 %v6020_v30  ;;  %v5074_v34 = vmul.f32 0.6, %v589_v17  ;;  %v7531_v16 = vld [vmem:[%s8027_s29 + $0x2f0] sm:$0xff] }
 0x565   : > { %v5323_v1 = vadd.f32 %v5067_v27, %v4811_v31  ;;  %v4813_v33 = vmul.f32 0.4, %v4557_v49  ;;  %6194 = vmatpush1.bf16.msra.mxu0 %v6019_v55  ;;  %v5075_v12 = vmul.f32 0.6, %v590_v24  ;;  %v5076_v61 = vmul.f32 0.6, %v591_v39 }
 0x566   : > { %v5324_v53 = vadd.f32 %v5068_v45, %v4812_v22  ;;  %v4814_v36 = vmul.f32 0.4, %v4558_v3  ;;  %v5077_v62 = vmul.f32 0.6, %v592_v44  ;;  %v593_v47 = vunpack.c.h.bf16 %v7530_v10 }
 0x567   : > { %v5579_v60 = vmul.f32 %v5323_v1, %v5323_v1  ;;  %v5325_v5 = vadd.f32 %v5069_v13, %v4813_v33  ;;  %v594_v29 = vunpack.c.l.bf16 %v7531_v16  ;;  %v595_v51 = vunpack.c.h.bf16 %v7531_v16 }
 0x568   : > { %v5580_v6 = vmul.f32 %v5324_v53, %v5324_v53  ;;  %v5326_v18 = vadd.f32 %v5070_v32, %v4814_v36  ;;  %v4190_v0 = vpop.f32.mrb[244].mxu1 }
 0x569   : > { %v5746_v59 = vadd.f32 %v5745_v19, %v5579_v60  ;;  %v5581_v40 = vmul.f32 %v5325_v5, %v5325_v5  ;;  %v6021_v25 = vpack.c.bf16 %v5325_v5, %v5323_v1  ;;  %v4559_v41 = vmax.f32 %v4190_v0, 0.0  ;;  %v4192_v4 = vpop.f32.mrb[245].mxu1 }
 0x56a   : > { %v5879_v7 = vadd.f32 %v5878_v50, %v5580_v6  ;;  %v5582_v56 = vmul.f32 %v5326_v18, %v5326_v18  ;;  %v4560_v8 = vmax.f32 %v4192_v4, 0.0  ;;  %v4194_v11 = vpop.f32.mrb[246].mxu1  ;;  %v6022_v9 = vpack.c.bf16 %v5326_v18, %v5324_v53  ;;  %v7532_v53 = vld [vmem:[%s8027_s29 + $0x2f8] sm:$0xff] }
 0x56b   : > { %v5747_v57 = vadd.f32 %v5746_v59, %v5581_v40  ;;  %v4815_v42 = vmul.f32 0.4, %v4559_v41  ;;  %v4561_v26 = vmax.f32 %v4194_v11, 0.0  ;;  %v4196_v43 = vpop.f32.mrb[247].mxu1  ;;  %v596_v36 = vunpack.c.l.bf16 %v7532_v53  ;;  %v7534_v11 = vld [vmem:[%s8027_s29 + $0x308] sm:$0xff] }
 0x56c   : > { %v5880_v27 = vadd.f32 %v5879_v7, %v5582_v56  ;;  %v4816_v45 = vmul.f32 0.4, %v4560_v8  ;;  %v4562_v52 = vmax.f32 %v4196_v43, 0.0  ;;  %6195 = vmatprep.subr.bf16.mxu0 %v6022_v9  ;;  %v5078_v5 = vmul.f32 0.6, %v593_v47 }
 0x56d   : > { %v5327_v13 = vadd.f32 %v5071_v2, %v4815_v42  ;;  %v4817_v35 = vmul.f32 0.4, %v4561_v26  ;;  %6196 = vmatpush1.bf16.msra.mxu0 %v6021_v25  ;;  %v5079_v6 = vmul.f32 0.6, %v594_v29  ;;  %v5080_v38 = vmul.f32 0.6, %v595_v51 }
 0x56e   : > { %v5328_v58 = vadd.f32 %v5072_v37, %v4816_v45  ;;  %v4818_v14 = vmul.f32 0.4, %v4562_v52  ;;  %v597_v24 = vunpack.c.h.bf16 %v7532_v53  ;;  %v5081_v40 = vmul.f32 0.6, %v596_v36  ;;  %v7533_v25 = vld [vmem:[%s8027_s29 + $0x300] sm:$0xff] }
 0x56f   : > { %v5583_v46 = vmul.f32 %v5327_v13, %v5327_v13  ;;  %v5329_v15 = vadd.f32 %v5073_v54, %v4817_v35  ;;  %v598_v41 = vunpack.c.l.bf16 %v7533_v25  ;;  %v599_v8 = vunpack.c.h.bf16 %v7533_v25  ;;  %v5932_v25 = vld [vmem:[#allocation8 + $0x18] sm:$0xff] }
 0x570   : > { %v5584_v55 = vmul.f32 %v5328_v58, %v5328_v58  ;;  %v5330_v28 = vadd.f32 %v5074_v34, %v4818_v14  ;;  %v4200_v48 = vpop.f32.mrb[248].mxu1  ;;  %v600_v9 = vunpack.c.l.bf16 %v7534_v11 }
 0x571   : > { %v5748_v23 = vadd.f32 %v5747_v57, %v5583_v46  ;;  %v5585_v30 = vmul.f32 %v5329_v15, %v5329_v15  ;;  %v6023_v19 = vpack.c.bf16 %v5329_v15, %v5327_v13  ;;  %v4563_v31 = vmax.f32 %v4200_v48, 0.0  ;;  %v4202_v49 = vpop.f32.mrb[249].mxu1 }
 0x572   : > { %v5881_v20 = vadd.f32 %v5880_v27, %v5584_v55  ;;  %v5586_v63 = vmul.f32 %v5330_v28, %v5330_v28  ;;  %v4564_v21 = vmax.f32 %v4202_v49, 0.0  ;;  %v4204_v50 = vpop.f32.mrb[250].mxu1  ;;  %v6024_v22 = vpack.c.bf16 %v5330_v28, %v5328_v58 }
 0x573   : > { %v5749_v3 = vadd.f32 %v5748_v23, %v5585_v30  ;;  %v4819_v32 = vmul.f32 0.4, %v4563_v31  ;;  %v4565_v1 = vmax.f32 %v4204_v50, 0.0  ;;  %v4206_v33 = vpop.f32.mrb[251].mxu1  ;;  %v5083_v16 = vmul.f32 0.6, %v598_v41 }
 0x574   : > { %v5882_v2 = vadd.f32 %v5881_v20, %v5586_v63  ;;  %v4820_v37 = vmul.f32 0.4, %v4564_v21  ;;  %v4566_v60 = vmax.f32 %v4206_v33, 0.0  ;;  %6197 = vmatprep.subr.bf16.mxu0 %v6024_v22  ;;  %v5084_v29 = vmul.f32 0.6, %v599_v8  ;;  %v7535_v63 = vld [vmem:[%s8027_s29 + $0x310] sm:$0xff] }
 0x575   : > { %v5331_v54 = vadd.f32 %v5075_v12, %v4819_v32  ;;  %v4821_v17 = vmul.f32 0.4, %v4565_v1  ;;  %6198 = vmatpush1.bf16.msra.mxu0 %v6023_v19  ;;  %v601_v12 = vunpack.c.h.bf16 %v7534_v11  ;;  %v5085_v30 = vmul.f32 0.6, %v600_v9 }
 0x576   : > { %v5332_v18 = vadd.f32 %v5076_v61, %v4820_v37  ;;  %v4822_v0 = vmul.f32 0.4, %v4566_v60  ;;  %v602_v21 = vunpack.c.l.bf16 %v7535_v63  ;;  %v603_v50 = vunpack.c.h.bf16 %v7535_v63 }
 0x577   : > { %v5587_v39 = vmul.f32 %v5331_v54, %v5331_v54  ;;  %v5333_v59 = vadd.f32 %v5077_v62, %v4821_v17  ;;  %v5082_v62 = vmul.f32 0.6, %v597_v24  ;;  %v5086_v19 = vmul.f32 0.6, %v601_v12 }
 0x578   : > { %v5588_v4 = vmul.f32 %v5332_v18, %v5332_v18  ;;  %v5334_v7 = vadd.f32 %v5078_v5, %v4822_v0  ;;  %v4210_v56 = vpop.f32.mrb[252].mxu1  ;;  %v5087_v11 = vmul.f32 0.6, %v602_v21  ;;  %v5088_v9 = vmul.f32 0.6, %v603_v50 }
 0x579   : > { %v5750_v57 = vadd.f32 %v5749_v3, %v5587_v39  ;;  %v5589_v42 = vmul.f32 %v5333_v59, %v5333_v59  ;;  %v6025_v26 = vpack.c.bf16 %v5333_v59, %v5331_v54  ;;  %v4567_v43 = vmax.f32 %v4210_v56, 0.0  ;;  %v4212_v10 = vpop.f32.mrb[253].mxu1  ;;  %v7537_v59 = vld [vmem:[#allocation8 + $0x10] sm:$0xff] }
 0x57a   : > { %v5883_v44 = vadd.f32 %v5882_v2, %v5588_v4  ;;  %v5590_v27 = vmul.f32 %v5334_v7, %v5334_v7  ;;  %v4568_v45 = vmax.f32 %v4212_v10, 0.0  ;;  %v4214_v52 = vpop.f32.mrb[254].mxu1  ;;  %v6026_v34 = vpack.c.bf16 %v5334_v7, %v5332_v18  ;;  %v7536_v18 = vld [vmem:[%s8027_s29 + $0x318] sm:$0xff] }
 0x57b   : > { %v5751_v13 = vadd.f32 %v5750_v57, %v5589_v42  ;;  %v4823_v35 = vmul.f32 0.4, %v4567_v43  ;;  %v4569_v58 = vmax.f32 %v4214_v52, 0.0  ;;  %v4216_v14 = vpop.f32.mrb[255].mxu1  ;;  %v604_v0 = vunpack.c.l.bf16 %v7536_v18 }
 0x57c   : > { %v5884_v61 = vadd.f32 %v5883_v44, %v5590_v27  ;;  %v4824_v46 = vmul.f32 0.4, %v4568_v45  ;;  %v4570_v15 = vmax.f32 %v4216_v14, 0.0  ;;  %6199 = vmatprep.subr.bf16.mxu0 %v6026_v34  ;;  %v6794_v7 = vcombine.high %v5932_v25, %v5932_v25  ;;  %v7538_v45 = vld [vmem:[%s8027_s29 + $0x320] sm:$0xff] }
 0x57d   : > { %v5335_v47 = vadd.f32 %v5079_v6, %v4823_v35  ;;  %v4825_v55 = vmul.f32 0.4, %v4569_v58  ;;  %6200 = vmatpush1.bf16.msra.mxu0 %v6025_v26  ;;  %v5089_v26 = vmul.f32 0.6, %v604_v0  ;;  %v605_v43 = vunpack.c.h.bf16 %v7536_v18 }
 0x57e   : > { %v5336_v28 = vadd.f32 %v5080_v38, %v4824_v46  ;;  %v4826_v48 = vmul.f32 0.4, %v4570_v15  ;;  %v606_v52 = vunpack.c.l.bf16 %v7538_v45  ;;  %v607_v34 = vunpack.c.h.bf16 %v7538_v45 }
 0x57f   : > { %v5591_v51 = vmul.f32 %v5335_v47, %v5335_v47  ;;  %v5337_v23 = vadd.f32 %v5081_v40, %v4825_v55  ;;  %v6791_v40 = vcombine.low %v7537_v59, %v7537_v59 }
 0x580   : > { %v5592_v31 = vmul.f32 %v5336_v28, %v5336_v28  ;;  %v5338_v49 = vadd.f32 %v5082_v62, %v4826_v48  ;;  %v4220_v20 = vpop.f32.mrb[0].mxu1  ;;  %v5091_v50 = vmul.f32 0.6, %v606_v52 }
 0x581   : > { %v5752_v22 = vadd.f32 %v5751_v13, %v5591_v51  ;;  %v5593_v3 = vmul.f32 %v5337_v23, %v5337_v23  ;;  %v6027_v32 = vpack.c.bf16 %v5337_v23, %v5335_v47  ;;  %v4571_v1 = vmax.f32 %v4220_v20, 0.0  ;;  %v4222_v33 = vpop.f32.mrb[1].mxu1 }
 0x582   : > { %v5885_v53 = vadd.f32 %v5884_v61, %v5592_v31  ;;  %v5594_v36 = vmul.f32 %v5338_v49, %v5338_v49  ;;  %v4572_v2 = vmax.f32 %v4222_v33, 0.0  ;;  %v4224_v37 = vpop.f32.mrb[2].mxu1  ;;  %v6028_v60 = vpack.c.bf16 %v5338_v49, %v5336_v28 }
 0x583   : > { %v5753_v5 = vadd.f32 %v5752_v22, %v5593_v3  ;;  %v4827_v54 = vmul.f32 0.4, %v4571_v1  ;;  %v4573_v17 = vmax.f32 %v4224_v37, 0.0  ;;  %v4226_v6 = vpop.f32.mrb[3].mxu1  ;;  %v5090_v31 = vmul.f32 0.6, %v605_v43 }
 0x584   : > { %v5886_v38 = vadd.f32 %v5885_v53, %v5594_v36  ;;  %v4828_v24 = vmul.f32 0.4, %v4572_v2  ;;  %v4574_v39 = vmax.f32 %v4226_v6, 0.0  ;;  %6201 = vmatprep.subr.bf16.mxu0 %v6028_v60  ;;  %v5092_v22 = vmul.f32 0.6, %v607_v34  ;;  %v7540_v37 = vld [vmem:[%s8027_s29 + $0x330] sm:$0xff] }
 0x585   : > { %v5339_v41 = vadd.f32 %v5083_v16, %v4827_v54  ;;  %v4829_v4 = vmul.f32 0.4, %v4573_v17  ;;  %6202 = vmatpush1.bf16.msra.mxu0 %v6027_v32  ;;  %v610_v60 = vunpack.c.l.bf16 %v7540_v37 }
 0x586   : > { %v5340_v56 = vadd.f32 %v5084_v29, %v4828_v24  ;;  %v4830_v8 = vmul.f32 0.4, %v4574_v39  ;;  %v7539_v29 = vld [vmem:[%s8027_s29 + $0x328] sm:$0xff] }
 0x587   : > { %v5595_v57 = vmul.f32 %v5339_v41, %v5339_v41  ;;  %v5341_v42 = vadd.f32 %v5085_v30, %v4829_v4  ;;  %v608_v51 = vunpack.c.l.bf16 %v7539_v29  ;;  %v609_v33 = vunpack.c.h.bf16 %v7539_v29 }
 0x588   : > { %v5596_v10 = vmul.f32 %v5340_v56, %v5340_v56  ;;  %v5342_v44 = vadd.f32 %v5086_v19, %v4830_v8  ;;  %v4230_v27 = vpop.f32.mrb[4].mxu1  ;;  %6204 = vmatmul.mubr.bf16.vlgmr.msra.gmra.mrb[64].mxu0 %v6791_v40 }
 0x589   : > { %v5754_v13 = vadd.f32 %v5753_v5, %v5595_v57  ;;  %v5597_v35 = vmul.f32 %v5341_v42, %v5341_v42  ;;  %v6029_v58 = vpack.c.bf16 %v5341_v42, %v5339_v41  ;;  %v4575_v14 = vmax.f32 %v4230_v27, 0.0  ;;  %v4232_v12 = vpop.f32.mrb[5].mxu1  ;;  %6244 = vmatprep.mubr.bf16.mxu0 %v6794_v7 }
 0x58a   : > { %v5887_v61 = vadd.f32 %v5886_v38, %v5596_v10  ;;  %v5598_v46 = vmul.f32 %v5342_v44, %v5342_v44  ;;  %v4576_v15 = vmax.f32 %v4232_v12, 0.0  ;;  %v4234_v62 = vpop.f32.mrb[6].mxu1  ;;  %v6030_v47 = vpack.c.bf16 %v5342_v44, %v5340_v56  ;;  %v7541_v56 = vld [vmem:[%s8027_s29 + $0x338] sm:$0xff] }
 0x58b   : > { %v5755_v55 = vadd.f32 %v5754_v13, %v5597_v35  ;;  %v4831_v28 = vmul.f32 0.4, %v4575_v14  ;;  %v4577_v48 = vmax.f32 %v4234_v62, 0.0  ;;  %v4236_v16 = vpop.f32.mrb[7].mxu1  ;;  %v5093_v1 = vmul.f32 0.6, %v608_v51 }
 0x58c   : > { %v5888_v23 = vadd.f32 %v5887_v61, %v5598_v46  ;;  %v4832_v30 = vmul.f32 0.4, %v4576_v15  ;;  %v4578_v19 = vmax.f32 %v4236_v16, 0.0  ;;  %6212 = vmatprep.subr.bf16.mxu0 %v6030_v47  ;;  %v611_v5 = vunpack.c.h.bf16 %v7540_v37  ;;  %v7542_v61 = vld [vmem:[%s8027_s29 + $0x340] sm:$0xff] }
 0x58d   : > { %v5343_v49 = vadd.f32 %v5087_v11, %v4831_v28  ;;  %v4833_v20 = vmul.f32 0.4, %v4577_v48  ;;  %6213 = vmatpush1.bf16.msra.mxu0 %v6029_v58  ;;  %v612_v8 = vunpack.c.l.bf16 %v7541_v56  ;;  %v5094_v42 = vmul.f32 0.6, %v609_v33 }
 0x58e   : > { %v5344_v63 = vadd.f32 %v5088_v9, %v4832_v30  ;;  %v4834_v21 = vmul.f32 0.4, %v4578_v19  ;;  %v5095_v27 = vmul.f32 0.6, %v610_v60  ;;  %v5096_v45 = vmul.f32 0.6, %v611_v5 }
 0x58f   : > { %v5599_v3 = vmul.f32 %v5343_v49, %v5343_v49  ;;  %v5345_v32 = vadd.f32 %v5089_v26, %v4833_v20  ;;  %v5097_v13 = vmul.f32 0.6, %v612_v8  ;;  %v613_v35 = vunpack.c.h.bf16 %v7541_v56 }
 0x590   : > { %v5600_v53 = vmul.f32 %v5344_v63, %v5344_v63  ;;  %v5346_v36 = vadd.f32 %v5090_v31, %v4834_v21  ;;  %v4240_v2 = vpop.f32.mrb[8].mxu1  ;;  %v614_v46 = vunpack.c.l.bf16 %v7542_v61  ;;  %v615_v15 = vunpack.c.h.bf16 %v7542_v61 }
 0x591   : > { %v5756_v54 = vadd.f32 %v5755_v55, %v5599_v3  ;;  %v5601_v17 = vmul.f32 %v5345_v32, %v5345_v32  ;;  %v6031_v6 = vpack.c.bf16 %v5345_v32, %v5343_v49  ;;  %v4579_v18 = vmax.f32 %v4240_v2, 0.0  ;;  %v4242_v0 = vpop.f32.mrb[9].mxu1 }
 0x592   : > { %v5889_v38 = vadd.f32 %v5888_v23, %v5600_v53  ;;  %v5602_v24 = vmul.f32 %v5346_v36, %v5346_v36  ;;  %v4580_v39 = vmax.f32 %v4242_v0, 0.0  ;;  %v4244_v59 = vpop.f32.mrb[10].mxu1  ;;  %v6032_v40 = vpack.c.bf16 %v5346_v36, %v5344_v63  ;;  %v7543_v63 = vld [vmem:[%s8027_s29 + $0x348] sm:$0xff] }
 0x593   : > { %v5757_v25 = vadd.f32 %v5756_v54, %v5601_v17  ;;  %v4835_v41 = vmul.f32 0.4, %v4579_v18  ;;  %v4581_v4 = vmax.f32 %v4244_v59, 0.0  ;;  %v4246_v7 = vpop.f32.mrb[11].mxu1  ;;  %v616_v21 = vunpack.c.l.bf16 %v7543_v63 }
 0x594   : > { %v5890_v11 = vadd.f32 %v5889_v38, %v5602_v24  ;;  %v4836_v9 = vmul.f32 0.4, %v4580_v39  ;;  %v4582_v57 = vmax.f32 %v4246_v7, 0.0  ;;  %6214 = vmatprep.subr.bf16.mxu0 %v6032_v40  ;;  %v5098_v32 = vmul.f32 0.6, %v613_v35  ;;  %v7544_v38 = vld [vmem:[%s8027_s29 + $0x350] sm:$0xff] }
 0x595   : > { %v5347_v26 = vadd.f32 %v5091_v50, %v4835_v41  ;;  %v4837_v43 = vmul.f32 0.4, %v4581_v4  ;;  %6215 = vmatpush1.bf16.msra.mxu0 %v6031_v6  ;;  %v5099_v2 = vmul.f32 0.6, %v614_v46  ;;  %v5100_v37 = vmul.f32 0.6, %v615_v15 }
 0x596   : > { %v5348_v10 = vadd.f32 %v5092_v22, %v4836_v9  ;;  %v4838_v44 = vmul.f32 0.4, %v4582_v57  ;;  %v5101_v54 = vmul.f32 0.6, %v616_v21  ;;  %v617_v17 = vunpack.c.h.bf16 %v7543_v63 }
 0x597   : > { %v5603_v52 = vmul.f32 %v5347_v26, %v5347_v26  ;;  %v5349_v34 = vadd.f32 %v5093_v1, %v4837_v43  ;;  %v618_v24 = vunpack.c.l.bf16 %v7544_v38  ;;  %v619_v39 = vunpack.c.h.bf16 %v7544_v38 }
 0x598   : > { %v5604_v58 = vmul.f32 %v5348_v10, %v5348_v10  ;;  %v5350_v14 = vadd.f32 %v5094_v42, %v4838_v44  ;;  %v4250_v12 = vpop.f32.mrb[12].mxu1 }
 0x599   : > { %v5758_v62 = vadd.f32 %v5757_v25, %v5603_v52  ;;  %v5605_v47 = vmul.f32 %v5349_v34, %v5349_v34  ;;  %v6033_v55 = vpack.c.bf16 %v5349_v34, %v5347_v26  ;;  %v4583_v28 = vmax.f32 %v4250_v12, 0.0  ;;  %v4252_v48 = vpop.f32.mrb[13].mxu1 }
 0x59a   : > { %v5891_v16 = vadd.f32 %v5890_v11, %v5604_v58  ;;  %v5606_v29 = vmul.f32 %v5350_v14, %v5350_v14  ;;  %v4584_v51 = vmax.f32 %v4252_v48, 0.0  ;;  %v4254_v23 = vpop.f32.mrb[14].mxu1  ;;  %v6034_v30 = vpack.c.bf16 %v5350_v14, %v5348_v10  ;;  %v7545_v10 = vld [vmem:[%s8027_s29 + $0x358] sm:$0xff] }
 0x59b   : > { %v5759_v19 = vadd.f32 %v5758_v62, %v5605_v47  ;;  %v4839_v31 = vmul.f32 0.4, %v4583_v28  ;;  %v4585_v49 = vmax.f32 %v4254_v23, 0.0  ;;  %v4256_v20 = vpop.f32.mrb[15].mxu1  ;;  %v620_v44 = vunpack.c.l.bf16 %v7545_v10 }
 0x59c   : > { %v5892_v50 = vadd.f32 %v5891_v16, %v5606_v29  ;;  %v4840_v22 = vmul.f32 0.4, %v4584_v51  ;;  %v4586_v3 = vmax.f32 %v4256_v20, 0.0  ;;  %6216 = vmatprep.subr.bf16.mxu0 %v6034_v30  ;;  %v5102_v34 = vmul.f32 0.6, %v617_v17  ;;  %v7546_v16 = vld [vmem:[%s8027_s29 + $0x360] sm:$0xff] }
 0x59d   : > { %v5351_v1 = vadd.f32 %v5095_v27, %v4839_v31  ;;  %v4841_v33 = vmul.f32 0.4, %v4585_v49  ;;  %6217 = vmatpush1.bf16.msra.mxu0 %v6033_v55  ;;  %v5103_v12 = vmul.f32 0.6, %v618_v24  ;;  %v5104_v61 = vmul.f32 0.6, %v619_v39 }
 0x59e   : > { %v5352_v53 = vadd.f32 %v5096_v45, %v4840_v22  ;;  %v4842_v36 = vmul.f32 0.4, %v4586_v3  ;;  %v5105_v62 = vmul.f32 0.6, %v620_v44  ;;  %v621_v47 = vunpack.c.h.bf16 %v7545_v10 }
 0x59f   : > { %v5607_v60 = vmul.f32 %v5351_v1, %v5351_v1  ;;  %v5353_v5 = vadd.f32 %v5097_v13, %v4841_v33  ;;  %v622_v29 = vunpack.c.l.bf16 %v7546_v16  ;;  %v623_v51 = vunpack.c.h.bf16 %v7546_v16 }
 0x5a0   : > { %v5608_v6 = vmul.f32 %v5352_v53, %v5352_v53  ;;  %v5354_v18 = vadd.f32 %v5098_v32, %v4842_v36  ;;  %v4260_v0 = vpop.f32.mrb[16].mxu1 }
 0x5a1   : > { %v5760_v59 = vadd.f32 %v5759_v19, %v5607_v60  ;;  %v5609_v40 = vmul.f32 %v5353_v5, %v5353_v5  ;;  %v6035_v25 = vpack.c.bf16 %v5353_v5, %v5351_v1  ;;  %v4587_v41 = vmax.f32 %v4260_v0, 0.0  ;;  %v4262_v4 = vpop.f32.mrb[17].mxu1 }
 0x5a2   : > { %v5893_v7 = vadd.f32 %v5892_v50, %v5608_v6  ;;  %v5610_v56 = vmul.f32 %v5354_v18, %v5354_v18  ;;  %v4588_v8 = vmax.f32 %v4262_v4, 0.0  ;;  %v4264_v11 = vpop.f32.mrb[18].mxu1  ;;  %v6036_v9 = vpack.c.bf16 %v5354_v18, %v5352_v53  ;;  %v7547_v53 = vld [vmem:[%s8027_s29 + $0x368] sm:$0xff] }
 0x5a3   : > { %v5761_v57 = vadd.f32 %v5760_v59, %v5609_v40  ;;  %v4843_v42 = vmul.f32 0.4, %v4587_v41  ;;  %v4589_v26 = vmax.f32 %v4264_v11, 0.0  ;;  %v4266_v43 = vpop.f32.mrb[19].mxu1  ;;  %v624_v36 = vunpack.c.l.bf16 %v7547_v53 }
 0x5a4   : > { %v5894_v27 = vadd.f32 %v5893_v7, %v5610_v56  ;;  %v4844_v45 = vmul.f32 0.4, %v4588_v8  ;;  %v4590_v52 = vmax.f32 %v4266_v43, 0.0  ;;  %6218 = vmatprep.subr.bf16.mxu0 %v6036_v9  ;;  %v5106_v5 = vmul.f32 0.6, %v621_v47  ;;  %v7548_v7 = vld [vmem:[%s8027_s29 + $0x370] sm:$0xff] }
 0x5a5   : > { %v5355_v13 = vadd.f32 %v5099_v2, %v4843_v42  ;;  %v4845_v35 = vmul.f32 0.4, %v4589_v26  ;;  %6219 = vmatpush1.bf16.msra.mxu0 %v6035_v25  ;;  %v5107_v0 = vmul.f32 0.6, %v622_v29  ;;  %v5108_v38 = vmul.f32 0.6, %v623_v51 }
 0x5a6   : > { %v5356_v58 = vadd.f32 %v5100_v37, %v4844_v45  ;;  %v4846_v14 = vmul.f32 0.4, %v4590_v52  ;;  %v5109_v59 = vmul.f32 0.6, %v624_v36  ;;  %v625_v40 = vunpack.c.h.bf16 %v7547_v53 }
 0x5a7   : > { %v5611_v46 = vmul.f32 %v5355_v13, %v5355_v13  ;;  %v5357_v15 = vadd.f32 %v5101_v54, %v4845_v35  ;;  %v626_v56 = vunpack.c.l.bf16 %v7548_v7  ;;  %v627_v8 = vunpack.c.h.bf16 %v7548_v7 }
 0x5a8   : > { %v5612_v55 = vmul.f32 %v5356_v58, %v5356_v58  ;;  %v5358_v28 = vadd.f32 %v5102_v34, %v4846_v14  ;;  %v4270_v48 = vpop.f32.mrb[20].mxu1 }
 0x5a9   : > { %v5762_v23 = vadd.f32 %v5761_v57, %v5611_v46  ;;  %v5613_v30 = vmul.f32 %v5357_v15, %v5357_v15  ;;  %v6037_v19 = vpack.c.bf16 %v5357_v15, %v5355_v13  ;;  %v4591_v31 = vmax.f32 %v4270_v48, 0.0  ;;  %v4272_v49 = vpop.f32.mrb[21].mxu1 }
 0x5aa   : > { %v5895_v20 = vadd.f32 %v5894_v27, %v5612_v55  ;;  %v5614_v63 = vmul.f32 %v5358_v28, %v5358_v28  ;;  %v4592_v21 = vmax.f32 %v4272_v49, 0.0  ;;  %v4274_v50 = vpop.f32.mrb[22].mxu1  ;;  %v6038_v22 = vpack.c.bf16 %v5358_v28, %v5356_v58  ;;  %v7549_v58 = vld [vmem:[%s8027_s29 + $0x378] sm:$0xff] }
 0x5ab   : > { %v5763_v3 = vadd.f32 %v5762_v23, %v5613_v30  ;;  %v4847_v32 = vmul.f32 0.4, %v4591_v31  ;;  %v4593_v1 = vmax.f32 %v4274_v50, 0.0  ;;  %v4276_v33 = vpop.f32.mrb[23].mxu1  ;;  %v628_v14 = vunpack.c.l.bf16 %v7549_v58 }
 0x5ac   : > { %v5896_v2 = vadd.f32 %v5895_v20, %v5614_v63  ;;  %v4848_v37 = vmul.f32 0.4, %v4592_v21  ;;  %v4594_v60 = vmax.f32 %v4276_v33, 0.0  ;;  %6220 = vmatprep.subr.bf16.mxu0 %v6038_v22  ;;  %v5110_v15 = vmul.f32 0.6, %v625_v40  ;;  %v7550_v20 = vld [vmem:[%s8027_s29 + $0x380] sm:$0xff] }
 0x5ad   : > { %v5359_v54 = vadd.f32 %v5103_v12, %v4847_v32  ;;  %v4849_v17 = vmul.f32 0.4, %v4593_v1  ;;  %6221 = vmatpush1.bf16.msra.mxu0 %v6037_v19  ;;  %v5111_v48 = vmul.f32 0.6, %v626_v56  ;;  %v5112_v16 = vmul.f32 0.6, %v627_v8 }
 0x5ae   : > { %v5360_v6 = vadd.f32 %v5104_v61, %v4848_v37  ;;  %v4850_v18 = vmul.f32 0.4, %v4594_v60  ;;  %v5113_v23 = vmul.f32 0.6, %v628_v14  ;;  %v629_v30 = vunpack.c.h.bf16 %v7549_v58 }
 0x5af   : > { %v5615_v24 = vmul.f32 %v5359_v54, %v5359_v54  ;;  %v5361_v39 = vadd.f32 %v5105_v62, %v4849_v17  ;;  %v630_v63 = vunpack.c.l.bf16 %v7550_v20  ;;  %v631_v21 = vunpack.c.h.bf16 %v7550_v20 }
 0x5b0   : > { %v5616_v25 = vmul.f32 %v5360_v6, %v5360_v6  ;;  %v5362_v41 = vadd.f32 %v5106_v5, %v4850_v18  ;;  %v4280_v4 = vpop.f32.mrb[24].mxu1 }
 0x5b1   : > { %v5764_v11 = vadd.f32 %v5763_v3, %v5615_v24  ;;  %v5617_v9 = vmul.f32 %v5361_v39, %v5361_v39  ;;  %v6039_v57 = vpack.c.bf16 %v5361_v39, %v5359_v54  ;;  %v4595_v42 = vmax.f32 %v4280_v4, 0.0  ;;  %v4282_v26 = vpop.f32.mrb[25].mxu1 }
 0x5b2   : > { %v5897_v43 = vadd.f32 %v5896_v2, %v5616_v25  ;;  %v5618_v10 = vmul.f32 %v5362_v41, %v5362_v41  ;;  %v4596_v44 = vmax.f32 %v4282_v26, 0.0  ;;  %v4284_v27 = vpop.f32.mrb[26].mxu1  ;;  %v6040_v45 = vpack.c.bf16 %v5362_v41, %v5360_v6  ;;  %v7551_v6 = vld [vmem:[%s8027_s29 + $0x388] sm:$0xff] }
 0x5b3   : > { %v5765_v52 = vadd.f32 %v5764_v11, %v5617_v9  ;;  %v4851_v34 = vmul.f32 0.4, %v4595_v42  ;;  %v4597_v13 = vmax.f32 %v4284_v27, 0.0  ;;  %v4286_v35 = vpop.f32.mrb[27].mxu1  ;;  %v632_v18 = vunpack.c.l.bf16 %v7551_v6 }
 0x5b4   : > { %v5898_v12 = vadd.f32 %v5897_v43, %v5618_v10  ;;  %v4852_v61 = vmul.f32 0.4, %v4596_v44  ;;  %v4598_v46 = vmax.f32 %v4286_v35, 0.0  ;;  %6222 = vmatprep.subr.bf16.mxu0 %v6040_v45  ;;  %v5114_v39 = vmul.f32 0.6, %v629_v30  ;;  %v7552_v43 = vld [vmem:[%s8027_s29 + $0x390] sm:$0xff] }
 0x5b5   : > { %v5363_v62 = vadd.f32 %v5107_v0, %v4851_v34  ;;  %v4853_v47 = vmul.f32 0.4, %v4597_v13  ;;  %6223 = vmatpush1.bf16.msra.mxu0 %v6039_v57  ;;  %v5115_v4 = vmul.f32 0.6, %v630_v63  ;;  %v5116_v7 = vmul.f32 0.6, %v631_v21 }
 0x5b6   : > { %v5364_v55 = vadd.f32 %v5108_v38, %v4852_v61  ;;  %v4854_v28 = vmul.f32 0.4, %v4598_v46  ;;  %v5117_v11 = vmul.f32 0.6, %v632_v18  ;;  %v633_v9 = vunpack.c.h.bf16 %v7551_v6 }
 0x5b7   : > { %v5619_v29 = vmul.f32 %v5363_v62, %v5363_v62  ;;  %v5365_v51 = vadd.f32 %v5109_v59, %v4853_v47  ;;  %v634_v10 = vunpack.c.l.bf16 %v7552_v43  ;;  %v635_v44 = vunpack.c.h.bf16 %v7552_v43 }
 0x5b8   : > { %v5620_v19 = vmul.f32 %v5364_v55, %v5364_v55  ;;  %v5366_v31 = vadd.f32 %v5110_v15, %v4854_v28  ;;  %v4290_v49 = vpop.f32.mrb[28].mxu1 }
 0x5b9   : > { %v5766_v50 = vadd.f32 %v5765_v52, %v5619_v29  ;;  %v5621_v22 = vmul.f32 %v5365_v51, %v5365_v51  ;;  %v6041_v3 = vpack.c.bf16 %v5365_v51, %v5363_v62  ;;  %v4599_v32 = vmax.f32 %v4290_v49, 0.0  ;;  %v4292_v1 = vpop.f32.mrb[29].mxu1 }
 0x5ba   : > { %v5899_v33 = vadd.f32 %v5898_v12, %v5620_v19  ;;  %v5622_v53 = vmul.f32 %v5366_v31, %v5366_v31  ;;  %v4600_v36 = vmax.f32 %v4292_v1, 0.0  ;;  %v4294_v2 = vpop.f32.mrb[30].mxu1  ;;  %v6042_v37 = vpack.c.bf16 %v5366_v31, %v5364_v55  ;;  %v7553_v55 = vld [vmem:[%s8027_s29 + $0x398] sm:$0xff] }
 0x5bb   : > { %v5767_v60 = vadd.f32 %v5766_v50, %v5621_v22  ;;  %v4855_v5 = vmul.f32 0.4, %v4599_v32  ;;  %v4601_v54 = vmax.f32 %v4294_v2, 0.0  ;;  %v4296_v17 = vpop.f32.mrb[31].mxu1  ;;  %v636_v28 = vunpack.c.l.bf16 %v7553_v55 }
 0x5bc   : > { %v5900_v0 = vadd.f32 %v5899_v33, %v5622_v53  ;;  %v4856_v38 = vmul.f32 0.4, %v4600_v36  ;;  %v4602_v24 = vmax.f32 %v4296_v17, 0.0  ;;  %6224 = vmatprep.subr.bf16.mxu0 %v6042_v37  ;;  %v5118_v51 = vmul.f32 0.6, %v633_v9  ;;  %v7554_v33 = vld [vmem:[%s8027_s29 + $0x3a0] sm:$0xff] }
 0x5bd   : > { %v5367_v59 = vadd.f32 %v5111_v48, %v4855_v5  ;;  %v4857_v40 = vmul.f32 0.4, %v4601_v54  ;;  %6225 = vmatpush1.bf16.msra.mxu0 %v6041_v3  ;;  %v5119_v49 = vmul.f32 0.6, %v634_v10  ;;  %v5120_v20 = vmul.f32 0.6, %v635_v44 }
 0x5be   : > { %v5368_v25 = vadd.f32 %v5112_v16, %v4856_v38  ;;  %v4858_v41 = vmul.f32 0.4, %v4602_v24  ;;  %v5121_v50 = vmul.f32 0.6, %v636_v28  ;;  %v637_v22 = vunpack.c.h.bf16 %v7553_v55 }
 0x5bf   : > { %v5623_v56 = vmul.f32 %v5367_v59, %v5367_v59  ;;  %v5369_v8 = vadd.f32 %v5113_v23, %v4857_v40  ;;  %v638_v53 = vunpack.c.l.bf16 %v7554_v33  ;;  %v639_v36 = vunpack.c.h.bf16 %v7554_v33 }
 0x5c0   : > { %v5624_v57 = vmul.f32 %v5368_v25, %v5368_v25  ;;  %v5370_v42 = vadd.f32 %v5114_v39, %v4858_v41  ;;  %v4300_v26 = vpop.f32.mrb[32].mxu1 }
 0x5c1   : > { %v5768_v27 = vadd.f32 %v5767_v60, %v5623_v56  ;;  %v5625_v45 = vmul.f32 %v5369_v8, %v5369_v8  ;;  %v6043_v52 = vpack.c.bf16 %v5369_v8, %v5367_v59  ;;  %v4603_v34 = vmax.f32 %v4300_v26, 0.0  ;;  %v4302_v13 = vpop.f32.mrb[33].mxu1 }
 0x5c2   : > { %v5901_v35 = vadd.f32 %v5900_v0, %v5624_v57  ;;  %v5626_v58 = vmul.f32 %v5370_v42, %v5370_v42  ;;  %v4604_v14 = vmax.f32 %v4302_v13, 0.0  ;;  %v4304_v12 = vpop.f32.mrb[34].mxu1  ;;  %v6044_v61 = vpack.c.bf16 %v5370_v42, %v5368_v25  ;;  %v7555_v25 = vld [vmem:[%s8027_s29 + $0x3a8] sm:$0xff] }
 0x5c3   : > { %v5769_v46 = vadd.f32 %v5768_v27, %v5625_v45  ;;  %v4859_v15 = vmul.f32 0.4, %v4603_v34  ;;  %v4605_v62 = vmax.f32 %v4304_v12, 0.0  ;;  %v4306_v47 = vpop.f32.mrb[35].mxu1  ;;  %v640_v41 = vunpack.c.l.bf16 %v7555_v25 }
 0x5c4   : > { %v5902_v48 = vadd.f32 %v5901_v35, %v5626_v58  ;;  %v4860_v16 = vmul.f32 0.4, %v4604_v14  ;;  %v4606_v29 = vmax.f32 %v4306_v47, 0.0  ;;  %6226 = vmatprep.subr.bf16.mxu0 %v6044_v61  ;;  %v5122_v8 = vmul.f32 0.6, %v637_v22  ;;  %v7556_v35 = vld [vmem:[%s8027_s29 + $0x3b0] sm:$0xff] }
 0x5c5   : > { %v5371_v23 = vadd.f32 %v5115_v4, %v4859_v15  ;;  %v4861_v30 = vmul.f32 0.4, %v4605_v62  ;;  %6227 = vmatpush1.bf16.msra.mxu0 %v6043_v52  ;;  %v5123_v26 = vmul.f32 0.6, %v638_v53  ;;  %v5124_v43 = vmul.f32 0.6, %v639_v36 }
 0x5c6   : > { %v5372_v19 = vadd.f32 %v5116_v7, %v4860_v16  ;;  %v4862_v31 = vmul.f32 0.4, %v4606_v29  ;;  %v5125_v27 = vmul.f32 0.6, %v640_v41  ;;  %v641_v45 = vunpack.c.h.bf16 %v7555_v25 }
 0x5c7   : > { %v5627_v63 = vmul.f32 %v5371_v23, %v5371_v23  ;;  %v5373_v21 = vadd.f32 %v5117_v11, %v4861_v30  ;;  %v642_v58 = vunpack.c.l.bf16 %v7556_v35  ;;  %v643_v14 = vunpack.c.h.bf16 %v7556_v35 }
 0x5c8   : > { %v5628_v3 = vmul.f32 %v5372_v19, %v5372_v19  ;;  %v5374_v32 = vadd.f32 %v5118_v51, %v4862_v31  ;;  %v4310_v1 = vpop.f32.mrb[36].mxu1 }
 0x5c9   : > { %v5770_v2 = vadd.f32 %v5769_v46, %v5627_v63  ;;  %v5629_v37 = vmul.f32 %v5373_v21, %v5373_v21  ;;  %v6045_v60 = vpack.c.bf16 %v5373_v21, %v5371_v23  ;;  %v4607_v5 = vmax.f32 %v4310_v1, 0.0  ;;  %v4312_v54 = vpop.f32.mrb[37].mxu1 }
 0x5ca   : > { %v5903_v17 = vadd.f32 %v5902_v48, %v5628_v3  ;;  %v5630_v6 = vmul.f32 %v5374_v32, %v5374_v32  ;;  %v4608_v18 = vmax.f32 %v4312_v54, 0.0  ;;  %v4314_v0 = vpop.f32.mrb[38].mxu1  ;;  %v6046_v38 = vpack.c.bf16 %v5374_v32, %v5372_v19  ;;  %v7557_v19 = vld [vmem:[%s8027_s29 + $0x3b8] sm:$0xff] }
 0x5cb   : > { %v5771_v24 = vadd.f32 %v5770_v2, %v5629_v37  ;;  %v4863_v39 = vmul.f32 0.4, %v4607_v5  ;;  %v4609_v59 = vmax.f32 %v4314_v0, 0.0  ;;  %v4316_v40 = vpop.f32.mrb[39].mxu1  ;;  %v644_v31 = vunpack.c.l.bf16 %v7557_v19 }
 0x5cc   : > { %v5904_v4 = vadd.f32 %v5903_v17, %v5630_v6  ;;  %v4864_v7 = vmul.f32 0.4, %v4608_v18  ;;  %v4610_v56 = vmax.f32 %v4316_v40, 0.0  ;;  %6228 = vmatprep.subr.bf16.mxu0 %v6046_v38  ;;  %v5126_v21 = vmul.f32 0.6, %v641_v45  ;;  %v7558_v17 = vld [vmem:[%s8027_s29 + $0x3c0] sm:$0xff] }
 0x5cd   : > { %v5375_v11 = vadd.f32 %v5119_v49, %v4863_v39  ;;  %v4865_v9 = vmul.f32 0.4, %v4609_v59  ;;  %6229 = vmatpush1.bf16.msra.mxu0 %v6045_v60  ;;  %v5127_v1 = vmul.f32 0.6, %v642_v58  ;;  %v5128_v33 = vmul.f32 0.6, %v643_v14 }
 0x5ce   : > { %v5376_v57 = vadd.f32 %v5120_v20, %v4864_v7  ;;  %v4866_v42 = vmul.f32 0.4, %v4610_v56  ;;  %v5129_v2 = vmul.f32 0.6, %v644_v31  ;;  %v645_v37 = vunpack.c.h.bf16 %v7557_v19 }
 0x5cf   : > { %v5631_v10 = vmul.f32 %v5375_v11, %v5375_v11  ;;  %v5377_v44 = vadd.f32 %v5121_v50, %v4865_v9  ;;  %v646_v6 = vunpack.c.l.bf16 %v7558_v17  ;;  %v647_v18 = vunpack.c.h.bf16 %v7558_v17 }
 0x5d0   : > { %v5632_v52 = vmul.f32 %v5376_v57, %v5376_v57  ;;  %v5378_v34 = vadd.f32 %v5122_v8, %v4866_v42  ;;  %v4320_v13 = vpop.f32.mrb[40].mxu1 }
 0x5d1   : > { %v5772_v12 = vadd.f32 %v5771_v24, %v5631_v10  ;;  %v5633_v61 = vmul.f32 %v5377_v44, %v5377_v44  ;;  %v6047_v46 = vpack.c.bf16 %v5377_v44, %v5375_v11  ;;  %v4611_v15 = vmax.f32 %v4320_v13, 0.0  ;;  %v4322_v62 = vpop.f32.mrb[41].mxu1 }
 0x5d2   : > { %v5905_v47 = vadd.f32 %v5904_v4, %v5632_v52  ;;  %v5634_v55 = vmul.f32 %v5378_v34, %v5378_v34  ;;  %v4612_v28 = vmax.f32 %v4322_v62, 0.0  ;;  %v4324_v48 = vpop.f32.mrb[42].mxu1  ;;  %v6048_v16 = vpack.c.bf16 %v5378_v34, %v5376_v57  ;;  %v7559_v57 = vld [vmem:[%s8027_s29 + $0x3c8] sm:$0xff] }
 0x5d3   : > { %v5773_v29 = vadd.f32 %v5772_v12, %v5633_v61  ;;  %v4867_v51 = vmul.f32 0.4, %v4611_v15  ;;  %v4613_v23 = vmax.f32 %v4324_v48, 0.0  ;;  %v4326_v30 = vpop.f32.mrb[43].mxu1  ;;  %v648_v42 = vunpack.c.l.bf16 %v7559_v57  ;;  %v7561_v48 = vld [vmem:[%s8027_s29 + $0x3d8] sm:$0xff] }
 0x5d4   : > { %v5906_v49 = vadd.f32 %v5905_v47, %v5634_v55  ;;  %v4868_v20 = vmul.f32 0.4, %v4612_v28  ;;  %v4614_v63 = vmax.f32 %v4326_v30, 0.0  ;;  %6230 = vmatprep.subr.bf16.mxu0 %v6048_v16  ;;  %v5130_v44 = vmul.f32 0.6, %v645_v37 }
 0x5d5   : > { %v5379_v50 = vadd.f32 %v5123_v26, %v4867_v51  ;;  %v4869_v22 = vmul.f32 0.4, %v4613_v23  ;;  %6231 = vmatpush1.bf16.msra.mxu0 %v6047_v46  ;;  %v5131_v52 = vmul.f32 0.6, %v646_v6  ;;  %v5132_v35 = vmul.f32 0.6, %v647_v18 }
 0x5d6   : > { %v5380_v3 = vadd.f32 %v5124_v43, %v4868_v20  ;;  %v4870_v32 = vmul.f32 0.4, %v4614_v63  ;;  %v649_v58 = vunpack.c.h.bf16 %v7559_v57  ;;  %v5133_v61 = vmul.f32 0.6, %v648_v42  ;;  %v7560_v46 = vld [vmem:[%s8027_s29 + $0x3d0] sm:$0xff] }
 0x5d7   : > { %v5635_v53 = vmul.f32 %v5379_v50, %v5379_v50  ;;  %v5381_v36 = vadd.f32 %v5125_v27, %v4869_v22  ;;  %v650_v15 = vunpack.c.l.bf16 %v7560_v46  ;;  %v651_v28 = vunpack.c.h.bf16 %v7560_v46 }
 0x5d8   : > { %v5636_v60 = vmul.f32 %v5380_v3, %v5380_v3  ;;  %v5382_v5 = vadd.f32 %v5126_v21, %v4870_v32  ;;  %v4330_v54 = vpop.f32.mrb[44].mxu1  ;;  %v652_v16 = vunpack.c.l.bf16 %v7561_v48 }
 0x5d9   : > { %v5774_v0 = vadd.f32 %v5773_v29, %v5635_v53  ;;  %v5637_v38 = vmul.f32 %v5381_v36, %v5381_v36  ;;  %v6049_v24 = vpack.c.bf16 %v5381_v36, %v5379_v50  ;;  %v4615_v39 = vmax.f32 %v4330_v54, 0.0  ;;  %v4332_v59 = vpop.f32.mrb[45].mxu1 }
 0x5da   : > { %v5907_v40 = vadd.f32 %v5906_v49, %v5636_v60  ;;  %v5638_v25 = vmul.f32 %v5382_v5, %v5382_v5  ;;  %v4616_v41 = vmax.f32 %v4332_v59, 0.0  ;;  %v4334_v4 = vpop.f32.mrb[46].mxu1  ;;  %v6050_v7 = vpack.c.bf16 %v5382_v5, %v5380_v3 }
 0x5db   : > { %v5775_v56 = vadd.f32 %v5774_v0, %v5637_v38  ;;  %v4871_v8 = vmul.f32 0.4, %v4615_v39  ;;  %v4617_v11 = vmax.f32 %v4334_v4, 0.0  ;;  %v4336_v9 = vpop.f32.mrb[47].mxu1  ;;  %v5135_v17 = vmul.f32 0.6, %v650_v15 }
 0x5dc   : > { %v5908_v26 = vadd.f32 %v5907_v40, %v5638_v25  ;;  %v4872_v43 = vmul.f32 0.4, %v4616_v41  ;;  %v4618_v10 = vmax.f32 %v4336_v9, 0.0  ;;  %6232 = vmatprep.subr.bf16.mxu0 %v6050_v7  ;;  %v5136_v6 = vmul.f32 0.6, %v651_v28  ;;  %v7562_v25 = vld [vmem:[%s8027_s29 + $0x3e0] sm:$0xff] }
 0x5dd   : > { %v5383_v27 = vadd.f32 %v5127_v1, %v4871_v8  ;;  %v4873_v45 = vmul.f32 0.4, %v4617_v11  ;;  %6233 = vmatpush1.bf16.msra.mxu0 %v6049_v24  ;;  %v653_v1 = vunpack.c.h.bf16 %v7561_v48  ;;  %v5137_v38 = vmul.f32 0.6, %v652_v16 }
 0x5de   : > { %v5384_v34 = vadd.f32 %v5128_v33, %v4872_v43  ;;  %v4874_v13 = vmul.f32 0.4, %v4618_v10  ;;  %v654_v41 = vunpack.c.l.bf16 %v7562_v25  ;;  %v655_v4 = vunpack.c.h.bf16 %v7562_v25 }
 0x5df   : > { %v5639_v14 = vmul.f32 %v5383_v27, %v5383_v27  ;;  %v5385_v12 = vadd.f32 %v5129_v2, %v4873_v45  ;;  %v5134_v2 = vmul.f32 0.6, %v649_v58  ;;  %v5138_v24 = vmul.f32 0.6, %v653_v1 }
 0x5e0   : > { %v5640_v62 = vmul.f32 %v5384_v34, %v5384_v34  ;;  %v5386_v47 = vadd.f32 %v5130_v44, %v4874_v13  ;;  %v4340_v55 = vpop.f32.mrb[48].mxu1  ;;  %v5139_v28 = vmul.f32 0.6, %v654_v41  ;;  %v5140_v48 = vmul.f32 0.6, %v655_v4 }
 0x5e1   : > { %v5776_v29 = vadd.f32 %v5775_v56, %v5639_v14  ;;  %v5641_v51 = vmul.f32 %v5385_v12, %v5385_v12  ;;  %v6051_v23 = vpack.c.bf16 %v5385_v12, %v5383_v27  ;;  %v4619_v30 = vmax.f32 %v4340_v55, 0.0  ;;  %v4342_v19 = vpop.f32.mrb[49].mxu1 }
 0x5e2   : > { %v5909_v31 = vadd.f32 %v5908_v26, %v5640_v62  ;;  %v5642_v49 = vmul.f32 %v5386_v47, %v5386_v47  ;;  %v4620_v20 = vmax.f32 %v4342_v19, 0.0  ;;  %v4344_v63 = vpop.f32.mrb[50].mxu1  ;;  %v6052_v21 = vpack.c.bf16 %v5386_v47, %v5384_v34  ;;  %v7563_v34 = vld [vmem:[%s8027_s29 + $0x3e8] sm:$0xff] }
 0x5e3   : > { %v5777_v50 = vadd.f32 %v5776_v29, %v5641_v51  ;;  %v4875_v22 = vmul.f32 0.4, %v4619_v30  ;;  %v4621_v3 = vmax.f32 %v4344_v63, 0.0  ;;  %v4346_v32 = vpop.f32.mrb[51].mxu1  ;;  %v656_v13 = vunpack.c.l.bf16 %v7563_v34 }
 0x5e4   : > { %v5910_v33 = vadd.f32 %v5909_v31, %v5642_v49  ;;  %v4876_v53 = vmul.f32 0.4, %v4620_v20  ;;  %v4622_v36 = vmax.f32 %v4346_v32, 0.0  ;;  %6234 = vmatprep.subr.bf16.mxu0 %v6052_v21  ;;  %v657_v12 = vunpack.c.h.bf16 %v7563_v34 }
 0x5e5   : > { %v5387_v37 = vadd.f32 %v5131_v52, %v4875_v22  ;;  %v4877_v60 = vmul.f32 0.4, %v4621_v3  ;;  %6235 = vmatpush1.bf16.msra.mxu0 %v6051_v23  ;;  %v5141_v23 = vmul.f32 0.6, %v656_v13 }
 0x5e6   : > { %v5388_v5 = vadd.f32 %v5132_v35, %v4876_v53  ;;  %v4878_v54 = vmul.f32 0.4, %v4622_v36  ;;  %v5142_v30 = vmul.f32 0.6, %v657_v12 }
 0x5e7   : > { %v5643_v18 = vmul.f32 %v5387_v37, %v5387_v37  ;;  %v5389_v0 = vadd.f32 %v5133_v61, %v4877_v60 }
 0x5e8   : > { %v5644_v39 = vmul.f32 %v5388_v5, %v5388_v5  ;;  %v5390_v59 = vadd.f32 %v5134_v2, %v4878_v54  ;;  %v4350_v40 = vpop.f32.mrb[52].mxu1  ;;  %v7564_v2 = vld [vmem:[%s8027_s29 + $0x3f0] sm:$0xff] }
 0x5e9   : > { %v5778_v7 = vadd.f32 %v5777_v50, %v5643_v18  ;;  %v5645_v56 = vmul.f32 %v5389_v0, %v5389_v0  ;;  %v6053_v8 = vpack.c.bf16 %v5389_v0, %v5387_v37  ;;  %v4623_v11 = vmax.f32 %v4350_v40, 0.0  ;;  %v4352_v9 = vpop.f32.mrb[53].mxu1  ;;  %v7565_v40 = vld [vmem:[%s8027_s29 + $0x3f8] sm:$0xff] }
 0x5ea   : > { %v5911_v57 = vadd.f32 %v5910_v33, %v5644_v39  ;;  %v5646_v42 = vmul.f32 %v5390_v59, %v5390_v59  ;;  %v4624_v26 = vmax.f32 %v4352_v9, 0.0  ;;  %v4354_v43 = vpop.f32.mrb[54].mxu1  ;;  %v6054_v10 = vpack.c.bf16 %v5390_v59, %v5388_v5 }
 0x5eb   : > { %v5779_v44 = vadd.f32 %v5778_v7, %v5645_v56  ;;  %v4879_v27 = vmul.f32 0.4, %v4623_v11  ;;  %v4625_v45 = vmax.f32 %v4354_v43, 0.0  ;;  %v4356_v52 = vpop.f32.mrb[55].mxu1  ;;  %v658_v37 = vunpack.c.l.bf16 %v7564_v2 }
 0x5ec   : > { %v5912_v35 = vadd.f32 %v5911_v57, %v5646_v42  ;;  %v4880_v58 = vmul.f32 0.4, %v4624_v26  ;;  %v4626_v14 = vmax.f32 %v4356_v52, 0.0  ;;  %6236 = vmatprep.subr.bf16.mxu0 %v6054_v10  ;;  %v660_v25 = vunpack.c.l.bf16 %v7565_v40 }
 0x5ed   : > { %v5391_v61 = vadd.f32 %v5135_v17, %v4879_v27  ;;  %v4881_v46 = vmul.f32 0.4, %v4625_v45  ;;  %6237 = vmatpush1.bf16.msra.mxu0 %v6053_v8  ;;  %v659_v17 = vunpack.c.h.bf16 %v7564_v2  ;;  %v5143_v59 = vmul.f32 0.6, %v658_v37 }
 0x5ee   : > { %v5392_v15 = vadd.f32 %v5136_v6, %v4880_v58  ;;  %v4882_v62 = vmul.f32 0.4, %v4626_v14  ;;  %v661_v8 = vunpack.c.h.bf16 %v7565_v40 }
 0x5ef   : > { %v5647_v47 = vmul.f32 %v5391_v61, %v5391_v61  ;;  %v5393_v55 = vadd.f32 %v5137_v38, %v4881_v46  ;;  %v5144_v56 = vmul.f32 0.6, %v659_v17 }
 0x5f0   : > { %v5648_v16 = vmul.f32 %v5392_v15, %v5392_v15  ;;  %v5394_v29 = vadd.f32 %v5138_v24, %v4882_v62  ;;  %v4360_v51 = vpop.f32.mrb[56].mxu1  ;;  %v5146_v46 = vmul.f32 0.6, %v661_v8 }
 0x5f1   : > { %v5780_v19 = vadd.f32 %v5779_v44, %v5647_v47  ;;  %v5649_v31 = vmul.f32 %v5393_v55, %v5393_v55  ;;  %v6055_v49 = vpack.c.bf16 %v5393_v55, %v5391_v61  ;;  %v4627_v20 = vmax.f32 %v4360_v51, 0.0  ;;  %v4362_v63 = vpop.f32.mrb[57].mxu1 }
 0x5f2   : > { %v5913_v21 = vadd.f32 %v5912_v35, %v5648_v16  ;;  %v5650_v50 = vmul.f32 %v5394_v29, %v5394_v29  ;;  %v4628_v22 = vmax.f32 %v4362_v63, 0.0  ;;  %v4364_v3 = vpop.f32.mrb[58].mxu1  ;;  %v6056_v32 = vpack.c.bf16 %v5394_v29, %v5392_v15 }
 0x5f3   : > { %v5781_v1 = vadd.f32 %v5780_v19, %v5649_v31  ;;  %v4883_v33 = vmul.f32 0.4, %v4627_v20  ;;  %v4629_v53 = vmax.f32 %v4364_v3, 0.0  ;;  %v4366_v36 = vpop.f32.mrb[59].mxu1  ;;  %v5145_v35 = vmul.f32 0.6, %v660_v25 }
 0x5f4   : > { %v5914_v60 = vadd.f32 %v5913_v21, %v5650_v50  ;;  %v4884_v5 = vmul.f32 0.4, %v4628_v22  ;;  %v4630_v54 = vmax.f32 %v4366_v36, 0.0  ;;  %6238 = vmatprep.subr.bf16.mxu0 %v6056_v32  ;;  %v7566_v21 = vld [vmem:[#allocation8 + $0x18] sm:$0xff] }
 0x5f5   : > { %v5395_v6 = vadd.f32 %v5139_v28, %v4883_v33  ;;  %v4885_v18 = vmul.f32 0.4, %v4629_v53  ;;  %6239 = vmatpush1.bf16.msra.mxu0 %v6055_v49  ;;  %v6793_v50 = vcombine.low %v7566_v21, %v7566_v21 }
 0x5f6   : > { %v5396_v0 = vadd.f32 %v5140_v48, %v4884_v5  ;;  %v4886_v38 = vmul.f32 0.4, %v4630_v54 }
 0x5f7   : > { %v5651_v24 = vmul.f32 %v5395_v6, %v5395_v6  ;;  %v5397_v39 = vadd.f32 %v5141_v23, %v4885_v18 }
 0x5f8   : > { %v5652_v41 = vmul.f32 %v5396_v0, %v5396_v0  ;;  %v5398_v4 = vadd.f32 %v5142_v30, %v4886_v38  ;;  %v4370_v7 = vpop.f32.mrb[60].mxu1 }
 0x5f9   : > { %v5782_v11 = vadd.f32 %v5781_v1, %v5651_v24  ;;  %v5653_v9 = vmul.f32 %v5397_v39, %v5397_v39  ;;  %v6057_v57 = vpack.c.bf16 %v5397_v39, %v5395_v6  ;;  %v4631_v42 = vmax.f32 %v4370_v7, 0.0  ;;  %v4372_v26 = vpop.f32.mrb[61].mxu1 }
 0x5fa   : > { %v5915_v43 = vadd.f32 %v5914_v60, %v5652_v41  ;;  %v5654_v10 = vmul.f32 %v5398_v4, %v5398_v4  ;;  %v4632_v44 = vmax.f32 %v4372_v26, 0.0  ;;  %v4374_v27 = vpop.f32.mrb[62].mxu1  ;;  %v6058_v45 = vpack.c.bf16 %v5398_v4, %v5396_v0 }
 0x5fb   : > { %v5783_v52 = vadd.f32 %v5782_v11, %v5653_v9  ;;  %v4887_v34 = vmul.f32 0.4, %v4631_v42  ;;  %v4633_v13 = vmax.f32 %v4374_v27, 0.0  ;;  %v4376_v58 = vpop.f32.mrb[63].mxu1 }
 0x5fc   : > { %v5916_v14 = vadd.f32 %v5915_v43, %v5654_v10  ;;  %v4888_v12 = vmul.f32 0.4, %v4632_v44  ;;  %v4634_v61 = vmax.f32 %v4376_v58, 0.0  ;;  %6240 = vmatprep.subr.bf16.mxu0 %v6058_v45 }
 0x5fd   : > { %v5399_v15 = vadd.f32 %v5143_v59, %v4887_v34  ;;  %v4889_v62 = vmul.f32 0.4, %v4633_v13  ;;  %6241 = vmatpush1.bf16.msra.mxu0 %v6057_v57 }
 0x5fe   : > { %v5400_v47 = vadd.f32 %v5144_v56, %v4888_v12  ;;  %v4890_v55 = vmul.f32 0.4, %v4634_v61 }
 0x5ff   : > { %v5655_v28 = vmul.f32 %v5399_v15, %v5399_v15  ;;  %v5401_v48 = vadd.f32 %v5145_v35, %v4889_v62 }
 0x600   : > { %v5656_v16 = vmul.f32 %v5400_v47, %v5400_v47  ;;  %v5402_v29 = vadd.f32 %v5146_v46, %v4890_v55 }
 0x601   : > { %v5784_v51 = vadd.f32 %v5783_v52, %v5655_v28  ;;  %v5657_v23 = vmul.f32 %v5401_v48, %v5401_v48  ;;  %v6059_v30 = vpack.c.bf16 %v5401_v48, %v5399_v15 }
 0x602   : > { %v5917_v19 = vadd.f32 %v5916_v14, %v5656_v16  ;;  %v5658_v31 = vmul.f32 %v5402_v29, %v5402_v29  ;;  %v6060_v49 = vpack.c.bf16 %v5402_v29, %v5400_v47 }
 0x603   : > { %v5785_v20 = vadd.f32 %v5784_v51, %v5657_v23 }
 0x604   : > { %v5918_v63 = vadd.f32 %v5917_v19, %v5658_v31  ;;  %6242 = vmatprep.subr.bf16.mxu0 %v6060_v49 }
 0x605   : > { %6243 = vmatpush1.bf16.msra.mxu0 %v6059_v30  ;;  %v5786_v22 = vrot.slane %v5785_v20, 4 }
 0x606   : > { %v5919_v3 = vrot.slane %v5918_v63, 4 }
 0x607   : > { %v5787_v32 = vadd.f32 %v5786_v22, %v5785_v20 }
 0x608   : > { %6245 = vmatmul.mubr.bf16.vlgmr.msra.gmra.mrb[64].mxu0 %v6793_v50  ;;  %v5920_v1 = vadd.f32 %v5919_v3, %v5918_v63 }
 0x609   : > { %v5788_v33 = vrot.slane %v5787_v32, 2 }
 0x60a   : > { %v5921_v53 = vrot.slane %v5920_v1, 2 }
 0x60b   : > { %v5789_v36 = vadd.f32 %v5788_v33, %v5787_v32 }
 0x60c   : > { %v5922_v2 = vadd.f32 %v5921_v53, %v5920_v1 }
 0x60d   : > { %v5790_v37 = vrot.slane %v5789_v36, 1 }
 0x60e   : > { %v5923_v60 = vrot.slane %v5922_v2, 1 }
 0x60f   : > { %v5791_v5 = vadd.f32 %v5790_v37, %v5789_v36 }
 0x610   : > { %v5924_v54 = vadd.f32 %v5923_v60, %v5922_v2 }
 0x611   : > { %v5925_v17 = vadd.f32 1e-12, %v5791_v5 }
 0x612   : > { %v5926_v6 = vadd.f32 1e-12, %v5924_v54 }
 0x613   : > { %7431 = vrsqrt.f32 %v5925_v17 }
 0x614   : > { %7433 = vrsqrt.f32 %v5926_v6 }
 0x61d   : > { %v7432_v18 = vpop.eup %7431 }
 0x61e   : > { %v7434_v38 = vpop.eup %7433 }
 0x6db   : > { %v6246_v0 = vpop.f32.mrb[64].mxu0 }
 0x6dc   : > { %v6253_v24 = vmul.f32 %v7432_v18, %v6246_v0  ;;  %v6248_v39 = vpop.f32.mrb[65].mxu0 }
 0x6dd   : > { %v6254_v59 = vmul.f32 %v7434_v38, %v6248_v39  ;;  %v6250_v40 = vpop.f32.mrb[66].mxu0 }
 0x6de   : > { %6255 = vst [vmem:[%s275_s27] sm:$0xff] %v6253_v24  ;;  %v6251_v25 = vpop.f32.mrb[67].mxu0 }
 0x6df   : > { %6256 = vst [vmem:[%s275_s27 + $0x8] sm:$0xff] %v6254_v59 }
 0x6e0   : > { %7694 = shalt.err (!%p7691_p0)
}
 0x6e1   : > { %s7695_s11 = scalar_lea.hbm %s8510_s5, 256  ;;  %s7699_s30 = scalar_lea.hbm %s8563_s4, 512 }
 0x6e2   : > { %p7696_p4 = scmp.ne.s32.totalorder %s8510_s5, %s7695_s11  ;;  %p7700_p12 = scmp.lt.u32.totalorder %s8510_s5, %s8563_s4 }
 0x6e3   : > { %p7701_p1 = scmp.lt.u32.totalorder %s7699_s30, %s7695_s11  ;;  %p7703_p13 = scmp.lt.u32.totalorder %s7695_s11, %s8510_s5 }
 0x6e4   : > { %p7697_p8 = pnand %p7696_p4, %p7964_p3 }
 0x6e5   : > { %p7702_p7 = por %p7701_p1, %p7700_p12 }
 0x6e6   : > { %p7698_p2 = pneg %p7697_p8 }
 0x6e7   : > { %p7704_p6 = por %p7703_p13, %p7702_p7 }
 0x6e9   : > { %p7705_p10 = pnand %p7704_p6, %p7698_p2 }
 0x6eb   : > { %7708 = shalt.err (!%p7705_p10)
}
 0x6ec   : > { %7020 = dma.vmem_to_hbm [thread:$0]  (%p7964_p3), %s8512_s22, 256, %s8510_s5, %s6258_s18  }
 0x6ed PF: > { %s6286_s23 = sand.u32 1, %s7751_s15   ;;  %p8616_p11 = scmp.ne.s32.totalorder %s8572_s26, 0 }
 0x6ee   : > { %p8617_p5 = scmp.ge.s32.totalorder %s7771_s20, 2  ;;  %s6287_s25 = scalar_lea.sflag [#allocation4], %s6286_s23 }
 0x6f0   : > { %p7037_p9 = pnand %p8617_p5, %p8616_p11 }
 0x6f2   : > { %7746 = dma.done.wait (!%p7037_p9), %s6287_s25, 256  }
 0x6f3   : > { %7748 = vsyncadd (!%p7037_p9), %s6287_s25, 4294967040  ;;  %s22_s20 = sadd.s32 1, %s7771_s20   ;;  %s8618_s15 = smov %s7755_s16 }
 0x6f4   : > { %p19_p0 = scmp.ge.s32.totalorder %s22_s20, 4   ;;  %s8619_s16 = smov %s7759_s17 }
 0x6f5   : > { %s8620_s17 = smov %s7973_s13  ;;  %s8621_s18 = smov %s7767_s19 }
 0x6f6   : > { %s8622_s19 = smov %s8624_s1  ;;  %21 = sbr.rel (!%p19_p0) target bundleno = 10 (0xa), region = 93 }
 0x6fd   :  { %6292 = vsyncpa [#allocation3], 1 }
 0x6fe   :  { %6294 = vsyncpa [#allocation3 + $0x1], 1 }
 0x6ff   :  { %6295 = vsyncpa [#allocation6], 1 }
 0x700   :  { %6296 = vsyncpa [#allocation9], 1 }
 0x701   :  { %6297 = vsyncpa [#allocation4], 1 }
 0x702   :  { %6299 = vsyncpa [#allocation4 + $0x1], 1 }

</bundles_post_ra>
